<compile_context>
chip_gen: v6e
topology: v6e:2x2x1
jax: 0.10.0
libtpu: 0.0.40
codegen_flags: <defaults>
</compile_context>

<pallas_src>
import math
import functools

import jax
import jax.numpy as jnp
from jax.experimental import pallas as pl
from jax.experimental.pallas import tpu as pltpu

# ---------------- model hyperparameters (small, consistent with the module) ----
D_MODEL = 32
NHEAD = 4
DHEAD = D_MODEL // NHEAD
DIM_FF = 64
NUM_ENC_LAYERS = 2
NUM_DEC_LAYERS = 2
NUM_QUERIES = 8
LN_EPS = 1e-5
NEG_INF = -1e30

PARAM_ORDER = (
    'e_qkv', 'e_out', 'e_ln1', 'e_f1', 'e_f2', 'e_ln2',
    'd_sa_qkv', 'd_sa_out', 'd_ln2',
    'd_ca_qkv', 'd_ca_out', 'd_ln1',
    'd_f1', 'd_f2', 'd_ln3',
)


# =============================== in-kernel helpers =============================

def _layer_norm(s, ln):
    """LayerNorm over last dim. ln: (2, D) = [gamma; beta]."""
    g = ln[0:1, :]
    beta = ln[1:2, :]
    mu = jnp.mean(s, axis=-1, keepdims=True)
    var = jnp.mean(jnp.square(s - mu), axis=-1, keepdims=True)
    return (s - mu) * jax.lax.rsqrt(var + LN_EPS) * g + beta


def _ffn_block(x, f1, f2, ln):
    """LayerNorm(x + Linear2(ReLU(Linear1(x)))).  f1: (D+1, F); f2: (F+1, D)."""
    w1 = f1[:D_MODEL]
    b1 = f1[D_MODEL:D_MODEL + 1]
    w2 = f2[:DIM_FF]
    b2 = f2[DIM_FF:DIM_FF + 1]
    h = jnp.maximum(jnp.dot(x, w1, preferred_element_type=jnp.float32) + b1, 0.0)
    t2 = jnp.dot(h, w2, preferred_element_type=jnp.float32) + b2
    return _layer_norm(x + t2, ln)


def _attention(q_in, k_in, v_in, mask_row, qkv, out_w, fuse_qk):
    """Multi-head attention.

    qkv:   (D+1, 3D)  — rows [0:D] are [wq|wk|wv], row D is [bq|bk|bv].
    out_w: (D+1, D)   — rows [0:D] are wo, row D is bo.
    mask_row: (1, Lk) additive key-padding bias, or None.
    fuse_qk: q_in and k_in are the same array -> single (D, 2D) projection.
    """
    D = D_MODEL
    w = qkv[:D]
    b = qkv[D:D + 1]
    wo = out_w[:D]
    bo = out_w[D:D + 1]
    scale = 1.0 / math.sqrt(DHEAD)

    if fuse_qk:
        qk = jnp.dot(q_in, w[:, :2 * D], preferred_element_type=jnp.float32) + b[:, :2 * D]
        qp = qk[:, :D] * scale           # scale folded once for all heads
        kp = qk[:, D:2 * D]
    else:
        qp = (jnp.dot(q_in, w[:, :D], preferred_element_type=jnp.float32) + b[:, :D]) * scale
        kp = jnp.dot(k_in, w[:, D:2 * D], preferred_element_type=jnp.float32) + b[:, D:2 * D]
    vp = jnp.dot(v_in, w[:, 2 * D:], preferred_element_type=jnp.float32) + b[:, 2 * D:]

    Lq = q_in.shape[0]
    Lk = k_in.shape[0]
    mask_full = None if mask_row is None else jnp.broadcast_to(mask_row, (Lq, Lk))

    acc = jnp.zeros((Lq, D), jnp.float32)
    for h in range(NHEAD):
        sl = slice(h * DHEAD, (h + 1) * DHEAD)
        s = jax.lax.dot_general(qp[:, sl], kp[:, sl], (((1,), (1,)), ((), ())),
                                preferred_element_type=jnp.float32)   # (Lq, Lk)
        if mask_full is not None:
            s = s + mask_full
        s = s - jnp.max(s, axis=-1, keepdims=True)
        p = jnp.exp(s)
        p = p * pl.reciprocal(jnp.sum(p, axis=-1, keepdims=True), approx=True)
        hv = jnp.dot(p, vp[:, sl], preferred_element_type=jnp.float32)        # (Lq, dh)
        acc = acc + jnp.dot(hv, wo[sl, :], preferred_element_type=jnp.float32)  # accumulate, no concat
    return acc + bo


# =============================== fused kernel ==================================

def transformer_kernel(src_ref, pos_ref, mask_ref, ent_ref, ent_pos_ref,
                       e_qkv_ref, e_out_ref, e_ln1_ref, e_f1_ref, e_f2_ref, e_ln2_ref,
                       d_sa_qkv_ref, d_sa_out_ref, d_ln2_ref,
                       d_ca_qkv_ref, d_ca_out_ref, d_ln1_ref,
                       d_f1_ref, d_f2_ref, d_ln3_ref,
                       hs_ref):
    """Entire encoder + decoder for one batch element (grid axis = batch)."""
    x = src_ref[0]            # (HW, D)
    pos = pos_ref[0]          # (HW, D)
    mask_row = mask_ref[0]    # (1, HW) additive key-padding bias

    # ---- encoder (post-norm DETR layer; see TODO at top) ----
    for l in range(NUM_ENC_LAYERS):
        qk = x + pos
        a = _attention(qk, qk, x, mask_row, e_qkv_ref[l], e_out_ref[l], fuse_qk=True)
        x = _layer_norm(x + a, e_ln1_ref[l])
        x = _ffn_block(x, e_f1_ref[l], e_f2_ref[l], e_ln2_ref[l])
    memory = x
    mem_k = memory + pos      # loop-invariant: hoisted out of the decoder loop

    # ---- decoder (TransformerDecoderLayer, dropout = identity) ----
    t = ent_ref[...]          # (NQ, D)
    ent_pos = ent_pos_ref[...]
    for l in range(NUM_DEC_LAYERS):
        qk = t + ent_pos
        a = _attention(qk, qk, t, None, d_sa_qkv_ref[l], d_sa_out_ref[l], fuse_qk=True)
        t = _layer_norm(t + a, d_ln2_ref[l])
        a = _attention(t + ent_pos, mem_k, memory, mask_row,
                       d_ca_qkv_ref[l], d_ca_out_ref[l], fuse_qk=False)
        t = _layer_norm(t + a, d_ln1_ref[l])
        t = _ffn_block(t, d_f1_ref[l], d_f2_ref[l], d_ln3_ref[l])
        hs_ref[l, 0, :, :] = t


# =============================== parameter init ================================

def _xavier(key, shape):
    a = math.sqrt(6.0 / (shape[0] + shape[1]))
    return jax.random.uniform(key, shape, jnp.float32, -a, a)


def _init_attn_packed(key):
    ks = jax.random.split(key, 4)
    wq = _xavier(ks[0], (D_MODEL, D_MODEL))
    wk = _xavier(ks[1], (D_MODEL, D_MODEL))
    wv = _xavier(ks[2], (D_MODEL, D_MODEL))
    wo = _xavier(ks[3], (D_MODEL, D_MODEL))
    qkv = jnp.concatenate([jnp.concatenate([wq, wk, wv], axis=1),
                           jnp.zeros((1, 3 * D_MODEL), jnp.float32)], axis=0)  # (D+1, 3D)
    out = jnp.concatenate([wo, jnp.zeros((1, D_MODEL), jnp.float32)], axis=0)  # (D+1, D)
    return qkv, out


def _init_ln_packed():
    return jnp.concatenate([jnp.ones((1, D_MODEL), jnp.float32),
                            jnp.zeros((1, D_MODEL), jnp.float32)], axis=0)     # (2, D)


def _init_ffn_packed(key):
    k1, k2 = jax.random.split(key)
    f1 = jnp.concatenate([_xavier(k1, (D_MODEL, DIM_FF)),
                          jnp.zeros((1, DIM_FF), jnp.float32)], axis=0)        # (D+1, F)
    f2 = jnp.concatenate([_xavier(k2, (DIM_FF, D_MODEL)),
                          jnp.zeros((1, D_MODEL), jnp.float32)], axis=0)       # (F+1, D)
    return f1, f2


def init_params(key):
    e_qkv, e_out, e_ln1, e_f1, e_f2, e_ln2 = [], [], [], [], [], []
    for _ in range(NUM_ENC_LAYERS):
        key, k1, k2 = jax.random.split(key, 3)
        qkv, out = _init_attn_packed(k1)
        f1, f2 = _init_ffn_packed(k2)
        e_qkv.append(qkv); e_out.append(out); e_ln1.append(_init_ln_packed())
        e_f1.append(f1); e_f2.append(f2); e_ln2.append(_init_ln_packed())

    d_sa_qkv, d_sa_out, d_ln2 = [], [], []
    d_ca_qkv, d_ca_out, d_ln1 = [], [], []
    d_f1, d_f2, d_ln3 = [], [], []
    for _ in range(NUM_DEC_LAYERS):
        key, k1, k2, k3 = jax.random.split(key, 4)
        qkv, out = _init_attn_packed(k1)
        d_sa_qkv.append(qkv); d_sa_out.append(out); d_ln2.append(_init_ln_packed())
        qkv, out = _init_attn_packed(k2)
        d_ca_qkv.append(qkv); d_ca_out.append(out); d_ln1.append(_init_ln_packed())
        f1, f2 = _init_ffn_packed(k3)
        d_f1.append(f1); d_f2.append(f2); d_ln3.append(_init_ln_packed())

    stk = lambda lst: jnp.stack(lst)
    return dict(
        e_qkv=stk(e_qkv), e_out=stk(e_out), e_ln1=stk(e_ln1),
        e_f1=stk(e_f1), e_f2=stk(e_f2), e_ln2=stk(e_ln2),
        d_sa_qkv=stk(d_sa_qkv), d_sa_out=stk(d_sa_out), d_ln2=stk(d_ln2),
        d_ca_qkv=stk(d_ca_qkv), d_ca_out=stk(d_ca_out), d_ln1=stk(d_ln1),
        d_f1=stk(d_f1), d_f2=stk(d_f2), d_ln3=stk(d_ln3),
    )


# =============================== full forward ==================================

def _const_spec(shape):
    zeros = (0,) * len(shape)
    return pl.BlockSpec(shape, lambda b, _z=zeros: _z)


@functools.partial(jax.jit, static_argnames=())
def transformer_forward(src, mask, entity_embed, pos_embed, params):
    bs, c, h, w = src.shape
    hw = h * w
    # PyTorch: src.flatten(2).permute(2,0,1) -> (hw, bs, c). We use (bs, hw, c).
    src_seq = src.reshape(bs, c, hw).transpose(0, 2, 1)
    pos_seq = pos_embed.reshape(bs, c, hw).transpose(0, 2, 1)
    mask_add = jnp.where(mask.reshape(bs, 1, hw),
                         jnp.float32(NEG_INF), jnp.float32(0.0))

    # entity_embed: (nq, 2c) -> (pos, content); shared across batch.
    ent_pos = entity_embed[:, :c]
    ent = entity_embed[:, c:]
    nq = ent.shape[0]

    in_specs = [
        pl.BlockSpec((1, hw, c), lambda b: (b, 0, 0)),   # src_seq
        pl.BlockSpec((1, hw, c), lambda b: (b, 0, 0)),   # pos_seq
        pl.BlockSpec((1, 1, hw), lambda b: (b, 0, 0)),   # additive mask
        _const_spec((nq, c)),                            # entity (content)
        _const_spec((nq, c)),                            # entity pos
    ] + [_const_spec(tuple(params[k].shape)) for k in PARAM_ORDER]

    hs = pl.pallas_call(
        transformer_kernel,
        grid=(bs,),
        in_specs=in_specs,
        out_specs=pl.BlockSpec((NUM_DEC_LAYERS, 1, nq, c), lambda b: (0, b, 0, 0)),
        out_shape=jax.ShapeDtypeStruct((NUM_DEC_LAYERS, bs, nq, c), jnp.float32),
        compiler_params=pltpu.CompilerParams(dimension_semantics=("parallel",)),
    )(src_seq, pos_seq, mask_add, ent, ent_pos,
      *[params[k] for k in PARAM_ORDER])

    # == PyTorch hs.transpose(1, 2) since our layout is already batch-first.
    return hs


# =============================== main ==========================================

if __name__ == "__main__":
    bs, c, h, w = 2, D_MODEL, 4, 4
    key = jax.random.PRNGKey(0)
    k_src, k_pos, k_ent, k_par = jax.random.split(key, 4)

    src = jax.random.normal(k_src, (bs, c, h, w), jnp.float32)
    pos_embed = jax.random.normal(k_pos, (bs, c, h, w), jnp.float32)
    entity_embed = jax.random.normal(k_ent, (NUM_QUERIES, 2 * c), jnp.float32)
    # key-padding mask: mask out last spatial column of batch 0
    mask = jnp.zeros((bs, h, w), jnp.bool_).at[0, :, -1].set(True)

    params = init_params(k_par)

    hs = transformer_forward(src, mask, entity_embed, pos_embed, params)
    hs = jax.block_until_ready(hs)
    assert hs.shape == (NUM_DEC_LAYERS, bs, NUM_QUERIES, D_MODEL)
    assert bool(jnp.all(jnp.isfinite(hs)))
    print("KERNEL_OK")
</pallas_src>

<mosaic_0001>
module attributes {stable_mosaic.version = 11 : i64} {
  func.func @transformer_kernel(%arg0: i32, %arg1: memref<1x16x32xf32, #tpu.memory_space<vmem>>, %arg2: memref<1x16x32xf32, #tpu.memory_space<vmem>>, %arg3: memref<1x1x16xf32, #tpu.memory_space<vmem>>, %arg4: memref<8x32xf32, #tpu.memory_space<vmem>>, %arg5: memref<8x32xf32, #tpu.memory_space<vmem>>, %arg6: memref<2x33x96xf32, #tpu.memory_space<vmem>>, %arg7: memref<2x33x32xf32, #tpu.memory_space<vmem>>, %arg8: memref<2x2x32xf32, #tpu.memory_space<vmem>>, %arg9: memref<2x33x64xf32, #tpu.memory_space<vmem>>, %arg10: memref<2x65x32xf32, #tpu.memory_space<vmem>>, %arg11: memref<2x2x32xf32, #tpu.memory_space<vmem>>, %arg12: memref<2x33x96xf32, #tpu.memory_space<vmem>>, %arg13: memref<2x33x32xf32, #tpu.memory_space<vmem>>, %arg14: memref<2x2x32xf32, #tpu.memory_space<vmem>>, %arg15: memref<2x33x96xf32, #tpu.memory_space<vmem>>, %arg16: memref<2x33x32xf32, #tpu.memory_space<vmem>>, %arg17: memref<2x2x32xf32, #tpu.memory_space<vmem>>, %arg18: memref<2x33x64xf32, #tpu.memory_space<vmem>>, %arg19: memref<2x65x32xf32, #tpu.memory_space<vmem>>, %arg20: memref<2x2x32xf32, #tpu.memory_space<vmem>>, %arg21: memref<2x1x8x32xf32, #tpu.memory_space<vmem>>) attributes {dimension_semantics = [#tpu.dimension_semantics<parallel>], iteration_bounds = array<i64: 2>, scalar_prefetch = 0 : i64, scratch_operands = 0 : i64, tpu.core_type = #tpu.core_type<tc>, window_params = [{transform_indices = @transform_0, window_bounds = array<i64: 1, 16, 32>}, {transform_indices = @transform_1, window_bounds = array<i64: 1, 16, 32>}, {transform_indices = @transform_2, window_bounds = array<i64: 1, 1, 16>}, {pipeline_mode = #tpu.pipeline_mode<synchronous>, transform_indices = @transform_3, window_bounds = array<i64: 8, 32>}, {pipeline_mode = #tpu.pipeline_mode<synchronous>, transform_indices = @transform_4, window_bounds = array<i64: 8, 32>}, {pipeline_mode = #tpu.pipeline_mode<synchronous>, transform_indices = @transform_5, window_bounds = array<i64: 2, 33, 96>}, {pipeline_mode = #tpu.pipeline_mode<synchronous>, transform_indices = @transform_6, window_bounds = array<i64: 2, 33, 32>}, {pipeline_mode = #tpu.pipeline_mode<synchronous>, transform_indices = @transform_7, window_bounds = array<i64: 2, 2, 32>}, {pipeline_mode = #tpu.pipeline_mode<synchronous>, transform_indices = @transform_8, window_bounds = array<i64: 2, 33, 64>}, {pipeline_mode = #tpu.pipeline_mode<synchronous>, transform_indices = @transform_9, window_bounds = array<i64: 2, 65, 32>}, {pipeline_mode = #tpu.pipeline_mode<synchronous>, transform_indices = @transform_10, window_bounds = array<i64: 2, 2, 32>}, {pipeline_mode = #tpu.pipeline_mode<synchronous>, transform_indices = @transform_11, window_bounds = array<i64: 2, 33, 96>}, {pipeline_mode = #tpu.pipeline_mode<synchronous>, transform_indices = @transform_12, window_bounds = array<i64: 2, 33, 32>}, {pipeline_mode = #tpu.pipeline_mode<synchronous>, transform_indices = @transform_13, window_bounds = array<i64: 2, 2, 32>}, {pipeline_mode = #tpu.pipeline_mode<synchronous>, transform_indices = @transform_14, window_bounds = array<i64: 2, 33, 96>}, {pipeline_mode = #tpu.pipeline_mode<synchronous>, transform_indices = @transform_15, window_bounds = array<i64: 2, 33, 32>}, {pipeline_mode = #tpu.pipeline_mode<synchronous>, transform_indices = @transform_16, window_bounds = array<i64: 2, 2, 32>}, {pipeline_mode = #tpu.pipeline_mode<synchronous>, transform_indices = @transform_17, window_bounds = array<i64: 2, 33, 64>}, {pipeline_mode = #tpu.pipeline_mode<synchronous>, transform_indices = @transform_18, window_bounds = array<i64: 2, 65, 32>}, {pipeline_mode = #tpu.pipeline_mode<synchronous>, transform_indices = @transform_19, window_bounds = array<i64: 2, 2, 32>}, {transform_indices = @transform_20, window_bounds = array<i64: 2, 1, 8, 32>}]} {
    %c0 = arith.constant 0 : index
    %c0_0 = arith.constant 0 : index
    %c0_1 = arith.constant 0 : index
    %0 = vector.load %arg1[%c0, %c0_0, %c0_1] : memref<1x16x32xf32, #tpu.memory_space<vmem>>, vector<1x16x32xf32>
    %1 = vector.shape_cast %0 : vector<1x16x32xf32> to vector<16x32xf32>
    %c0_2 = arith.constant 0 : index
    %c0_3 = arith.constant 0 : index
    %c0_4 = arith.constant 0 : index
    %2 = vector.load %arg2[%c0_2, %c0_3, %c0_4] : memref<1x16x32xf32, #tpu.memory_space<vmem>>, vector<1x16x32xf32>
    %3 = vector.shape_cast %2 : vector<1x16x32xf32> to vector<16x32xf32>
    %c0_5 = arith.constant 0 : index
    %c0_6 = arith.constant 0 : index
    %c0_7 = arith.constant 0 : index
    %4 = vector.load %arg3[%c0_5, %c0_6, %c0_7] : memref<1x1x16xf32, #tpu.memory_space<vmem>>, vector<1x1x16xf32>
    %5 = vector.shape_cast %4 : vector<1x1x16xf32> to vector<1x16xf32>
    %6 = arith.addf %1, %3 : vector<16x32xf32>
    %c0_8 = arith.constant 0 : index
    %c0_9 = arith.constant 0 : index
    %c0_10 = arith.constant 0 : index
    %7 = vector.load %arg6[%c0_8, %c0_9, %c0_10] : memref<2x33x96xf32, #tpu.memory_space<vmem>>, vector<1x33x96xf32>
    %8 = vector.shape_cast %7 : vector<1x33x96xf32> to vector<33x96xf32>
    %c0_11 = arith.constant 0 : index
    %c0_12 = arith.constant 0 : index
    %c0_13 = arith.constant 0 : index
    %9 = vector.load %arg7[%c0_11, %c0_12, %c0_13] : memref<2x33x32xf32, #tpu.memory_space<vmem>>, vector<1x33x32xf32>
    %10 = vector.shape_cast %9 : vector<1x33x32xf32> to vector<33x32xf32>
    %11 = vector.extract_strided_slice %8 {offsets = [0, 0], sizes = [32, 96], strides = [1, 1]} : vector<33x96xf32> to vector<32x96xf32>
    %12 = vector.extract_strided_slice %8 {offsets = [32, 0], sizes = [1, 96], strides = [1, 1]} : vector<33x96xf32> to vector<1x96xf32>
    %13 = vector.extract_strided_slice %10 {offsets = [0, 0], sizes = [32, 32], strides = [1, 1]} : vector<33x32xf32> to vector<32x32xf32>
    %14 = vector.extract_strided_slice %10 {offsets = [32, 0], sizes = [1, 32], strides = [1, 1]} : vector<33x32xf32> to vector<1x32xf32>
    %15 = vector.extract_strided_slice %11 {offsets = [0, 0], sizes = [32, 64], strides = [1, 1]} : vector<32x96xf32> to vector<32x64xf32>
    %cst = arith.constant dense<0.000000e+00> : vector<16x64xf32>
    %16 = tpu.matmul %6, %15, %cst {dimension_numbers = #tpu.dot_dimension_numbers<[1], [0], [0], [1], [0, 0, 1, 1], [], []>} : vector<16x32xf32>, vector<32x64xf32>, vector<16x64xf32> -> vector<16x64xf32>
    %17 = vector.extract_strided_slice %12 {offsets = [0, 0], sizes = [1, 64], strides = [1, 1]} : vector<1x96xf32> to vector<1x64xf32>
    %18 = vector.broadcast %17 : vector<1x64xf32> to vector<16x64xf32>
    %19 = arith.addf %16, %18 : vector<16x64xf32>
    %20 = vector.extract_strided_slice %19 {offsets = [0, 0], sizes = [16, 32], strides = [1, 1]} : vector<16x64xf32> to vector<16x32xf32>
    %cst_14 = arith.constant 0.353553385 : f32
    %21 = vector.broadcast %cst_14 : f32 to vector<16x32xf32>
    %22 = arith.mulf %20, %21 : vector<16x32xf32>
    %23 = vector.extract_strided_slice %19 {offsets = [0, 32], sizes = [16, 32], strides = [1, 1]} : vector<16x64xf32> to vector<16x32xf32>
    %24 = vector.extract_strided_slice %11 {offsets = [0, 64], sizes = [32, 32], strides = [1, 1]} : vector<32x96xf32> to vector<32x32xf32>
    %cst_15 = arith.constant dense<0.000000e+00> : vector<16x32xf32>
    %25 = tpu.matmul %1, %24, %cst_15 {dimension_numbers = #tpu.dot_dimension_numbers<[1], [0], [0], [1], [0, 0, 1, 1], [], []>} : vector<16x32xf32>, vector<32x32xf32>, vector<16x32xf32> -> vector<16x32xf32>
    %26 = vector.extract_strided_slice %12 {offsets = [0, 64], sizes = [1, 32], strides = [1, 1]} : vector<1x96xf32> to vector<1x32xf32>
    %27 = vector.broadcast %26 : vector<1x32xf32> to vector<16x32xf32>
    %28 = arith.addf %25, %27 : vector<16x32xf32>
    %29 = vector.shape_cast %5 : vector<1x16xf32> to vector<1x16xf32>
    %30 = vector.broadcast %29 : vector<1x16xf32> to vector<16x16xf32>
    %cst_16 = arith.constant 0.000000e+00 : f32
    %31 = vector.broadcast %cst_16 : f32 to vector<16x32xf32>
    %32 = vector.extract_strided_slice %22 {offsets = [0, 0], sizes = [16, 8], strides = [1, 1]} : vector<16x32xf32> to vector<16x8xf32>
    %33 = vector.extract_strided_slice %23 {offsets = [0, 0], sizes = [16, 8], strides = [1, 1]} : vector<16x32xf32> to vector<16x8xf32>
    %cst_17 = arith.constant dense<0.000000e+00> : vector<16x16xf32>
    %34 = tpu.matmul %32, %33, %cst_17 {dimension_numbers = #tpu.dot_dimension_numbers<[1], [1], [0], [0], [0, 0, 1, 0], [], []>} : vector<16x8xf32>, vector<16x8xf32>, vector<16x16xf32> -> vector<16x16xf32>
    %35 = arith.addf %34, %30 : vector<16x16xf32>
    %cst_18 = arith.constant dense<0xFF800000> : vector<16xf32>
    %36 = vector.multi_reduction <maximumf>, %35, %cst_18 [1] : vector<16x16xf32> to vector<16xf32>
    %37 = vector.shape_cast %36 : vector<16xf32> to vector<16x1xf32>
    %38 = vector.broadcast %37 : vector<16x1xf32> to vector<16x16xf32>
    %39 = arith.subf %35, %38 : vector<16x16xf32>
    %40 = math.exp %39 : vector<16x16xf32>
    %cst_19 = arith.constant dense<0.000000e+00> : vector<16xf32>
    %41 = vector.multi_reduction <add>, %40, %cst_19 [1] : vector<16x16xf32> to vector<16xf32>
    %42 = vector.shape_cast %41 : vector<16xf32> to vector<16x1xf32>
    %43 = tpu.reciprocal %42 {approx = true} : vector<16x1xf32> -> vector<16x1xf32>
    %44 = vector.broadcast %43 : vector<16x1xf32> to vector<16x16xf32>
    %45 = arith.mulf %40, %44 : vector<16x16xf32>
    %46 = vector.extract_strided_slice %28 {offsets = [0, 0], sizes = [16, 8], strides = [1, 1]} : vector<16x32xf32> to vector<16x8xf32>
    %cst_20 = arith.constant dense<0.000000e+00> : vector<16x8xf32>
    %47 = tpu.matmul %45, %46, %cst_20 {dimension_numbers = #tpu.dot_dimension_numbers<[1], [0], [0], [1], [0, 0, 1, 1], [], []>} : vector<16x16xf32>, vector<16x8xf32>, vector<16x8xf32> -> vector<16x8xf32>
    %48 = vector.extract_strided_slice %13 {offsets = [0, 0], sizes = [8, 32], strides = [1, 1]} : vector<32x32xf32> to vector<8x32xf32>
    %cst_21 = arith.constant dense<0.000000e+00> : vector<16x32xf32>
    %49 = tpu.matmul %47, %48, %cst_21 {dimension_numbers = #tpu.dot_dimension_numbers<[1], [0], [0], [1], [0, 0, 1, 1], [], []>} : vector<16x8xf32>, vector<8x32xf32>, vector<16x32xf32> -> vector<16x32xf32>
    %50 = arith.addf %31, %49 : vector<16x32xf32>
    %51 = vector.extract_strided_slice %22 {offsets = [0, 8], sizes = [16, 8], strides = [1, 1]} : vector<16x32xf32> to vector<16x8xf32>
    %52 = vector.extract_strided_slice %23 {offsets = [0, 8], sizes = [16, 8], strides = [1, 1]} : vector<16x32xf32> to vector<16x8xf32>
    %cst_22 = arith.constant dense<0.000000e+00> : vector<16x16xf32>
    %53 = tpu.matmul %51, %52, %cst_22 {dimension_numbers = #tpu.dot_dimension_numbers<[1], [1], [0], [0], [0, 0, 1, 0], [], []>} : vector<16x8xf32>, vector<16x8xf32>, vector<16x16xf32> -> vector<16x16xf32>
    %54 = arith.addf %53, %30 : vector<16x16xf32>
    %cst_23 = arith.constant dense<0xFF800000> : vector<16xf32>
    %55 = vector.multi_reduction <maximumf>, %54, %cst_23 [1] : vector<16x16xf32> to vector<16xf32>
    %56 = vector.shape_cast %55 : vector<16xf32> to vector<16x1xf32>
    %57 = vector.broadcast %56 : vector<16x1xf32> to vector<16x16xf32>
    %58 = arith.subf %54, %57 : vector<16x16xf32>
    %59 = math.exp %58 : vector<16x16xf32>
    %cst_24 = arith.constant dense<0.000000e+00> : vector<16xf32>
    %60 = vector.multi_reduction <add>, %59, %cst_24 [1] : vector<16x16xf32> to vector<16xf32>
    %61 = vector.shape_cast %60 : vector<16xf32> to vector<16x1xf32>
    %62 = tpu.reciprocal %61 {approx = true} : vector<16x1xf32> -> vector<16x1xf32>
    %63 = vector.broadcast %62 : vector<16x1xf32> to vector<16x16xf32>
    %64 = arith.mulf %59, %63 : vector<16x16xf32>
    %65 = vector.extract_strided_slice %28 {offsets = [0, 8], sizes = [16, 8], strides = [1, 1]} : vector<16x32xf32> to vector<16x8xf32>
    %cst_25 = arith.constant dense<0.000000e+00> : vector<16x8xf32>
    %66 = tpu.matmul %64, %65, %cst_25 {dimension_numbers = #tpu.dot_dimension_numbers<[1], [0], [0], [1], [0, 0, 1, 1], [], []>} : vector<16x16xf32>, vector<16x8xf32>, vector<16x8xf32> -> vector<16x8xf32>
    %67 = vector.extract_strided_slice %13 {offsets = [8, 0], sizes = [8, 32], strides = [1, 1]} : vector<32x32xf32> to vector<8x32xf32>
    %cst_26 = arith.constant dense<0.000000e+00> : vector<16x32xf32>
    %68 = tpu.matmul %66, %67, %cst_26 {dimension_numbers = #tpu.dot_dimension_numbers<[1], [0], [0], [1], [0, 0, 1, 1], [], []>} : vector<16x8xf32>, vector<8x32xf32>, vector<16x32xf32> -> vector<16x32xf32>
    %69 = arith.addf %50, %68 : vector<16x32xf32>
    %70 = vector.extract_strided_slice %22 {offsets = [0, 16], sizes = [16, 8], strides = [1, 1]} : vector<16x32xf32> to vector<16x8xf32>
    %71 = vector.extract_strided_slice %23 {offsets = [0, 16], sizes = [16, 8], strides = [1, 1]} : vector<16x32xf32> to vector<16x8xf32>
    %cst_27 = arith.constant dense<0.000000e+00> : vector<16x16xf32>
    %72 = tpu.matmul %70, %71, %cst_27 {dimension_numbers = #tpu.dot_dimension_numbers<[1], [1], [0], [0], [0, 0, 1, 0], [], []>} : vector<16x8xf32>, vector<16x8xf32>, vector<16x16xf32> -> vector<16x16xf32>
    %73 = arith.addf %72, %30 : vector<16x16xf32>
    %cst_28 = arith.constant dense<0xFF800000> : vector<16xf32>
    %74 = vector.multi_reduction <maximumf>, %73, %cst_28 [1] : vector<16x16xf32> to vector<16xf32>
    %75 = vector.shape_cast %74 : vector<16xf32> to vector<16x1xf32>
    %76 = vector.broadcast %75 : vector<16x1xf32> to vector<16x16xf32>
    %77 = arith.subf %73, %76 : vector<16x16xf32>
    %78 = math.exp %77 : vector<16x16xf32>
    %cst_29 = arith.constant dense<0.000000e+00> : vector<16xf32>
    %79 = vector.multi_reduction <add>, %78, %cst_29 [1] : vector<16x16xf32> to vector<16xf32>
    %80 = vector.shape_cast %79 : vector<16xf32> to vector<16x1xf32>
    %81 = tpu.reciprocal %80 {approx = true} : vector<16x1xf32> -> vector<16x1xf32>
    %82 = vector.broadcast %81 : vector<16x1xf32> to vector<16x16xf32>
    %83 = arith.mulf %78, %82 : vector<16x16xf32>
    %84 = vector.extract_strided_slice %28 {offsets = [0, 16], sizes = [16, 8], strides = [1, 1]} : vector<16x32xf32> to vector<16x8xf32>
    %cst_30 = arith.constant dense<0.000000e+00> : vector<16x8xf32>
    %85 = tpu.matmul %83, %84, %cst_30 {dimension_numbers = #tpu.dot_dimension_numbers<[1], [0], [0], [1], [0, 0, 1, 1], [], []>} : vector<16x16xf32>, vector<16x8xf32>, vector<16x8xf32> -> vector<16x8xf32>
    %86 = vector.extract_strided_slice %13 {offsets = [16, 0], sizes = [8, 32], strides = [1, 1]} : vector<32x32xf32> to vector<8x32xf32>
    %cst_31 = arith.constant dense<0.000000e+00> : vector<16x32xf32>
    %87 = tpu.matmul %85, %86, %cst_31 {dimension_numbers = #tpu.dot_dimension_numbers<[1], [0], [0], [1], [0, 0, 1, 1], [], []>} : vector<16x8xf32>, vector<8x32xf32>, vector<16x32xf32> -> vector<16x32xf32>
    %88 = arith.addf %69, %87 : vector<16x32xf32>
    %89 = vector.extract_strided_slice %22 {offsets = [0, 24], sizes = [16, 8], strides = [1, 1]} : vector<16x32xf32> to vector<16x8xf32>
    %90 = vector.extract_strided_slice %23 {offsets = [0, 24], sizes = [16, 8], strides = [1, 1]} : vector<16x32xf32> to vector<16x8xf32>
    %cst_32 = arith.constant dense<0.000000e+00> : vector<16x16xf32>
    %91 = tpu.matmul %89, %90, %cst_32 {dimension_numbers = #tpu.dot_dimension_numbers<[1], [1], [0], [0], [0, 0, 1, 0], [], []>} : vector<16x8xf32>, vector<16x8xf32>, vector<16x16xf32> -> vector<16x16xf32>
    %92 = arith.addf %91, %30 : vector<16x16xf32>
    %cst_33 = arith.constant dense<0xFF800000> : vector<16xf32>
    %93 = vector.multi_reduction <maximumf>, %92, %cst_33 [1] : vector<16x16xf32> to vector<16xf32>
    %94 = vector.shape_cast %93 : vector<16xf32> to vector<16x1xf32>
    %95 = vector.broadcast %94 : vector<16x1xf32> to vector<16x16xf32>
    %96 = arith.subf %92, %95 : vector<16x16xf32>
    %97 = math.exp %96 : vector<16x16xf32>
    %cst_34 = arith.constant dense<0.000000e+00> : vector<16xf32>
    %98 = vector.multi_reduction <add>, %97, %cst_34 [1] : vector<16x16xf32> to vector<16xf32>
    %99 = vector.shape_cast %98 : vector<16xf32> to vector<16x1xf32>
    %100 = tpu.reciprocal %99 {approx = true} : vector<16x1xf32> -> vector<16x1xf32>
    %101 = vector.broadcast %100 : vector<16x1xf32> to vector<16x16xf32>
    %102 = arith.mulf %97, %101 : vector<16x16xf32>
    %103 = vector.extract_strided_slice %28 {offsets = [0, 24], sizes = [16, 8], strides = [1, 1]} : vector<16x32xf32> to vector<16x8xf32>
    %cst_35 = arith.constant dense<0.000000e+00> : vector<16x8xf32>
    %104 = tpu.matmul %102, %103, %cst_35 {dimension_numbers = #tpu.dot_dimension_numbers<[1], [0], [0], [1], [0, 0, 1, 1], [], []>} : vector<16x16xf32>, vector<16x8xf32>, vector<16x8xf32> -> vector<16x8xf32>
    %105 = vector.extract_strided_slice %13 {offsets = [24, 0], sizes = [8, 32], strides = [1, 1]} : vector<32x32xf32> to vector<8x32xf32>
    %cst_36 = arith.constant dense<0.000000e+00> : vector<16x32xf32>
    %106 = tpu.matmul %104, %105, %cst_36 {dimension_numbers = #tpu.dot_dimension_numbers<[1], [0], [0], [1], [0, 0, 1, 1], [], []>} : vector<16x8xf32>, vector<8x32xf32>, vector<16x32xf32> -> vector<16x32xf32>
    %107 = arith.addf %88, %106 : vector<16x32xf32>
    %108 = vector.broadcast %14 : vector<1x32xf32> to vector<16x32xf32>
    %109 = arith.addf %107, %108 : vector<16x32xf32>
    %110 = arith.addf %1, %109 : vector<16x32xf32>
    %c0_37 = arith.constant 0 : index
    %c0_38 = arith.constant 0 : index
    %c0_39 = arith.constant 0 : index
    %111 = vector.load %arg8[%c0_37, %c0_38, %c0_39] : memref<2x2x32xf32, #tpu.memory_space<vmem>>, vector<1x2x32xf32>
    %112 = vector.shape_cast %111 : vector<1x2x32xf32> to vector<2x32xf32>
    %113 = vector.extract_strided_slice %112 {offsets = [0, 0], sizes = [1, 32], strides = [1, 1]} : vector<2x32xf32> to vector<1x32xf32>
    %114 = vector.extract_strided_slice %112 {offsets = [1, 0], sizes = [1, 32], strides = [1, 1]} : vector<2x32xf32> to vector<1x32xf32>
    %cst_40 = arith.constant dense<0.000000e+00> : vector<16xf32>
    %115 = vector.multi_reduction <add>, %110, %cst_40 [1] : vector<16x32xf32> to vector<16xf32>
    %116 = vector.shape_cast %115 : vector<16xf32> to vector<16x1xf32>
    %cst_41 = arith.constant 3.200000e+01 : f32
    %117 = vector.broadcast %cst_41 : f32 to vector<16x1xf32>
    %118 = arith.divf %116, %117 : vector<16x1xf32>
    %119 = vector.broadcast %118 : vector<16x1xf32> to vector<16x32xf32>
    %120 = arith.subf %110, %119 : vector<16x32xf32>
    %121 = arith.mulf %120, %120 : vector<16x32xf32>
    %cst_42 = arith.constant dense<0.000000e+00> : vector<16xf32>
    %122 = vector.multi_reduction <add>, %121, %cst_42 [1] : vector<16x32xf32> to vector<16xf32>
    %123 = vector.shape_cast %122 : vector<16xf32> to vector<16x1xf32>
    %cst_43 = arith.constant 3.200000e+01 : f32
    %124 = vector.broadcast %cst_43 : f32 to vector<16x1xf32>
    %125 = arith.divf %123, %124 : vector<16x1xf32>
    %126 = vector.broadcast %118 : vector<16x1xf32> to vector<16x32xf32>
    %127 = arith.subf %110, %126 : vector<16x32xf32>
    %cst_44 = arith.constant 9.99999974E-6 : f32
    %128 = vector.broadcast %cst_44 : f32 to vector<16x1xf32>
    %129 = arith.addf %125, %128 : vector<16x1xf32>
    %130 = math.rsqrt %129 : vector<16x1xf32>
    %131 = vector.broadcast %130 : vector<16x1xf32> to vector<16x32xf32>
    %132 = arith.mulf %127, %131 : vector<16x32xf32>
    %133 = vector.broadcast %113 : vector<1x32xf32> to vector<16x32xf32>
    %134 = arith.mulf %132, %133 : vector<16x32xf32>
    %135 = vector.broadcast %114 : vector<1x32xf32> to vector<16x32xf32>
    %136 = arith.addf %134, %135 : vector<16x32xf32>
    %c0_45 = arith.constant 0 : index
    %c0_46 = arith.constant 0 : index
    %c0_47 = arith.constant 0 : index
    %137 = vector.load %arg9[%c0_45, %c0_46, %c0_47] : memref<2x33x64xf32, #tpu.memory_space<vmem>>, vector<1x33x64xf32>
    %138 = vector.shape_cast %137 : vector<1x33x64xf32> to vector<33x64xf32>
    %c0_48 = arith.constant 0 : index
    %c0_49 = arith.constant 0 : index
    %c0_50 = arith.constant 0 : index
    %139 = vector.load %arg10[%c0_48, %c0_49, %c0_50] : memref<2x65x32xf32, #tpu.memory_space<vmem>>, vector<1x65x32xf32>
    %140 = vector.shape_cast %139 : vector<1x65x32xf32> to vector<65x32xf32>
    %c0_51 = arith.constant 0 : index
    %c0_52 = arith.constant 0 : index
    %c0_53 = arith.constant 0 : index
    %141 = vector.load %arg11[%c0_51, %c0_52, %c0_53] : memref<2x2x32xf32, #tpu.memory_space<vmem>>, vector<1x2x32xf32>
    %142 = vector.shape_cast %141 : vector<1x2x32xf32> to vector<2x32xf32>
    %143 = vector.extract_strided_slice %138 {offsets = [0, 0], sizes = [32, 64], strides = [1, 1]} : vector<33x64xf32> to vector<32x64xf32>
    %144 = vector.extract_strided_slice %138 {offsets = [32, 0], sizes = [1, 64], strides = [1, 1]} : vector<33x64xf32> to vector<1x64xf32>
    %145 = vector.extract_strided_slice %140 {offsets = [0, 0], sizes = [64, 32], strides = [1, 1]} : vector<65x32xf32> to vector<64x32xf32>
    %146 = vector.extract_strided_slice %140 {offsets = [64, 0], sizes = [1, 32], strides = [1, 1]} : vector<65x32xf32> to vector<1x32xf32>
    %cst_54 = arith.constant dense<0.000000e+00> : vector<16x64xf32>
    %147 = tpu.matmul %136, %143, %cst_54 {dimension_numbers = #tpu.dot_dimension_numbers<[1], [0], [0], [1], [0, 0, 1, 1], [], []>} : vector<16x32xf32>, vector<32x64xf32>, vector<16x64xf32> -> vector<16x64xf32>
    %148 = vector.broadcast %144 : vector<1x64xf32> to vector<16x64xf32>
    %149 = arith.addf %147, %148 : vector<16x64xf32>
    %cst_55 = arith.constant 0.000000e+00 : f32
    %150 = vector.broadcast %cst_55 : f32 to vector<16x64xf32>
    %151 = arith.maximumf %149, %150 : vector<16x64xf32>
    %cst_56 = arith.constant dense<0.000000e+00> : vector<16x32xf32>
    %152 = tpu.matmul %151, %145, %cst_56 {dimension_numbers = #tpu.dot_dimension_numbers<[1], [0], [0], [1], [0, 0, 1, 1], [], []>} : vector<16x64xf32>, vector<64x32xf32>, vector<16x32xf32> -> vector<16x32xf32>
    %153 = vector.broadcast %146 : vector<1x32xf32> to vector<16x32xf32>
    %154 = arith.addf %152, %153 : vector<16x32xf32>
    %155 = arith.addf %136, %154 : vector<16x32xf32>
    %156 = vector.extract_strided_slice %142 {offsets = [0, 0], sizes = [1, 32], strides = [1, 1]} : vector<2x32xf32> to vector<1x32xf32>
    %157 = vector.extract_strided_slice %142 {offsets = [1, 0], sizes = [1, 32], strides = [1, 1]} : vector<2x32xf32> to vector<1x32xf32>
    %cst_57 = arith.constant dense<0.000000e+00> : vector<16xf32>
    %158 = vector.multi_reduction <add>, %155, %cst_57 [1] : vector<16x32xf32> to vector<16xf32>
    %159 = vector.shape_cast %158 : vector<16xf32> to vector<16x1xf32>
    %cst_58 = arith.constant 3.200000e+01 : f32
    %160 = vector.broadcast %cst_58 : f32 to vector<16x1xf32>
    %161 = arith.divf %159, %160 : vector<16x1xf32>
    %162 = vector.broadcast %161 : vector<16x1xf32> to vector<16x32xf32>
    %163 = arith.subf %155, %162 : vector<16x32xf32>
    %164 = arith.mulf %163, %163 : vector<16x32xf32>
    %cst_59 = arith.constant dense<0.000000e+00> : vector<16xf32>
    %165 = vector.multi_reduction <add>, %164, %cst_59 [1] : vector<16x32xf32> to vector<16xf32>
    %166 = vector.shape_cast %165 : vector<16xf32> to vector<16x1xf32>
    %cst_60 = arith.constant 3.200000e+01 : f32
    %167 = vector.broadcast %cst_60 : f32 to vector<16x1xf32>
    %168 = arith.divf %166, %167 : vector<16x1xf32>
    %169 = vector.broadcast %161 : vector<16x1xf32> to vector<16x32xf32>
    %170 = arith.subf %155, %169 : vector<16x32xf32>
    %cst_61 = arith.constant 9.99999974E-6 : f32
    %171 = vector.broadcast %cst_61 : f32 to vector<16x1xf32>
    %172 = arith.addf %168, %171 : vector<16x1xf32>
    %173 = math.rsqrt %172 : vector<16x1xf32>
    %174 = vector.broadcast %173 : vector<16x1xf32> to vector<16x32xf32>
    %175 = arith.mulf %170, %174 : vector<16x32xf32>
    %176 = vector.broadcast %156 : vector<1x32xf32> to vector<16x32xf32>
    %177 = arith.mulf %175, %176 : vector<16x32xf32>
    %178 = vector.broadcast %157 : vector<1x32xf32> to vector<16x32xf32>
    %179 = arith.addf %177, %178 : vector<16x32xf32>
    %180 = arith.addf %179, %3 : vector<16x32xf32>
    %c1 = arith.constant 1 : index
    %c0_62 = arith.constant 0 : index
    %c0_63 = arith.constant 0 : index
    %181 = vector.load %arg6[%c1, %c0_62, %c0_63] : memref<2x33x96xf32, #tpu.memory_space<vmem>>, vector<1x33x96xf32>
    %182 = vector.shape_cast %181 : vector<1x33x96xf32> to vector<33x96xf32>
    %c1_64 = arith.constant 1 : index
    %c0_65 = arith.constant 0 : index
    %c0_66 = arith.constant 0 : index
    %183 = vector.load %arg7[%c1_64, %c0_65, %c0_66] : memref<2x33x32xf32, #tpu.memory_space<vmem>>, vector<1x33x32xf32>
    %184 = vector.shape_cast %183 : vector<1x33x32xf32> to vector<33x32xf32>
    %185 = vector.extract_strided_slice %182 {offsets = [0, 0], sizes = [32, 96], strides = [1, 1]} : vector<33x96xf32> to vector<32x96xf32>
    %186 = vector.extract_strided_slice %182 {offsets = [32, 0], sizes = [1, 96], strides = [1, 1]} : vector<33x96xf32> to vector<1x96xf32>
    %187 = vector.extract_strided_slice %184 {offsets = [0, 0], sizes = [32, 32], strides = [1, 1]} : vector<33x32xf32> to vector<32x32xf32>
    %188 = vector.extract_strided_slice %184 {offsets = [32, 0], sizes = [1, 32], strides = [1, 1]} : vector<33x32xf32> to vector<1x32xf32>
    %189 = vector.extract_strided_slice %185 {offsets = [0, 0], sizes = [32, 64], strides = [1, 1]} : vector<32x96xf32> to vector<32x64xf32>
    %cst_67 = arith.constant dense<0.000000e+00> : vector<16x64xf32>
    %190 = tpu.matmul %180, %189, %cst_67 {dimension_numbers = #tpu.dot_dimension_numbers<[1], [0], [0], [1], [0, 0, 1, 1], [], []>} : vector<16x32xf32>, vector<32x64xf32>, vector<16x64xf32> -> vector<16x64xf32>
    %191 = vector.extract_strided_slice %186 {offsets = [0, 0], sizes = [1, 64], strides = [1, 1]} : vector<1x96xf32> to vector<1x64xf32>
    %192 = vector.broadcast %191 : vector<1x64xf32> to vector<16x64xf32>
    %193 = arith.addf %190, %192 : vector<16x64xf32>
    %194 = vector.extract_strided_slice %193 {offsets = [0, 0], sizes = [16, 32], strides = [1, 1]} : vector<16x64xf32> to vector<16x32xf32>
    %cst_68 = arith.constant 0.353553385 : f32
    %195 = vector.broadcast %cst_68 : f32 to vector<16x32xf32>
    %196 = arith.mulf %194, %195 : vector<16x32xf32>
    %197 = vector.extract_strided_slice %193 {offsets = [0, 32], sizes = [16, 32], strides = [1, 1]} : vector<16x64xf32> to vector<16x32xf32>
    %198 = vector.extract_strided_slice %185 {offsets = [0, 64], sizes = [32, 32], strides = [1, 1]} : vector<32x96xf32> to vector<32x32xf32>
    %cst_69 = arith.constant dense<0.000000e+00> : vector<16x32xf32>
    %199 = tpu.matmul %179, %198, %cst_69 {dimension_numbers = #tpu.dot_dimension_numbers<[1], [0], [0], [1], [0, 0, 1, 1], [], []>} : vector<16x32xf32>, vector<32x32xf32>, vector<16x32xf32> -> vector<16x32xf32>
    %200 = vector.extract_strided_slice %186 {offsets = [0, 64], sizes = [1, 32], strides = [1, 1]} : vector<1x96xf32> to vector<1x32xf32>
    %201 = vector.broadcast %200 : vector<1x32xf32> to vector<16x32xf32>
    %202 = arith.addf %199, %201 : vector<16x32xf32>
    %203 = vector.shape_cast %5 : vector<1x16xf32> to vector<1x16xf32>
    %204 = vector.broadcast %203 : vector<1x16xf32> to vector<16x16xf32>
    %cst_70 = arith.constant 0.000000e+00 : f32
    %205 = vector.broadcast %cst_70 : f32 to vector<16x32xf32>
    %206 = vector.extract_strided_slice %196 {offsets = [0, 0], sizes = [16, 8], strides = [1, 1]} : vector<16x32xf32> to vector<16x8xf32>
    %207 = vector.extract_strided_slice %197 {offsets = [0, 0], sizes = [16, 8], strides = [1, 1]} : vector<16x32xf32> to vector<16x8xf32>
    %cst_71 = arith.constant dense<0.000000e+00> : vector<16x16xf32>
    %208 = tpu.matmul %206, %207, %cst_71 {dimension_numbers = #tpu.dot_dimension_numbers<[1], [1], [0], [0], [0, 0, 1, 0], [], []>} : vector<16x8xf32>, vector<16x8xf32>, vector<16x16xf32> -> vector<16x16xf32>
    %209 = arith.addf %208, %204 : vector<16x16xf32>
    %cst_72 = arith.constant dense<0xFF800000> : vector<16xf32>
    %210 = vector.multi_reduction <maximumf>, %209, %cst_72 [1] : vector<16x16xf32> to vector<16xf32>
    %211 = vector.shape_cast %210 : vector<16xf32> to vector<16x1xf32>
    %212 = vector.broadcast %211 : vector<16x1xf32> to vector<16x16xf32>
    %213 = arith.subf %209, %212 : vector<16x16xf32>
    %214 = math.exp %213 : vector<16x16xf32>
    %cst_73 = arith.constant dense<0.000000e+00> : vector<16xf32>
    %215 = vector.multi_reduction <add>, %214, %cst_73 [1] : vector<16x16xf32> to vector<16xf32>
    %216 = vector.shape_cast %215 : vector<16xf32> to vector<16x1xf32>
    %217 = tpu.reciprocal %216 {approx = true} : vector<16x1xf32> -> vector<16x1xf32>
    %218 = vector.broadcast %217 : vector<16x1xf32> to vector<16x16xf32>
    %219 = arith.mulf %214, %218 : vector<16x16xf32>
    %220 = vector.extract_strided_slice %202 {offsets = [0, 0], sizes = [16, 8], strides = [1, 1]} : vector<16x32xf32> to vector<16x8xf32>
    %cst_74 = arith.constant dense<0.000000e+00> : vector<16x8xf32>
    %221 = tpu.matmul %219, %220, %cst_74 {dimension_numbers = #tpu.dot_dimension_numbers<[1], [0], [0], [1], [0, 0, 1, 1], [], []>} : vector<16x16xf32>, vector<16x8xf32>, vector<16x8xf32> -> vector<16x8xf32>
    %222 = vector.extract_strided_slice %187 {offsets = [0, 0], sizes = [8, 32], strides = [1, 1]} : vector<32x32xf32> to vector<8x32xf32>
    %cst_75 = arith.constant dense<0.000000e+00> : vector<16x32xf32>
    %223 = tpu.matmul %221, %222, %cst_75 {dimension_numbers = #tpu.dot_dimension_numbers<[1], [0], [0], [1], [0, 0, 1, 1], [], []>} : vector<16x8xf32>, vector<8x32xf32>, vector<16x32xf32> -> vector<16x32xf32>
    %224 = arith.addf %205, %223 : vector<16x32xf32>
    %225 = vector.extract_strided_slice %196 {offsets = [0, 8], sizes = [16, 8], strides = [1, 1]} : vector<16x32xf32> to vector<16x8xf32>
    %226 = vector.extract_strided_slice %197 {offsets = [0, 8], sizes = [16, 8], strides = [1, 1]} : vector<16x32xf32> to vector<16x8xf32>
    %cst_76 = arith.constant dense<0.000000e+00> : vector<16x16xf32>
    %227 = tpu.matmul %225, %226, %cst_76 {dimension_numbers = #tpu.dot_dimension_numbers<[1], [1], [0], [0], [0, 0, 1, 0], [], []>} : vector<16x8xf32>, vector<16x8xf32>, vector<16x16xf32> -> vector<16x16xf32>
    %228 = arith.addf %227, %204 : vector<16x16xf32>
    %cst_77 = arith.constant dense<0xFF800000> : vector<16xf32>
    %229 = vector.multi_reduction <maximumf>, %228, %cst_77 [1] : vector<16x16xf32> to vector<16xf32>
    %230 = vector.shape_cast %229 : vector<16xf32> to vector<16x1xf32>
    %231 = vector.broadcast %230 : vector<16x1xf32> to vector<16x16xf32>
    %232 = arith.subf %228, %231 : vector<16x16xf32>
    %233 = math.exp %232 : vector<16x16xf32>
    %cst_78 = arith.constant dense<0.000000e+00> : vector<16xf32>
    %234 = vector.multi_reduction <add>, %233, %cst_78 [1] : vector<16x16xf32> to vector<16xf32>
    %235 = vector.shape_cast %234 : vector<16xf32> to vector<16x1xf32>
    %236 = tpu.reciprocal %235 {approx = true} : vector<16x1xf32> -> vector<16x1xf32>
    %237 = vector.broadcast %236 : vector<16x1xf32> to vector<16x16xf32>
    %238 = arith.mulf %233, %237 : vector<16x16xf32>
    %239 = vector.extract_strided_slice %202 {offsets = [0, 8], sizes = [16, 8], strides = [1, 1]} : vector<16x32xf32> to vector<16x8xf32>
    %cst_79 = arith.constant dense<0.000000e+00> : vector<16x8xf32>
    %240 = tpu.matmul %238, %239, %cst_79 {dimension_numbers = #tpu.dot_dimension_numbers<[1], [0], [0], [1], [0, 0, 1, 1], [], []>} : vector<16x16xf32>, vector<16x8xf32>, vector<16x8xf32> -> vector<16x8xf32>
    %241 = vector.extract_strided_slice %187 {offsets = [8, 0], sizes = [8, 32], strides = [1, 1]} : vector<32x32xf32> to vector<8x32xf32>
    %cst_80 = arith.constant dense<0.000000e+00> : vector<16x32xf32>
    %242 = tpu.matmul %240, %241, %cst_80 {dimension_numbers = #tpu.dot_dimension_numbers<[1], [0], [0], [1], [0, 0, 1, 1], [], []>} : vector<16x8xf32>, vector<8x32xf32>, vector<16x32xf32> -> vector<16x32xf32>
    %243 = arith.addf %224, %242 : vector<16x32xf32>
    %244 = vector.extract_strided_slice %196 {offsets = [0, 16], sizes = [16, 8], strides = [1, 1]} : vector<16x32xf32> to vector<16x8xf32>
    %245 = vector.extract_strided_slice %197 {offsets = [0, 16], sizes = [16, 8], strides = [1, 1]} : vector<16x32xf32> to vector<16x8xf32>
    %cst_81 = arith.constant dense<0.000000e+00> : vector<16x16xf32>
    %246 = tpu.matmul %244, %245, %cst_81 {dimension_numbers = #tpu.dot_dimension_numbers<[1], [1], [0], [0], [0, 0, 1, 0], [], []>} : vector<16x8xf32>, vector<16x8xf32>, vector<16x16xf32> -> vector<16x16xf32>
    %247 = arith.addf %246, %204 : vector<16x16xf32>
    %cst_82 = arith.constant dense<0xFF800000> : vector<16xf32>
    %248 = vector.multi_reduction <maximumf>, %247, %cst_82 [1] : vector<16x16xf32> to vector<16xf32>
    %249 = vector.shape_cast %248 : vector<16xf32> to vector<16x1xf32>
    %250 = vector.broadcast %249 : vector<16x1xf32> to vector<16x16xf32>
    %251 = arith.subf %247, %250 : vector<16x16xf32>
    %252 = math.exp %251 : vector<16x16xf32>
    %cst_83 = arith.constant dense<0.000000e+00> : vector<16xf32>
    %253 = vector.multi_reduction <add>, %252, %cst_83 [1] : vector<16x16xf32> to vector<16xf32>
    %254 = vector.shape_cast %253 : vector<16xf32> to vector<16x1xf32>
    %255 = tpu.reciprocal %254 {approx = true} : vector<16x1xf32> -> vector<16x1xf32>
    %256 = vector.broadcast %255 : vector<16x1xf32> to vector<16x16xf32>
    %257 = arith.mulf %252, %256 : vector<16x16xf32>
    %258 = vector.extract_strided_slice %202 {offsets = [0, 16], sizes = [16, 8], strides = [1, 1]} : vector<16x32xf32> to vector<16x8xf32>
    %cst_84 = arith.constant dense<0.000000e+00> : vector<16x8xf32>
    %259 = tpu.matmul %257, %258, %cst_84 {dimension_numbers = #tpu.dot_dimension_numbers<[1], [0], [0], [1], [0, 0, 1, 1], [], []>} : vector<16x16xf32>, vector<16x8xf32>, vector<16x8xf32> -> vector<16x8xf32>
    %260 = vector.extract_strided_slice %187 {offsets = [16, 0], sizes = [8, 32], strides = [1, 1]} : vector<32x32xf32> to vector<8x32xf32>
    %cst_85 = arith.constant dense<0.000000e+00> : vector<16x32xf32>
    %261 = tpu.matmul %259, %260, %cst_85 {dimension_numbers = #tpu.dot_dimension_numbers<[1], [0], [0], [1], [0, 0, 1, 1], [], []>} : vector<16x8xf32>, vector<8x32xf32>, vector<16x32xf32> -> vector<16x32xf32>
    %262 = arith.addf %243, %261 : vector<16x32xf32>
    %263 = vector.extract_strided_slice %196 {offsets = [0, 24], sizes = [16, 8], strides = [1, 1]} : vector<16x32xf32> to vector<16x8xf32>
    %264 = vector.extract_strided_slice %197 {offsets = [0, 24], sizes = [16, 8], strides = [1, 1]} : vector<16x32xf32> to vector<16x8xf32>
    %cst_86 = arith.constant dense<0.000000e+00> : vector<16x16xf32>
    %265 = tpu.matmul %263, %264, %cst_86 {dimension_numbers = #tpu.dot_dimension_numbers<[1], [1], [0], [0], [0, 0, 1, 0], [], []>} : vector<16x8xf32>, vector<16x8xf32>, vector<16x16xf32> -> vector<16x16xf32>
    %266 = arith.addf %265, %204 : vector<16x16xf32>
    %cst_87 = arith.constant dense<0xFF800000> : vector<16xf32>
    %267 = vector.multi_reduction <maximumf>, %266, %cst_87 [1] : vector<16x16xf32> to vector<16xf32>
    %268 = vector.shape_cast %267 : vector<16xf32> to vector<16x1xf32>
    %269 = vector.broadcast %268 : vector<16x1xf32> to vector<16x16xf32>
    %270 = arith.subf %266, %269 : vector<16x16xf32>
    %271 = math.exp %270 : vector<16x16xf32>
    %cst_88 = arith.constant dense<0.000000e+00> : vector<16xf32>
    %272 = vector.multi_reduction <add>, %271, %cst_88 [1] : vector<16x16xf32> to vector<16xf32>
    %273 = vector.shape_cast %272 : vector<16xf32> to vector<16x1xf32>
    %274 = tpu.reciprocal %273 {approx = true} : vector<16x1xf32> -> vector<16x1xf32>
    %275 = vector.broadcast %274 : vector<16x1xf32> to vector<16x16xf32>
    %276 = arith.mulf %271, %275 : vector<16x16xf32>
    %277 = vector.extract_strided_slice %202 {offsets = [0, 24], sizes = [16, 8], strides = [1, 1]} : vector<16x32xf32> to vector<16x8xf32>
    %cst_89 = arith.constant dense<0.000000e+00> : vector<16x8xf32>
    %278 = tpu.matmul %276, %277, %cst_89 {dimension_numbers = #tpu.dot_dimension_numbers<[1], [0], [0], [1], [0, 0, 1, 1], [], []>} : vector<16x16xf32>, vector<16x8xf32>, vector<16x8xf32> -> vector<16x8xf32>
    %279 = vector.extract_strided_slice %187 {offsets = [24, 0], sizes = [8, 32], strides = [1, 1]} : vector<32x32xf32> to vector<8x32xf32>
    %cst_90 = arith.constant dense<0.000000e+00> : vector<16x32xf32>
    %280 = tpu.matmul %278, %279, %cst_90 {dimension_numbers = #tpu.dot_dimension_numbers<[1], [0], [0], [1], [0, 0, 1, 1], [], []>} : vector<16x8xf32>, vector<8x32xf32>, vector<16x32xf32> -> vector<16x32xf32>
    %281 = arith.addf %262, %280 : vector<16x32xf32>
    %282 = vector.broadcast %188 : vector<1x32xf32> to vector<16x32xf32>
    %283 = arith.addf %281, %282 : vector<16x32xf32>
    %284 = arith.addf %179, %283 : vector<16x32xf32>
    %c1_91 = arith.constant 1 : index
    %c0_92 = arith.constant 0 : index
    %c0_93 = arith.constant 0 : index
    %285 = vector.load %arg8[%c1_91, %c0_92, %c0_93] : memref<2x2x32xf32, #tpu.memory_space<vmem>>, vector<1x2x32xf32>
    %286 = vector.shape_cast %285 : vector<1x2x32xf32> to vector<2x32xf32>
    %287 = vector.extract_strided_slice %286 {offsets = [0, 0], sizes = [1, 32], strides = [1, 1]} : vector<2x32xf32> to vector<1x32xf32>
    %288 = vector.extract_strided_slice %286 {offsets = [1, 0], sizes = [1, 32], strides = [1, 1]} : vector<2x32xf32> to vector<1x32xf32>
    %cst_94 = arith.constant dense<0.000000e+00> : vector<16xf32>
    %289 = vector.multi_reduction <add>, %284, %cst_94 [1] : vector<16x32xf32> to vector<16xf32>
    %290 = vector.shape_cast %289 : vector<16xf32> to vector<16x1xf32>
    %cst_95 = arith.constant 3.200000e+01 : f32
    %291 = vector.broadcast %cst_95 : f32 to vector<16x1xf32>
    %292 = arith.divf %290, %291 : vector<16x1xf32>
    %293 = vector.broadcast %292 : vector<16x1xf32> to vector<16x32xf32>
    %294 = arith.subf %284, %293 : vector<16x32xf32>
    %295 = arith.mulf %294, %294 : vector<16x32xf32>
    %cst_96 = arith.constant dense<0.000000e+00> : vector<16xf32>
    %296 = vector.multi_reduction <add>, %295, %cst_96 [1] : vector<16x32xf32> to vector<16xf32>
    %297 = vector.shape_cast %296 : vector<16xf32> to vector<16x1xf32>
    %cst_97 = arith.constant 3.200000e+01 : f32
    %298 = vector.broadcast %cst_97 : f32 to vector<16x1xf32>
    %299 = arith.divf %297, %298 : vector<16x1xf32>
    %300 = vector.broadcast %292 : vector<16x1xf32> to vector<16x32xf32>
    %301 = arith.subf %284, %300 : vector<16x32xf32>
    %cst_98 = arith.constant 9.99999974E-6 : f32
    %302 = vector.broadcast %cst_98 : f32 to vector<16x1xf32>
    %303 = arith.addf %299, %302 : vector<16x1xf32>
    %304 = math.rsqrt %303 : vector<16x1xf32>
    %305 = vector.broadcast %304 : vector<16x1xf32> to vector<16x32xf32>
    %306 = arith.mulf %301, %305 : vector<16x32xf32>
    %307 = vector.broadcast %287 : vector<1x32xf32> to vector<16x32xf32>
    %308 = arith.mulf %306, %307 : vector<16x32xf32>
    %309 = vector.broadcast %288 : vector<1x32xf32> to vector<16x32xf32>
    %310 = arith.addf %308, %309 : vector<16x32xf32>
    %c1_99 = arith.constant 1 : index
    %c0_100 = arith.constant 0 : index
    %c0_101 = arith.constant 0 : index
    %311 = vector.load %arg9[%c1_99, %c0_100, %c0_101] : memref<2x33x64xf32, #tpu.memory_space<vmem>>, vector<1x33x64xf32>
    %312 = vector.shape_cast %311 : vector<1x33x64xf32> to vector<33x64xf32>
    %c1_102 = arith.constant 1 : index
    %c0_103 = arith.constant 0 : index
    %c0_104 = arith.constant 0 : index
    %313 = vector.load %arg10[%c1_102, %c0_103, %c0_104] : memref<2x65x32xf32, #tpu.memory_space<vmem>>, vector<1x65x32xf32>
    %314 = vector.shape_cast %313 : vector<1x65x32xf32> to vector<65x32xf32>
    %c1_105 = arith.constant 1 : index
    %c0_106 = arith.constant 0 : index
    %c0_107 = arith.constant 0 : index
    %315 = vector.load %arg11[%c1_105, %c0_106, %c0_107] : memref<2x2x32xf32, #tpu.memory_space<vmem>>, vector<1x2x32xf32>
    %316 = vector.shape_cast %315 : vector<1x2x32xf32> to vector<2x32xf32>
    %317 = vector.extract_strided_slice %312 {offsets = [0, 0], sizes = [32, 64], strides = [1, 1]} : vector<33x64xf32> to vector<32x64xf32>
    %318 = vector.extract_strided_slice %312 {offsets = [32, 0], sizes = [1, 64], strides = [1, 1]} : vector<33x64xf32> to vector<1x64xf32>
    %319 = vector.extract_strided_slice %314 {offsets = [0, 0], sizes = [64, 32], strides = [1, 1]} : vector<65x32xf32> to vector<64x32xf32>
    %320 = vector.extract_strided_slice %314 {offsets = [64, 0], sizes = [1, 32], strides = [1, 1]} : vector<65x32xf32> to vector<1x32xf32>
    %cst_108 = arith.constant dense<0.000000e+00> : vector<16x64xf32>
    %321 = tpu.matmul %310, %317, %cst_108 {dimension_numbers = #tpu.dot_dimension_numbers<[1], [0], [0], [1], [0, 0, 1, 1], [], []>} : vector<16x32xf32>, vector<32x64xf32>, vector<16x64xf32> -> vector<16x64xf32>
    %322 = vector.broadcast %318 : vector<1x64xf32> to vector<16x64xf32>
    %323 = arith.addf %321, %322 : vector<16x64xf32>
    %cst_109 = arith.constant 0.000000e+00 : f32
    %324 = vector.broadcast %cst_109 : f32 to vector<16x64xf32>
    %325 = arith.maximumf %323, %324 : vector<16x64xf32>
    %cst_110 = arith.constant dense<0.000000e+00> : vector<16x32xf32>
    %326 = tpu.matmul %325, %319, %cst_110 {dimension_numbers = #tpu.dot_dimension_numbers<[1], [0], [0], [1], [0, 0, 1, 1], [], []>} : vector<16x64xf32>, vector<64x32xf32>, vector<16x32xf32> -> vector<16x32xf32>
    %327 = vector.broadcast %320 : vector<1x32xf32> to vector<16x32xf32>
    %328 = arith.addf %326, %327 : vector<16x32xf32>
    %329 = arith.addf %310, %328 : vector<16x32xf32>
    %330 = vector.extract_strided_slice %316 {offsets = [0, 0], sizes = [1, 32], strides = [1, 1]} : vector<2x32xf32> to vector<1x32xf32>
    %331 = vector.extract_strided_slice %316 {offsets = [1, 0], sizes = [1, 32], strides = [1, 1]} : vector<2x32xf32> to vector<1x32xf32>
    %cst_111 = arith.constant dense<0.000000e+00> : vector<16xf32>
    %332 = vector.multi_reduction <add>, %329, %cst_111 [1] : vector<16x32xf32> to vector<16xf32>
    %333 = vector.shape_cast %332 : vector<16xf32> to vector<16x1xf32>
    %cst_112 = arith.constant 3.200000e+01 : f32
    %334 = vector.broadcast %cst_112 : f32 to vector<16x1xf32>
    %335 = arith.divf %333, %334 : vector<16x1xf32>
    %336 = vector.broadcast %335 : vector<16x1xf32> to vector<16x32xf32>
    %337 = arith.subf %329, %336 : vector<16x32xf32>
    %338 = arith.mulf %337, %337 : vector<16x32xf32>
    %cst_113 = arith.constant dense<0.000000e+00> : vector<16xf32>
    %339 = vector.multi_reduction <add>, %338, %cst_113 [1] : vector<16x32xf32> to vector<16xf32>
    %340 = vector.shape_cast %339 : vector<16xf32> to vector<16x1xf32>
    %cst_114 = arith.constant 3.200000e+01 : f32
    %341 = vector.broadcast %cst_114 : f32 to vector<16x1xf32>
    %342 = arith.divf %340, %341 : vector<16x1xf32>
    %343 = vector.broadcast %335 : vector<16x1xf32> to vector<16x32xf32>
    %344 = arith.subf %329, %343 : vector<16x32xf32>
    %cst_115 = arith.constant 9.99999974E-6 : f32
    %345 = vector.broadcast %cst_115 : f32 to vector<16x1xf32>
    %346 = arith.addf %342, %345 : vector<16x1xf32>
    %347 = math.rsqrt %346 : vector<16x1xf32>
    %348 = vector.broadcast %347 : vector<16x1xf32> to vector<16x32xf32>
    %349 = arith.mulf %344, %348 : vector<16x32xf32>
    %350 = vector.broadcast %330 : vector<1x32xf32> to vector<16x32xf32>
    %351 = arith.mulf %349, %350 : vector<16x32xf32>
    %352 = vector.broadcast %331 : vector<1x32xf32> to vector<16x32xf32>
    %353 = arith.addf %351, %352 : vector<16x32xf32>
    %354 = arith.addf %353, %3 : vector<16x32xf32>
    %c0_116 = arith.constant 0 : index
    %c0_117 = arith.constant 0 : index
    %355 = vector.load %arg4[%c0_116, %c0_117] : memref<8x32xf32, #tpu.memory_space<vmem>>, vector<8x32xf32>
    %c0_118 = arith.constant 0 : index
    %c0_119 = arith.constant 0 : index
    %356 = vector.load %arg5[%c0_118, %c0_119] : memref<8x32xf32, #tpu.memory_space<vmem>>, vector<8x32xf32>
    %357 = arith.addf %355, %356 : vector<8x32xf32>
    %c0_120 = arith.constant 0 : index
    %c0_121 = arith.constant 0 : index
    %c0_122 = arith.constant 0 : index
    %358 = vector.load %arg12[%c0_120, %c0_121, %c0_122] : memref<2x33x96xf32, #tpu.memory_space<vmem>>, vector<1x33x96xf32>
    %359 = vector.shape_cast %358 : vector<1x33x96xf32> to vector<33x96xf32>
    %c0_123 = arith.constant 0 : index
    %c0_124 = arith.constant 0 : index
    %c0_125 = arith.constant 0 : index
    %360 = vector.load %arg13[%c0_123, %c0_124, %c0_125] : memref<2x33x32xf32, #tpu.memory_space<vmem>>, vector<1x33x32xf32>
    %361 = vector.shape_cast %360 : vector<1x33x32xf32> to vector<33x32xf32>
    %362 = vector.extract_strided_slice %359 {offsets = [0, 0], sizes = [32, 96], strides = [1, 1]} : vector<33x96xf32> to vector<32x96xf32>
    %363 = vector.extract_strided_slice %359 {offsets = [32, 0], sizes = [1, 96], strides = [1, 1]} : vector<33x96xf32> to vector<1x96xf32>
    %364 = vector.extract_strided_slice %361 {offsets = [0, 0], sizes = [32, 32], strides = [1, 1]} : vector<33x32xf32> to vector<32x32xf32>
    %365 = vector.extract_strided_slice %361 {offsets = [32, 0], sizes = [1, 32], strides = [1, 1]} : vector<33x32xf32> to vector<1x32xf32>
    %366 = vector.extract_strided_slice %362 {offsets = [0, 0], sizes = [32, 64], strides = [1, 1]} : vector<32x96xf32> to vector<32x64xf32>
    %cst_126 = arith.constant dense<0.000000e+00> : vector<8x64xf32>
    %367 = tpu.matmul %357, %366, %cst_126 {dimension_numbers = #tpu.dot_dimension_numbers<[1], [0], [0], [1], [0, 0, 1, 1], [], []>} : vector<8x32xf32>, vector<32x64xf32>, vector<8x64xf32> -> vector<8x64xf32>
    %368 = vector.extract_strided_slice %363 {offsets = [0, 0], sizes = [1, 64], strides = [1, 1]} : vector<1x96xf32> to vector<1x64xf32>
    %369 = vector.broadcast %368 : vector<1x64xf32> to vector<8x64xf32>
    %370 = arith.addf %367, %369 : vector<8x64xf32>
    %371 = vector.extract_strided_slice %370 {offsets = [0, 0], sizes = [8, 32], strides = [1, 1]} : vector<8x64xf32> to vector<8x32xf32>
    %cst_127 = arith.constant 0.353553385 : f32
    %372 = vector.broadcast %cst_127 : f32 to vector<8x32xf32>
    %373 = arith.mulf %371, %372 : vector<8x32xf32>
    %374 = vector.extract_strided_slice %370 {offsets = [0, 32], sizes = [8, 32], strides = [1, 1]} : vector<8x64xf32> to vector<8x32xf32>
    %375 = vector.extract_strided_slice %362 {offsets = [0, 64], sizes = [32, 32], strides = [1, 1]} : vector<32x96xf32> to vector<32x32xf32>
    %cst_128 = arith.constant dense<0.000000e+00> : vector<8x32xf32>
    %376 = tpu.matmul %355, %375, %cst_128 {dimension_numbers = #tpu.dot_dimension_numbers<[1], [0], [0], [1], [0, 0, 1, 1], [], []>} : vector<8x32xf32>, vector<32x32xf32>, vector<8x32xf32> -> vector<8x32xf32>
    %377 = vector.extract_strided_slice %363 {offsets = [0, 64], sizes = [1, 32], strides = [1, 1]} : vector<1x96xf32> to vector<1x32xf32>
    %378 = vector.broadcast %377 : vector<1x32xf32> to vector<8x32xf32>
    %379 = arith.addf %376, %378 : vector<8x32xf32>
    %cst_129 = arith.constant 0.000000e+00 : f32
    %380 = vector.broadcast %cst_129 : f32 to vector<8x32xf32>
    %381 = vector.extract_strided_slice %373 {offsets = [0, 0], sizes = [8, 8], strides = [1, 1]} : vector<8x32xf32> to vector<8x8xf32>
    %382 = vector.extract_strided_slice %374 {offsets = [0, 0], sizes = [8, 8], strides = [1, 1]} : vector<8x32xf32> to vector<8x8xf32>
    %cst_130 = arith.constant dense<0.000000e+00> : vector<8x8xf32>
    %383 = tpu.matmul %381, %382, %cst_130 {dimension_numbers = #tpu.dot_dimension_numbers<[1], [1], [0], [0], [0, 0, 1, 0], [], []>} : vector<8x8xf32>, vector<8x8xf32>, vector<8x8xf32> -> vector<8x8xf32>
    %cst_131 = arith.constant dense<0xFF800000> : vector<8xf32>
    %384 = vector.multi_reduction <maximumf>, %383, %cst_131 [1] : vector<8x8xf32> to vector<8xf32>
    %385 = vector.shape_cast %384 : vector<8xf32> to vector<8x1xf32>
    %386 = vector.broadcast %385 : vector<8x1xf32> to vector<8x8xf32>
    %387 = arith.subf %383, %386 : vector<8x8xf32>
    %388 = math.exp %387 : vector<8x8xf32>
    %cst_132 = arith.constant dense<0.000000e+00> : vector<8xf32>
    %389 = vector.multi_reduction <add>, %388, %cst_132 [1] : vector<8x8xf32> to vector<8xf32>
    %390 = vector.shape_cast %389 : vector<8xf32> to vector<8x1xf32>
    %391 = tpu.reciprocal %390 {approx = true} : vector<8x1xf32> -> vector<8x1xf32>
    %392 = vector.broadcast %391 : vector<8x1xf32> to vector<8x8xf32>
    %393 = arith.mulf %388, %392 : vector<8x8xf32>
    %394 = vector.extract_strided_slice %379 {offsets = [0, 0], sizes = [8, 8], strides = [1, 1]} : vector<8x32xf32> to vector<8x8xf32>
    %cst_133 = arith.constant dense<0.000000e+00> : vector<8x8xf32>
    %395 = tpu.matmul %393, %394, %cst_133 {dimension_numbers = #tpu.dot_dimension_numbers<[1], [0], [0], [1], [0, 0, 1, 1], [], []>} : vector<8x8xf32>, vector<8x8xf32>, vector<8x8xf32> -> vector<8x8xf32>
    %396 = vector.extract_strided_slice %364 {offsets = [0, 0], sizes = [8, 32], strides = [1, 1]} : vector<32x32xf32> to vector<8x32xf32>
    %cst_134 = arith.constant dense<0.000000e+00> : vector<8x32xf32>
    %397 = tpu.matmul %395, %396, %cst_134 {dimension_numbers = #tpu.dot_dimension_numbers<[1], [0], [0], [1], [0, 0, 1, 1], [], []>} : vector<8x8xf32>, vector<8x32xf32>, vector<8x32xf32> -> vector<8x32xf32>
    %398 = arith.addf %380, %397 : vector<8x32xf32>
    %399 = vector.extract_strided_slice %373 {offsets = [0, 8], sizes = [8, 8], strides = [1, 1]} : vector<8x32xf32> to vector<8x8xf32>
    %400 = vector.extract_strided_slice %374 {offsets = [0, 8], sizes = [8, 8], strides = [1, 1]} : vector<8x32xf32> to vector<8x8xf32>
    %cst_135 = arith.constant dense<0.000000e+00> : vector<8x8xf32>
    %401 = tpu.matmul %399, %400, %cst_135 {dimension_numbers = #tpu.dot_dimension_numbers<[1], [1], [0], [0], [0, 0, 1, 0], [], []>} : vector<8x8xf32>, vector<8x8xf32>, vector<8x8xf32> -> vector<8x8xf32>
    %cst_136 = arith.constant dense<0xFF800000> : vector<8xf32>
    %402 = vector.multi_reduction <maximumf>, %401, %cst_136 [1] : vector<8x8xf32> to vector<8xf32>
    %403 = vector.shape_cast %402 : vector<8xf32> to vector<8x1xf32>
    %404 = vector.broadcast %403 : vector<8x1xf32> to vector<8x8xf32>
    %405 = arith.subf %401, %404 : vector<8x8xf32>
    %406 = math.exp %405 : vector<8x8xf32>
    %cst_137 = arith.constant dense<0.000000e+00> : vector<8xf32>
    %407 = vector.multi_reduction <add>, %406, %cst_137 [1] : vector<8x8xf32> to vector<8xf32>
    %408 = vector.shape_cast %407 : vector<8xf32> to vector<8x1xf32>
    %409 = tpu.reciprocal %408 {approx = true} : vector<8x1xf32> -> vector<8x1xf32>
    %410 = vector.broadcast %409 : vector<8x1xf32> to vector<8x8xf32>
    %411 = arith.mulf %406, %410 : vector<8x8xf32>
    %412 = vector.extract_strided_slice %379 {offsets = [0, 8], sizes = [8, 8], strides = [1, 1]} : vector<8x32xf32> to vector<8x8xf32>
    %cst_138 = arith.constant dense<0.000000e+00> : vector<8x8xf32>
    %413 = tpu.matmul %411, %412, %cst_138 {dimension_numbers = #tpu.dot_dimension_numbers<[1], [0], [0], [1], [0, 0, 1, 1], [], []>} : vector<8x8xf32>, vector<8x8xf32>, vector<8x8xf32> -> vector<8x8xf32>
    %414 = vector.extract_strided_slice %364 {offsets = [8, 0], sizes = [8, 32], strides = [1, 1]} : vector<32x32xf32> to vector<8x32xf32>
    %cst_139 = arith.constant dense<0.000000e+00> : vector<8x32xf32>
    %415 = tpu.matmul %413, %414, %cst_139 {dimension_numbers = #tpu.dot_dimension_numbers<[1], [0], [0], [1], [0, 0, 1, 1], [], []>} : vector<8x8xf32>, vector<8x32xf32>, vector<8x32xf32> -> vector<8x32xf32>
    %416 = arith.addf %398, %415 : vector<8x32xf32>
    %417 = vector.extract_strided_slice %373 {offsets = [0, 16], sizes = [8, 8], strides = [1, 1]} : vector<8x32xf32> to vector<8x8xf32>
    %418 = vector.extract_strided_slice %374 {offsets = [0, 16], sizes = [8, 8], strides = [1, 1]} : vector<8x32xf32> to vector<8x8xf32>
    %cst_140 = arith.constant dense<0.000000e+00> : vector<8x8xf32>
    %419 = tpu.matmul %417, %418, %cst_140 {dimension_numbers = #tpu.dot_dimension_numbers<[1], [1], [0], [0], [0, 0, 1, 0], [], []>} : vector<8x8xf32>, vector<8x8xf32>, vector<8x8xf32> -> vector<8x8xf32>
    %cst_141 = arith.constant dense<0xFF800000> : vector<8xf32>
    %420 = vector.multi_reduction <maximumf>, %419, %cst_141 [1] : vector<8x8xf32> to vector<8xf32>
    %421 = vector.shape_cast %420 : vector<8xf32> to vector<8x1xf32>
    %422 = vector.broadcast %421 : vector<8x1xf32> to vector<8x8xf32>
    %423 = arith.subf %419, %422 : vector<8x8xf32>
    %424 = math.exp %423 : vector<8x8xf32>
    %cst_142 = arith.constant dense<0.000000e+00> : vector<8xf32>
    %425 = vector.multi_reduction <add>, %424, %cst_142 [1] : vector<8x8xf32> to vector<8xf32>
    %426 = vector.shape_cast %425 : vector<8xf32> to vector<8x1xf32>
    %427 = tpu.reciprocal %426 {approx = true} : vector<8x1xf32> -> vector<8x1xf32>
    %428 = vector.broadcast %427 : vector<8x1xf32> to vector<8x8xf32>
    %429 = arith.mulf %424, %428 : vector<8x8xf32>
    %430 = vector.extract_strided_slice %379 {offsets = [0, 16], sizes = [8, 8], strides = [1, 1]} : vector<8x32xf32> to vector<8x8xf32>
    %cst_143 = arith.constant dense<0.000000e+00> : vector<8x8xf32>
    %431 = tpu.matmul %429, %430, %cst_143 {dimension_numbers = #tpu.dot_dimension_numbers<[1], [0], [0], [1], [0, 0, 1, 1], [], []>} : vector<8x8xf32>, vector<8x8xf32>, vector<8x8xf32> -> vector<8x8xf32>
    %432 = vector.extract_strided_slice %364 {offsets = [16, 0], sizes = [8, 32], strides = [1, 1]} : vector<32x32xf32> to vector<8x32xf32>
    %cst_144 = arith.constant dense<0.000000e+00> : vector<8x32xf32>
    %433 = tpu.matmul %431, %432, %cst_144 {dimension_numbers = #tpu.dot_dimension_numbers<[1], [0], [0], [1], [0, 0, 1, 1], [], []>} : vector<8x8xf32>, vector<8x32xf32>, vector<8x32xf32> -> vector<8x32xf32>
    %434 = arith.addf %416, %433 : vector<8x32xf32>
    %435 = vector.extract_strided_slice %373 {offsets = [0, 24], sizes = [8, 8], strides = [1, 1]} : vector<8x32xf32> to vector<8x8xf32>
    %436 = vector.extract_strided_slice %374 {offsets = [0, 24], sizes = [8, 8], strides = [1, 1]} : vector<8x32xf32> to vector<8x8xf32>
    %cst_145 = arith.constant dense<0.000000e+00> : vector<8x8xf32>
    %437 = tpu.matmul %435, %436, %cst_145 {dimension_numbers = #tpu.dot_dimension_numbers<[1], [1], [0], [0], [0, 0, 1, 0], [], []>} : vector<8x8xf32>, vector<8x8xf32>, vector<8x8xf32> -> vector<8x8xf32>
    %cst_146 = arith.constant dense<0xFF800000> : vector<8xf32>
    %438 = vector.multi_reduction <maximumf>, %437, %cst_146 [1] : vector<8x8xf32> to vector<8xf32>
    %439 = vector.shape_cast %438 : vector<8xf32> to vector<8x1xf32>
    %440 = vector.broadcast %439 : vector<8x1xf32> to vector<8x8xf32>
    %441 = arith.subf %437, %440 : vector<8x8xf32>
    %442 = math.exp %441 : vector<8x8xf32>
    %cst_147 = arith.constant dense<0.000000e+00> : vector<8xf32>
    %443 = vector.multi_reduction <add>, %442, %cst_147 [1] : vector<8x8xf32> to vector<8xf32>
    %444 = vector.shape_cast %443 : vector<8xf32> to vector<8x1xf32>
    %445 = tpu.reciprocal %444 {approx = true} : vector<8x1xf32> -> vector<8x1xf32>
    %446 = vector.broadcast %445 : vector<8x1xf32> to vector<8x8xf32>
    %447 = arith.mulf %442, %446 : vector<8x8xf32>
    %448 = vector.extract_strided_slice %379 {offsets = [0, 24], sizes = [8, 8], strides = [1, 1]} : vector<8x32xf32> to vector<8x8xf32>
    %cst_148 = arith.constant dense<0.000000e+00> : vector<8x8xf32>
    %449 = tpu.matmul %447, %448, %cst_148 {dimension_numbers = #tpu.dot_dimension_numbers<[1], [0], [0], [1], [0, 0, 1, 1], [], []>} : vector<8x8xf32>, vector<8x8xf32>, vector<8x8xf32> -> vector<8x8xf32>
    %450 = vector.extract_strided_slice %364 {offsets = [24, 0], sizes = [8, 32], strides = [1, 1]} : vector<32x32xf32> to vector<8x32xf32>
    %cst_149 = arith.constant dense<0.000000e+00> : vector<8x32xf32>
    %451 = tpu.matmul %449, %450, %cst_149 {dimension_numbers = #tpu.dot_dimension_numbers<[1], [0], [0], [1], [0, 0, 1, 1], [], []>} : vector<8x8xf32>, vector<8x32xf32>, vector<8x32xf32> -> vector<8x32xf32>
    %452 = arith.addf %434, %451 : vector<8x32xf32>
    %453 = vector.broadcast %365 : vector<1x32xf32> to vector<8x32xf32>
    %454 = arith.addf %452, %453 : vector<8x32xf32>
    %455 = arith.addf %355, %454 : vector<8x32xf32>
    %c0_150 = arith.constant 0 : index
    %c0_151 = arith.constant 0 : index
    %c0_152 = arith.constant 0 : index
    %456 = vector.load %arg14[%c0_150, %c0_151, %c0_152] : memref<2x2x32xf32, #tpu.memory_space<vmem>>, vector<1x2x32xf32>
    %457 = vector.shape_cast %456 : vector<1x2x32xf32> to vector<2x32xf32>
    %458 = vector.extract_strided_slice %457 {offsets = [0, 0], sizes = [1, 32], strides = [1, 1]} : vector<2x32xf32> to vector<1x32xf32>
    %459 = vector.extract_strided_slice %457 {offsets = [1, 0], sizes = [1, 32], strides = [1, 1]} : vector<2x32xf32> to vector<1x32xf32>
    %cst_153 = arith.constant dense<0.000000e+00> : vector<8xf32>
    %460 = vector.multi_reduction <add>, %455, %cst_153 [1] : vector<8x32xf32> to vector<8xf32>
    %461 = vector.shape_cast %460 : vector<8xf32> to vector<8x1xf32>
    %cst_154 = arith.constant 3.200000e+01 : f32
    %462 = vector.broadcast %cst_154 : f32 to vector<8x1xf32>
    %463 = arith.divf %461, %462 : vector<8x1xf32>
    %464 = vector.broadcast %463 : vector<8x1xf32> to vector<8x32xf32>
    %465 = arith.subf %455, %464 : vector<8x32xf32>
    %466 = arith.mulf %465, %465 : vector<8x32xf32>
    %cst_155 = arith.constant dense<0.000000e+00> : vector<8xf32>
    %467 = vector.multi_reduction <add>, %466, %cst_155 [1] : vector<8x32xf32> to vector<8xf32>
    %468 = vector.shape_cast %467 : vector<8xf32> to vector<8x1xf32>
    %cst_156 = arith.constant 3.200000e+01 : f32
    %469 = vector.broadcast %cst_156 : f32 to vector<8x1xf32>
    %470 = arith.divf %468, %469 : vector<8x1xf32>
    %471 = vector.broadcast %463 : vector<8x1xf32> to vector<8x32xf32>
    %472 = arith.subf %455, %471 : vector<8x32xf32>
    %cst_157 = arith.constant 9.99999974E-6 : f32
    %473 = vector.broadcast %cst_157 : f32 to vector<8x1xf32>
    %474 = arith.addf %470, %473 : vector<8x1xf32>
    %475 = math.rsqrt %474 : vector<8x1xf32>
    %476 = vector.broadcast %475 : vector<8x1xf32> to vector<8x32xf32>
    %477 = arith.mulf %472, %476 : vector<8x32xf32>
    %478 = vector.broadcast %458 : vector<1x32xf32> to vector<8x32xf32>
    %479 = arith.mulf %477, %478 : vector<8x32xf32>
    %480 = vector.broadcast %459 : vector<1x32xf32> to vector<8x32xf32>
    %481 = arith.addf %479, %480 : vector<8x32xf32>
    %482 = arith.addf %481, %356 : vector<8x32xf32>
    %c0_158 = arith.constant 0 : index
    %c0_159 = arith.constant 0 : index
    %c0_160 = arith.constant 0 : index
    %483 = vector.load %arg15[%c0_158, %c0_159, %c0_160] : memref<2x33x96xf32, #tpu.memory_space<vmem>>, vector<1x33x96xf32>
    %484 = vector.shape_cast %483 : vector<1x33x96xf32> to vector<33x96xf32>
    %c0_161 = arith.constant 0 : index
    %c0_162 = arith.constant 0 : index
    %c0_163 = arith.constant 0 : index
    %485 = vector.load %arg16[%c0_161, %c0_162, %c0_163] : memref<2x33x32xf32, #tpu.memory_space<vmem>>, vector<1x33x32xf32>
    %486 = vector.shape_cast %485 : vector<1x33x32xf32> to vector<33x32xf32>
    %487 = vector.extract_strided_slice %484 {offsets = [0, 0], sizes = [32, 96], strides = [1, 1]} : vector<33x96xf32> to vector<32x96xf32>
    %488 = vector.extract_strided_slice %484 {offsets = [32, 0], sizes = [1, 96], strides = [1, 1]} : vector<33x96xf32> to vector<1x96xf32>
    %489 = vector.extract_strided_slice %486 {offsets = [0, 0], sizes = [32, 32], strides = [1, 1]} : vector<33x32xf32> to vector<32x32xf32>
    %490 = vector.extract_strided_slice %486 {offsets = [32, 0], sizes = [1, 32], strides = [1, 1]} : vector<33x32xf32> to vector<1x32xf32>
    %491 = vector.extract_strided_slice %487 {offsets = [0, 0], sizes = [32, 32], strides = [1, 1]} : vector<32x96xf32> to vector<32x32xf32>
    %cst_164 = arith.constant dense<0.000000e+00> : vector<8x32xf32>
    %492 = tpu.matmul %482, %491, %cst_164 {dimension_numbers = #tpu.dot_dimension_numbers<[1], [0], [0], [1], [0, 0, 1, 1], [], []>} : vector<8x32xf32>, vector<32x32xf32>, vector<8x32xf32> -> vector<8x32xf32>
    %493 = vector.extract_strided_slice %488 {offsets = [0, 0], sizes = [1, 32], strides = [1, 1]} : vector<1x96xf32> to vector<1x32xf32>
    %494 = vector.broadcast %493 : vector<1x32xf32> to vector<8x32xf32>
    %495 = arith.addf %492, %494 : vector<8x32xf32>
    %cst_165 = arith.constant 0.353553385 : f32
    %496 = vector.broadcast %cst_165 : f32 to vector<8x32xf32>
    %497 = arith.mulf %495, %496 : vector<8x32xf32>
    %498 = vector.extract_strided_slice %487 {offsets = [0, 32], sizes = [32, 32], strides = [1, 1]} : vector<32x96xf32> to vector<32x32xf32>
    %cst_166 = arith.constant dense<0.000000e+00> : vector<16x32xf32>
    %499 = tpu.matmul %354, %498, %cst_166 {dimension_numbers = #tpu.dot_dimension_numbers<[1], [0], [0], [1], [0, 0, 1, 1], [], []>} : vector<16x32xf32>, vector<32x32xf32>, vector<16x32xf32> -> vector<16x32xf32>
    %500 = vector.extract_strided_slice %488 {offsets = [0, 32], sizes = [1, 32], strides = [1, 1]} : vector<1x96xf32> to vector<1x32xf32>
    %501 = vector.broadcast %500 : vector<1x32xf32> to vector<16x32xf32>
    %502 = arith.addf %499, %501 : vector<16x32xf32>
    %503 = vector.extract_strided_slice %487 {offsets = [0, 64], sizes = [32, 32], strides = [1, 1]} : vector<32x96xf32> to vector<32x32xf32>
    %cst_167 = arith.constant dense<0.000000e+00> : vector<16x32xf32>
    %504 = tpu.matmul %353, %503, %cst_167 {dimension_numbers = #tpu.dot_dimension_numbers<[1], [0], [0], [1], [0, 0, 1, 1], [], []>} : vector<16x32xf32>, vector<32x32xf32>, vector<16x32xf32> -> vector<16x32xf32>
    %505 = vector.extract_strided_slice %488 {offsets = [0, 64], sizes = [1, 32], strides = [1, 1]} : vector<1x96xf32> to vector<1x32xf32>
    %506 = vector.broadcast %505 : vector<1x32xf32> to vector<16x32xf32>
    %507 = arith.addf %504, %506 : vector<16x32xf32>
    %508 = vector.shape_cast %5 : vector<1x16xf32> to vector<1x16xf32>
    %509 = vector.broadcast %508 : vector<1x16xf32> to vector<8x16xf32>
    %cst_168 = arith.constant 0.000000e+00 : f32
    %510 = vector.broadcast %cst_168 : f32 to vector<8x32xf32>
    %511 = vector.extract_strided_slice %497 {offsets = [0, 0], sizes = [8, 8], strides = [1, 1]} : vector<8x32xf32> to vector<8x8xf32>
    %512 = vector.extract_strided_slice %502 {offsets = [0, 0], sizes = [16, 8], strides = [1, 1]} : vector<16x32xf32> to vector<16x8xf32>
    %cst_169 = arith.constant dense<0.000000e+00> : vector<8x16xf32>
    %513 = tpu.matmul %511, %512, %cst_169 {dimension_numbers = #tpu.dot_dimension_numbers<[1], [1], [0], [0], [0, 0, 1, 0], [], []>} : vector<8x8xf32>, vector<16x8xf32>, vector<8x16xf32> -> vector<8x16xf32>
    %514 = arith.addf %513, %509 : vector<8x16xf32>
    %cst_170 = arith.constant dense<0xFF800000> : vector<8xf32>
    %515 = vector.multi_reduction <maximumf>, %514, %cst_170 [1] : vector<8x16xf32> to vector<8xf32>
    %516 = vector.shape_cast %515 : vector<8xf32> to vector<8x1xf32>
    %517 = vector.broadcast %516 : vector<8x1xf32> to vector<8x16xf32>
    %518 = arith.subf %514, %517 : vector<8x16xf32>
    %519 = math.exp %518 : vector<8x16xf32>
    %cst_171 = arith.constant dense<0.000000e+00> : vector<8xf32>
    %520 = vector.multi_reduction <add>, %519, %cst_171 [1] : vector<8x16xf32> to vector<8xf32>
    %521 = vector.shape_cast %520 : vector<8xf32> to vector<8x1xf32>
    %522 = tpu.reciprocal %521 {approx = true} : vector<8x1xf32> -> vector<8x1xf32>
    %523 = vector.broadcast %522 : vector<8x1xf32> to vector<8x16xf32>
    %524 = arith.mulf %519, %523 : vector<8x16xf32>
    %525 = vector.extract_strided_slice %507 {offsets = [0, 0], sizes = [16, 8], strides = [1, 1]} : vector<16x32xf32> to vector<16x8xf32>
    %cst_172 = arith.constant dense<0.000000e+00> : vector<8x8xf32>
    %526 = tpu.matmul %524, %525, %cst_172 {dimension_numbers = #tpu.dot_dimension_numbers<[1], [0], [0], [1], [0, 0, 1, 1], [], []>} : vector<8x16xf32>, vector<16x8xf32>, vector<8x8xf32> -> vector<8x8xf32>
    %527 = vector.extract_strided_slice %489 {offsets = [0, 0], sizes = [8, 32], strides = [1, 1]} : vector<32x32xf32> to vector<8x32xf32>
    %cst_173 = arith.constant dense<0.000000e+00> : vector<8x32xf32>
    %528 = tpu.matmul %526, %527, %cst_173 {dimension_numbers = #tpu.dot_dimension_numbers<[1], [0], [0], [1], [0, 0, 1, 1], [], []>} : vector<8x8xf32>, vector<8x32xf32>, vector<8x32xf32> -> vector<8x32xf32>
    %529 = arith.addf %510, %528 : vector<8x32xf32>
    %530 = vector.extract_strided_slice %497 {offsets = [0, 8], sizes = [8, 8], strides = [1, 1]} : vector<8x32xf32> to vector<8x8xf32>
    %531 = vector.extract_strided_slice %502 {offsets = [0, 8], sizes = [16, 8], strides = [1, 1]} : vector<16x32xf32> to vector<16x8xf32>
    %cst_174 = arith.constant dense<0.000000e+00> : vector<8x16xf32>
    %532 = tpu.matmul %530, %531, %cst_174 {dimension_numbers = #tpu.dot_dimension_numbers<[1], [1], [0], [0], [0, 0, 1, 0], [], []>} : vector<8x8xf32>, vector<16x8xf32>, vector<8x16xf32> -> vector<8x16xf32>
    %533 = arith.addf %532, %509 : vector<8x16xf32>
    %cst_175 = arith.constant dense<0xFF800000> : vector<8xf32>
    %534 = vector.multi_reduction <maximumf>, %533, %cst_175 [1] : vector<8x16xf32> to vector<8xf32>
    %535 = vector.shape_cast %534 : vector<8xf32> to vector<8x1xf32>
    %536 = vector.broadcast %535 : vector<8x1xf32> to vector<8x16xf32>
    %537 = arith.subf %533, %536 : vector<8x16xf32>
    %538 = math.exp %537 : vector<8x16xf32>
    %cst_176 = arith.constant dense<0.000000e+00> : vector<8xf32>
    %539 = vector.multi_reduction <add>, %538, %cst_176 [1] : vector<8x16xf32> to vector<8xf32>
    %540 = vector.shape_cast %539 : vector<8xf32> to vector<8x1xf32>
    %541 = tpu.reciprocal %540 {approx = true} : vector<8x1xf32> -> vector<8x1xf32>
    %542 = vector.broadcast %541 : vector<8x1xf32> to vector<8x16xf32>
    %543 = arith.mulf %538, %542 : vector<8x16xf32>
    %544 = vector.extract_strided_slice %507 {offsets = [0, 8], sizes = [16, 8], strides = [1, 1]} : vector<16x32xf32> to vector<16x8xf32>
    %cst_177 = arith.constant dense<0.000000e+00> : vector<8x8xf32>
    %545 = tpu.matmul %543, %544, %cst_177 {dimension_numbers = #tpu.dot_dimension_numbers<[1], [0], [0], [1], [0, 0, 1, 1], [], []>} : vector<8x16xf32>, vector<16x8xf32>, vector<8x8xf32> -> vector<8x8xf32>
    %546 = vector.extract_strided_slice %489 {offsets = [8, 0], sizes = [8, 32], strides = [1, 1]} : vector<32x32xf32> to vector<8x32xf32>
    %cst_178 = arith.constant dense<0.000000e+00> : vector<8x32xf32>
    %547 = tpu.matmul %545, %546, %cst_178 {dimension_numbers = #tpu.dot_dimension_numbers<[1], [0], [0], [1], [0, 0, 1, 1], [], []>} : vector<8x8xf32>, vector<8x32xf32>, vector<8x32xf32> -> vector<8x32xf32>
    %548 = arith.addf %529, %547 : vector<8x32xf32>
    %549 = vector.extract_strided_slice %497 {offsets = [0, 16], sizes = [8, 8], strides = [1, 1]} : vector<8x32xf32> to vector<8x8xf32>
    %550 = vector.extract_strided_slice %502 {offsets = [0, 16], sizes = [16, 8], strides = [1, 1]} : vector<16x32xf32> to vector<16x8xf32>
    %cst_179 = arith.constant dense<0.000000e+00> : vector<8x16xf32>
    %551 = tpu.matmul %549, %550, %cst_179 {dimension_numbers = #tpu.dot_dimension_numbers<[1], [1], [0], [0], [0, 0, 1, 0], [], []>} : vector<8x8xf32>, vector<16x8xf32>, vector<8x16xf32> -> vector<8x16xf32>
    %552 = arith.addf %551, %509 : vector<8x16xf32>
    %cst_180 = arith.constant dense<0xFF800000> : vector<8xf32>
    %553 = vector.multi_reduction <maximumf>, %552, %cst_180 [1] : vector<8x16xf32> to vector<8xf32>
    %554 = vector.shape_cast %553 : vector<8xf32> to vector<8x1xf32>
    %555 = vector.broadcast %554 : vector<8x1xf32> to vector<8x16xf32>
    %556 = arith.subf %552, %555 : vector<8x16xf32>
    %557 = math.exp %556 : vector<8x16xf32>
    %cst_181 = arith.constant dense<0.000000e+00> : vector<8xf32>
    %558 = vector.multi_reduction <add>, %557, %cst_181 [1] : vector<8x16xf32> to vector<8xf32>
    %559 = vector.shape_cast %558 : vector<8xf32> to vector<8x1xf32>
    %560 = tpu.reciprocal %559 {approx = true} : vector<8x1xf32> -> vector<8x1xf32>
    %561 = vector.broadcast %560 : vector<8x1xf32> to vector<8x16xf32>
    %562 = arith.mulf %557, %561 : vector<8x16xf32>
    %563 = vector.extract_strided_slice %507 {offsets = [0, 16], sizes = [16, 8], strides = [1, 1]} : vector<16x32xf32> to vector<16x8xf32>
    %cst_182 = arith.constant dense<0.000000e+00> : vector<8x8xf32>
    %564 = tpu.matmul %562, %563, %cst_182 {dimension_numbers = #tpu.dot_dimension_numbers<[1], [0], [0], [1], [0, 0, 1, 1], [], []>} : vector<8x16xf32>, vector<16x8xf32>, vector<8x8xf32> -> vector<8x8xf32>
    %565 = vector.extract_strided_slice %489 {offsets = [16, 0], sizes = [8, 32], strides = [1, 1]} : vector<32x32xf32> to vector<8x32xf32>
    %cst_183 = arith.constant dense<0.000000e+00> : vector<8x32xf32>
    %566 = tpu.matmul %564, %565, %cst_183 {dimension_numbers = #tpu.dot_dimension_numbers<[1], [0], [0], [1], [0, 0, 1, 1], [], []>} : vector<8x8xf32>, vector<8x32xf32>, vector<8x32xf32> -> vector<8x32xf32>
    %567 = arith.addf %548, %566 : vector<8x32xf32>
    %568 = vector.extract_strided_slice %497 {offsets = [0, 24], sizes = [8, 8], strides = [1, 1]} : vector<8x32xf32> to vector<8x8xf32>
    %569 = vector.extract_strided_slice %502 {offsets = [0, 24], sizes = [16, 8], strides = [1, 1]} : vector<16x32xf32> to vector<16x8xf32>
    %cst_184 = arith.constant dense<0.000000e+00> : vector<8x16xf32>
    %570 = tpu.matmul %568, %569, %cst_184 {dimension_numbers = #tpu.dot_dimension_numbers<[1], [1], [0], [0], [0, 0, 1, 0], [], []>} : vector<8x8xf32>, vector<16x8xf32>, vector<8x16xf32> -> vector<8x16xf32>
    %571 = arith.addf %570, %509 : vector<8x16xf32>
    %cst_185 = arith.constant dense<0xFF800000> : vector<8xf32>
    %572 = vector.multi_reduction <maximumf>, %571, %cst_185 [1] : vector<8x16xf32> to vector<8xf32>
    %573 = vector.shape_cast %572 : vector<8xf32> to vector<8x1xf32>
    %574 = vector.broadcast %573 : vector<8x1xf32> to vector<8x16xf32>
    %575 = arith.subf %571, %574 : vector<8x16xf32>
    %576 = math.exp %575 : vector<8x16xf32>
    %cst_186 = arith.constant dense<0.000000e+00> : vector<8xf32>
    %577 = vector.multi_reduction <add>, %576, %cst_186 [1] : vector<8x16xf32> to vector<8xf32>
    %578 = vector.shape_cast %577 : vector<8xf32> to vector<8x1xf32>
    %579 = tpu.reciprocal %578 {approx = true} : vector<8x1xf32> -> vector<8x1xf32>
    %580 = vector.broadcast %579 : vector<8x1xf32> to vector<8x16xf32>
    %581 = arith.mulf %576, %580 : vector<8x16xf32>
    %582 = vector.extract_strided_slice %507 {offsets = [0, 24], sizes = [16, 8], strides = [1, 1]} : vector<16x32xf32> to vector<16x8xf32>
    %cst_187 = arith.constant dense<0.000000e+00> : vector<8x8xf32>
    %583 = tpu.matmul %581, %582, %cst_187 {dimension_numbers = #tpu.dot_dimension_numbers<[1], [0], [0], [1], [0, 0, 1, 1], [], []>} : vector<8x16xf32>, vector<16x8xf32>, vector<8x8xf32> -> vector<8x8xf32>
    %584 = vector.extract_strided_slice %489 {offsets = [24, 0], sizes = [8, 32], strides = [1, 1]} : vector<32x32xf32> to vector<8x32xf32>
    %cst_188 = arith.constant dense<0.000000e+00> : vector<8x32xf32>
    %585 = tpu.matmul %583, %584, %cst_188 {dimension_numbers = #tpu.dot_dimension_numbers<[1], [0], [0], [1], [0, 0, 1, 1], [], []>} : vector<8x8xf32>, vector<8x32xf32>, vector<8x32xf32> -> vector<8x32xf32>
    %586 = arith.addf %567, %585 : vector<8x32xf32>
    %587 = vector.broadcast %490 : vector<1x32xf32> to vector<8x32xf32>
    %588 = arith.addf %586, %587 : vector<8x32xf32>
    %589 = arith.addf %481, %588 : vector<8x32xf32>
    %c0_189 = arith.constant 0 : index
    %c0_190 = arith.constant 0 : index
    %c0_191 = arith.constant 0 : index
    %590 = vector.load %arg17[%c0_189, %c0_190, %c0_191] : memref<2x2x32xf32, #tpu.memory_space<vmem>>, vector<1x2x32xf32>
    %591 = vector.shape_cast %590 : vector<1x2x32xf32> to vector<2x32xf32>
    %592 = vector.extract_strided_slice %591 {offsets = [0, 0], sizes = [1, 32], strides = [1, 1]} : vector<2x32xf32> to vector<1x32xf32>
    %593 = vector.extract_strided_slice %591 {offsets = [1, 0], sizes = [1, 32], strides = [1, 1]} : vector<2x32xf32> to vector<1x32xf32>
    %cst_192 = arith.constant dense<0.000000e+00> : vector<8xf32>
    %594 = vector.multi_reduction <add>, %589, %cst_192 [1] : vector<8x32xf32> to vector<8xf32>
    %595 = vector.shape_cast %594 : vector<8xf32> to vector<8x1xf32>
    %cst_193 = arith.constant 3.200000e+01 : f32
    %596 = vector.broadcast %cst_193 : f32 to vector<8x1xf32>
    %597 = arith.divf %595, %596 : vector<8x1xf32>
    %598 = vector.broadcast %597 : vector<8x1xf32> to vector<8x32xf32>
    %599 = arith.subf %589, %598 : vector<8x32xf32>
    %600 = arith.mulf %599, %599 : vector<8x32xf32>
    %cst_194 = arith.constant dense<0.000000e+00> : vector<8xf32>
    %601 = vector.multi_reduction <add>, %600, %cst_194 [1] : vector<8x32xf32> to vector<8xf32>
    %602 = vector.shape_cast %601 : vector<8xf32> to vector<8x1xf32>
    %cst_195 = arith.constant 3.200000e+01 : f32
    %603 = vector.broadcast %cst_195 : f32 to vector<8x1xf32>
    %604 = arith.divf %602, %603 : vector<8x1xf32>
    %605 = vector.broadcast %597 : vector<8x1xf32> to vector<8x32xf32>
    %606 = arith.subf %589, %605 : vector<8x32xf32>
    %cst_196 = arith.constant 9.99999974E-6 : f32
    %607 = vector.broadcast %cst_196 : f32 to vector<8x1xf32>
    %608 = arith.addf %604, %607 : vector<8x1xf32>
    %609 = math.rsqrt %608 : vector<8x1xf32>
    %610 = vector.broadcast %609 : vector<8x1xf32> to vector<8x32xf32>
    %611 = arith.mulf %606, %610 : vector<8x32xf32>
    %612 = vector.broadcast %592 : vector<1x32xf32> to vector<8x32xf32>
    %613 = arith.mulf %611, %612 : vector<8x32xf32>
    %614 = vector.broadcast %593 : vector<1x32xf32> to vector<8x32xf32>
    %615 = arith.addf %613, %614 : vector<8x32xf32>
    %c0_197 = arith.constant 0 : index
    %c0_198 = arith.constant 0 : index
    %c0_199 = arith.constant 0 : index
    %616 = vector.load %arg18[%c0_197, %c0_198, %c0_199] : memref<2x33x64xf32, #tpu.memory_space<vmem>>, vector<1x33x64xf32>
    %617 = vector.shape_cast %616 : vector<1x33x64xf32> to vector<33x64xf32>
    %c0_200 = arith.constant 0 : index
    %c0_201 = arith.constant 0 : index
    %c0_202 = arith.constant 0 : index
    %618 = vector.load %arg19[%c0_200, %c0_201, %c0_202] : memref<2x65x32xf32, #tpu.memory_space<vmem>>, vector<1x65x32xf32>
    %619 = vector.shape_cast %618 : vector<1x65x32xf32> to vector<65x32xf32>
    %c0_203 = arith.constant 0 : index
    %c0_204 = arith.constant 0 : index
    %c0_205 = arith.constant 0 : index
    %620 = vector.load %arg20[%c0_203, %c0_204, %c0_205] : memref<2x2x32xf32, #tpu.memory_space<vmem>>, vector<1x2x32xf32>
    %621 = vector.shape_cast %620 : vector<1x2x32xf32> to vector<2x32xf32>
    %622 = vector.extract_strided_slice %617 {offsets = [0, 0], sizes = [32, 64], strides = [1, 1]} : vector<33x64xf32> to vector<32x64xf32>
    %623 = vector.extract_strided_slice %617 {offsets = [32, 0], sizes = [1, 64], strides = [1, 1]} : vector<33x64xf32> to vector<1x64xf32>
    %624 = vector.extract_strided_slice %619 {offsets = [0, 0], sizes = [64, 32], strides = [1, 1]} : vector<65x32xf32> to vector<64x32xf32>
    %625 = vector.extract_strided_slice %619 {offsets = [64, 0], sizes = [1, 32], strides = [1, 1]} : vector<65x32xf32> to vector<1x32xf32>
    %cst_206 = arith.constant dense<0.000000e+00> : vector<8x64xf32>
    %626 = tpu.matmul %615, %622, %cst_206 {dimension_numbers = #tpu.dot_dimension_numbers<[1], [0], [0], [1], [0, 0, 1, 1], [], []>} : vector<8x32xf32>, vector<32x64xf32>, vector<8x64xf32> -> vector<8x64xf32>
    %627 = vector.broadcast %623 : vector<1x64xf32> to vector<8x64xf32>
    %628 = arith.addf %626, %627 : vector<8x64xf32>
    %cst_207 = arith.constant 0.000000e+00 : f32
    %629 = vector.broadcast %cst_207 : f32 to vector<8x64xf32>
    %630 = arith.maximumf %628, %629 : vector<8x64xf32>
    %cst_208 = arith.constant dense<0.000000e+00> : vector<8x32xf32>
    %631 = tpu.matmul %630, %624, %cst_208 {dimension_numbers = #tpu.dot_dimension_numbers<[1], [0], [0], [1], [0, 0, 1, 1], [], []>} : vector<8x64xf32>, vector<64x32xf32>, vector<8x32xf32> -> vector<8x32xf32>
    %632 = vector.broadcast %625 : vector<1x32xf32> to vector<8x32xf32>
    %633 = arith.addf %631, %632 : vector<8x32xf32>
    %634 = arith.addf %615, %633 : vector<8x32xf32>
    %635 = vector.extract_strided_slice %621 {offsets = [0, 0], sizes = [1, 32], strides = [1, 1]} : vector<2x32xf32> to vector<1x32xf32>
    %636 = vector.extract_strided_slice %621 {offsets = [1, 0], sizes = [1, 32], strides = [1, 1]} : vector<2x32xf32> to vector<1x32xf32>
    %cst_209 = arith.constant dense<0.000000e+00> : vector<8xf32>
    %637 = vector.multi_reduction <add>, %634, %cst_209 [1] : vector<8x32xf32> to vector<8xf32>
    %638 = vector.shape_cast %637 : vector<8xf32> to vector<8x1xf32>
    %cst_210 = arith.constant 3.200000e+01 : f32
    %639 = vector.broadcast %cst_210 : f32 to vector<8x1xf32>
    %640 = arith.divf %638, %639 : vector<8x1xf32>
    %641 = vector.broadcast %640 : vector<8x1xf32> to vector<8x32xf32>
    %642 = arith.subf %634, %641 : vector<8x32xf32>
    %643 = arith.mulf %642, %642 : vector<8x32xf32>
    %cst_211 = arith.constant dense<0.000000e+00> : vector<8xf32>
    %644 = vector.multi_reduction <add>, %643, %cst_211 [1] : vector<8x32xf32> to vector<8xf32>
    %645 = vector.shape_cast %644 : vector<8xf32> to vector<8x1xf32>
    %cst_212 = arith.constant 3.200000e+01 : f32
    %646 = vector.broadcast %cst_212 : f32 to vector<8x1xf32>
    %647 = arith.divf %645, %646 : vector<8x1xf32>
    %648 = vector.broadcast %640 : vector<8x1xf32> to vector<8x32xf32>
    %649 = arith.subf %634, %648 : vector<8x32xf32>
    %cst_213 = arith.constant 9.99999974E-6 : f32
    %650 = vector.broadcast %cst_213 : f32 to vector<8x1xf32>
    %651 = arith.addf %647, %650 : vector<8x1xf32>
    %652 = math.rsqrt %651 : vector<8x1xf32>
    %653 = vector.broadcast %652 : vector<8x1xf32> to vector<8x32xf32>
    %654 = arith.mulf %649, %653 : vector<8x32xf32>
    %655 = vector.broadcast %635 : vector<1x32xf32> to vector<8x32xf32>
    %656 = arith.mulf %654, %655 : vector<8x32xf32>
    %657 = vector.broadcast %636 : vector<1x32xf32> to vector<8x32xf32>
    %658 = arith.addf %656, %657 : vector<8x32xf32>
    %c0_214 = arith.constant 0 : index
    %c0_215 = arith.constant 0 : index
    %c0_216 = arith.constant 0 : index
    %c0_217 = arith.constant 0 : index
    %659 = vector.load %arg21[%c0_214, %c0_215, %c0_216, %c0_217] : memref<2x1x8x32xf32, #tpu.memory_space<vmem>>, vector<1x1x8x32xf32>
    %660 = vector.shape_cast %659 : vector<1x1x8x32xf32> to vector<8x32xf32>
    %661 = vector.shape_cast %658 : vector<8x32xf32> to vector<1x1x8x32xf32>
    tpu.vector_store %arg21[%c0_214, %c0_215, %c0_216, %c0_217], %661 {strides = array<i32>} : memref<2x1x8x32xf32, #tpu.memory_space<vmem>>, vector<1x1x8x32xf32>,
    %662 = arith.addf %658, %356 : vector<8x32xf32>
    %c1_218 = arith.constant 1 : index
    %c0_219 = arith.constant 0 : index
    %c0_220 = arith.constant 0 : index
    %663 = vector.load %arg12[%c1_218, %c0_219, %c0_220] : memref<2x33x96xf32, #tpu.memory_space<vmem>>, vector<1x33x96xf32>
    %664 = vector.shape_cast %663 : vector<1x33x96xf32> to vector<33x96xf32>
    %c1_221 = arith.constant 1 : index
    %c0_222 = arith.constant 0 : index
    %c0_223 = arith.constant 0 : index
    %665 = vector.load %arg13[%c1_221, %c0_222, %c0_223] : memref<2x33x32xf32, #tpu.memory_space<vmem>>, vector<1x33x32xf32>
    %666 = vector.shape_cast %665 : vector<1x33x32xf32> to vector<33x32xf32>
    %667 = vector.extract_strided_slice %664 {offsets = [0, 0], sizes = [32, 96], strides = [1, 1]} : vector<33x96xf32> to vector<32x96xf32>
    %668 = vector.extract_strided_slice %664 {offsets = [32, 0], sizes = [1, 96], strides = [1, 1]} : vector<33x96xf32> to vector<1x96xf32>
    %669 = vector.extract_strided_slice %666 {offsets = [0, 0], sizes = [32, 32], strides = [1, 1]} : vector<33x32xf32> to vector<32x32xf32>
    %670 = vector.extract_strided_slice %666 {offsets = [32, 0], sizes = [1, 32], strides = [1, 1]} : vector<33x32xf32> to vector<1x32xf32>
    %671 = vector.extract_strided_slice %667 {offsets = [0, 0], sizes = [32, 64], strides = [1, 1]} : vector<32x96xf32> to vector<32x64xf32>
    %cst_224 = arith.constant dense<0.000000e+00> : vector<8x64xf32>
    %672 = tpu.matmul %662, %671, %cst_224 {dimension_numbers = #tpu.dot_dimension_numbers<[1], [0], [0], [1], [0, 0, 1, 1], [], []>} : vector<8x32xf32>, vector<32x64xf32>, vector<8x64xf32> -> vector<8x64xf32>
    %673 = vector.extract_strided_slice %668 {offsets = [0, 0], sizes = [1, 64], strides = [1, 1]} : vector<1x96xf32> to vector<1x64xf32>
    %674 = vector.broadcast %673 : vector<1x64xf32> to vector<8x64xf32>
    %675 = arith.addf %672, %674 : vector<8x64xf32>
    %676 = vector.extract_strided_slice %675 {offsets = [0, 0], sizes = [8, 32], strides = [1, 1]} : vector<8x64xf32> to vector<8x32xf32>
    %cst_225 = arith.constant 0.353553385 : f32
    %677 = vector.broadcast %cst_225 : f32 to vector<8x32xf32>
    %678 = arith.mulf %676, %677 : vector<8x32xf32>
    %679 = vector.extract_strided_slice %675 {offsets = [0, 32], sizes = [8, 32], strides = [1, 1]} : vector<8x64xf32> to vector<8x32xf32>
    %680 = vector.extract_strided_slice %667 {offsets = [0, 64], sizes = [32, 32], strides = [1, 1]} : vector<32x96xf32> to vector<32x32xf32>
    %cst_226 = arith.constant dense<0.000000e+00> : vector<8x32xf32>
    %681 = tpu.matmul %658, %680, %cst_226 {dimension_numbers = #tpu.dot_dimension_numbers<[1], [0], [0], [1], [0, 0, 1, 1], [], []>} : vector<8x32xf32>, vector<32x32xf32>, vector<8x32xf32> -> vector<8x32xf32>
    %682 = vector.extract_strided_slice %668 {offsets = [0, 64], sizes = [1, 32], strides = [1, 1]} : vector<1x96xf32> to vector<1x32xf32>
    %683 = vector.broadcast %682 : vector<1x32xf32> to vector<8x32xf32>
    %684 = arith.addf %681, %683 : vector<8x32xf32>
    %cst_227 = arith.constant 0.000000e+00 : f32
    %685 = vector.broadcast %cst_227 : f32 to vector<8x32xf32>
    %686 = vector.extract_strided_slice %678 {offsets = [0, 0], sizes = [8, 8], strides = [1, 1]} : vector<8x32xf32> to vector<8x8xf32>
    %687 = vector.extract_strided_slice %679 {offsets = [0, 0], sizes = [8, 8], strides = [1, 1]} : vector<8x32xf32> to vector<8x8xf32>
    %cst_228 = arith.constant dense<0.000000e+00> : vector<8x8xf32>
    %688 = tpu.matmul %686, %687, %cst_228 {dimension_numbers = #tpu.dot_dimension_numbers<[1], [1], [0], [0], [0, 0, 1, 0], [], []>} : vector<8x8xf32>, vector<8x8xf32>, vector<8x8xf32> -> vector<8x8xf32>
    %cst_229 = arith.constant dense<0xFF800000> : vector<8xf32>
    %689 = vector.multi_reduction <maximumf>, %688, %cst_229 [1] : vector<8x8xf32> to vector<8xf32>
    %690 = vector.shape_cast %689 : vector<8xf32> to vector<8x1xf32>
    %691 = vector.broadcast %690 : vector<8x1xf32> to vector<8x8xf32>
    %692 = arith.subf %688, %691 : vector<8x8xf32>
    %693 = math.exp %692 : vector<8x8xf32>
    %cst_230 = arith.constant dense<0.000000e+00> : vector<8xf32>
    %694 = vector.multi_reduction <add>, %693, %cst_230 [1] : vector<8x8xf32> to vector<8xf32>
    %695 = vector.shape_cast %694 : vector<8xf32> to vector<8x1xf32>
    %696 = tpu.reciprocal %695 {approx = true} : vector<8x1xf32> -> vector<8x1xf32>
    %697 = vector.broadcast %696 : vector<8x1xf32> to vector<8x8xf32>
    %698 = arith.mulf %693, %697 : vector<8x8xf32>
    %699 = vector.extract_strided_slice %684 {offsets = [0, 0], sizes = [8, 8], strides = [1, 1]} : vector<8x32xf32> to vector<8x8xf32>
    %cst_231 = arith.constant dense<0.000000e+00> : vector<8x8xf32>
    %700 = tpu.matmul %698, %699, %cst_231 {dimension_numbers = #tpu.dot_dimension_numbers<[1], [0], [0], [1], [0, 0, 1, 1], [], []>} : vector<8x8xf32>, vector<8x8xf32>, vector<8x8xf32> -> vector<8x8xf32>
    %701 = vector.extract_strided_slice %669 {offsets = [0, 0], sizes = [8, 32], strides = [1, 1]} : vector<32x32xf32> to vector<8x32xf32>
    %cst_232 = arith.constant dense<0.000000e+00> : vector<8x32xf32>
    %702 = tpu.matmul %700, %701, %cst_232 {dimension_numbers = #tpu.dot_dimension_numbers<[1], [0], [0], [1], [0, 0, 1, 1], [], []>} : vector<8x8xf32>, vector<8x32xf32>, vector<8x32xf32> -> vector<8x32xf32>
    %703 = arith.addf %685, %702 : vector<8x32xf32>
    %704 = vector.extract_strided_slice %678 {offsets = [0, 8], sizes = [8, 8], strides = [1, 1]} : vector<8x32xf32> to vector<8x8xf32>
    %705 = vector.extract_strided_slice %679 {offsets = [0, 8], sizes = [8, 8], strides = [1, 1]} : vector<8x32xf32> to vector<8x8xf32>
    %cst_233 = arith.constant dense<0.000000e+00> : vector<8x8xf32>
    %706 = tpu.matmul %704, %705, %cst_233 {dimension_numbers = #tpu.dot_dimension_numbers<[1], [1], [0], [0], [0, 0, 1, 0], [], []>} : vector<8x8xf32>, vector<8x8xf32>, vector<8x8xf32> -> vector<8x8xf32>
    %cst_234 = arith.constant dense<0xFF800000> : vector<8xf32>
    %707 = vector.multi_reduction <maximumf>, %706, %cst_234 [1] : vector<8x8xf32> to vector<8xf32>
    %708 = vector.shape_cast %707 : vector<8xf32> to vector<8x1xf32>
    %709 = vector.broadcast %708 : vector<8x1xf32> to vector<8x8xf32>
    %710 = arith.subf %706, %709 : vector<8x8xf32>
    %711 = math.exp %710 : vector<8x8xf32>
    %cst_235 = arith.constant dense<0.000000e+00> : vector<8xf32>
    %712 = vector.multi_reduction <add>, %711, %cst_235 [1] : vector<8x8xf32> to vector<8xf32>
    %713 = vector.shape_cast %712 : vector<8xf32> to vector<8x1xf32>
    %714 = tpu.reciprocal %713 {approx = true} : vector<8x1xf32> -> vector<8x1xf32>
    %715 = vector.broadcast %714 : vector<8x1xf32> to vector<8x8xf32>
    %716 = arith.mulf %711, %715 : vector<8x8xf32>
    %717 = vector.extract_strided_slice %684 {offsets = [0, 8], sizes = [8, 8], strides = [1, 1]} : vector<8x32xf32> to vector<8x8xf32>
    %cst_236 = arith.constant dense<0.000000e+00> : vector<8x8xf32>
    %718 = tpu.matmul %716, %717, %cst_236 {dimension_numbers = #tpu.dot_dimension_numbers<[1], [0], [0], [1], [0, 0, 1, 1], [], []>} : vector<8x8xf32>, vector<8x8xf32>, vector<8x8xf32> -> vector<8x8xf32>
    %719 = vector.extract_strided_slice %669 {offsets = [8, 0], sizes = [8, 32], strides = [1, 1]} : vector<32x32xf32> to vector<8x32xf32>
    %cst_237 = arith.constant dense<0.000000e+00> : vector<8x32xf32>
    %720 = tpu.matmul %718, %719, %cst_237 {dimension_numbers = #tpu.dot_dimension_numbers<[1], [0], [0], [1], [0, 0, 1, 1], [], []>} : vector<8x8xf32>, vector<8x32xf32>, vector<8x32xf32> -> vector<8x32xf32>
    %721 = arith.addf %703, %720 : vector<8x32xf32>
    %722 = vector.extract_strided_slice %678 {offsets = [0, 16], sizes = [8, 8], strides = [1, 1]} : vector<8x32xf32> to vector<8x8xf32>
    %723 = vector.extract_strided_slice %679 {offsets = [0, 16], sizes = [8, 8], strides = [1, 1]} : vector<8x32xf32> to vector<8x8xf32>
    %cst_238 = arith.constant dense<0.000000e+00> : vector<8x8xf32>
    %724 = tpu.matmul %722, %723, %cst_238 {dimension_numbers = #tpu.dot_dimension_numbers<[1], [1], [0], [0], [0, 0, 1, 0], [], []>} : vector<8x8xf32>, vector<8x8xf32>, vector<8x8xf32> -> vector<8x8xf32>
    %cst_239 = arith.constant dense<0xFF800000> : vector<8xf32>
    %725 = vector.multi_reduction <maximumf>, %724, %cst_239 [1] : vector<8x8xf32> to vector<8xf32>
    %726 = vector.shape_cast %725 : vector<8xf32> to vector<8x1xf32>
    %727 = vector.broadcast %726 : vector<8x1xf32> to vector<8x8xf32>
    %728 = arith.subf %724, %727 : vector<8x8xf32>
    %729 = math.exp %728 : vector<8x8xf32>
    %cst_240 = arith.constant dense<0.000000e+00> : vector<8xf32>
    %730 = vector.multi_reduction <add>, %729, %cst_240 [1] : vector<8x8xf32> to vector<8xf32>
    %731 = vector.shape_cast %730 : vector<8xf32> to vector<8x1xf32>
    %732 = tpu.reciprocal %731 {approx = true} : vector<8x1xf32> -> vector<8x1xf32>
    %733 = vector.broadcast %732 : vector<8x1xf32> to vector<8x8xf32>
    %734 = arith.mulf %729, %733 : vector<8x8xf32>
    %735 = vector.extract_strided_slice %684 {offsets = [0, 16], sizes = [8, 8], strides = [1, 1]} : vector<8x32xf32> to vector<8x8xf32>
    %cst_241 = arith.constant dense<0.000000e+00> : vector<8x8xf32>
    %736 = tpu.matmul %734, %735, %cst_241 {dimension_numbers = #tpu.dot_dimension_numbers<[1], [0], [0], [1], [0, 0, 1, 1], [], []>} : vector<8x8xf32>, vector<8x8xf32>, vector<8x8xf32> -> vector<8x8xf32>
    %737 = vector.extract_strided_slice %669 {offsets = [16, 0], sizes = [8, 32], strides = [1, 1]} : vector<32x32xf32> to vector<8x32xf32>
    %cst_242 = arith.constant dense<0.000000e+00> : vector<8x32xf32>
    %738 = tpu.matmul %736, %737, %cst_242 {dimension_numbers = #tpu.dot_dimension_numbers<[1], [0], [0], [1], [0, 0, 1, 1], [], []>} : vector<8x8xf32>, vector<8x32xf32>, vector<8x32xf32> -> vector<8x32xf32>
    %739 = arith.addf %721, %738 : vector<8x32xf32>
    %740 = vector.extract_strided_slice %678 {offsets = [0, 24], sizes = [8, 8], strides = [1, 1]} : vector<8x32xf32> to vector<8x8xf32>
    %741 = vector.extract_strided_slice %679 {offsets = [0, 24], sizes = [8, 8], strides = [1, 1]} : vector<8x32xf32> to vector<8x8xf32>
    %cst_243 = arith.constant dense<0.000000e+00> : vector<8x8xf32>
    %742 = tpu.matmul %740, %741, %cst_243 {dimension_numbers = #tpu.dot_dimension_numbers<[1], [1], [0], [0], [0, 0, 1, 0], [], []>} : vector<8x8xf32>, vector<8x8xf32>, vector<8x8xf32> -> vector<8x8xf32>
    %cst_244 = arith.constant dense<0xFF800000> : vector<8xf32>
    %743 = vector.multi_reduction <maximumf>, %742, %cst_244 [1] : vector<8x8xf32> to vector<8xf32>
    %744 = vector.shape_cast %743 : vector<8xf32> to vector<8x1xf32>
    %745 = vector.broadcast %744 : vector<8x1xf32> to vector<8x8xf32>
    %746 = arith.subf %742, %745 : vector<8x8xf32>
    %747 = math.exp %746 : vector<8x8xf32>
    %cst_245 = arith.constant dense<0.000000e+00> : vector<8xf32>
    %748 = vector.multi_reduction <add>, %747, %cst_245 [1] : vector<8x8xf32> to vector<8xf32>
    %749 = vector.shape_cast %748 : vector<8xf32> to vector<8x1xf32>
    %750 = tpu.reciprocal %749 {approx = true} : vector<8x1xf32> -> vector<8x1xf32>
    %751 = vector.broadcast %750 : vector<8x1xf32> to vector<8x8xf32>
    %752 = arith.mulf %747, %751 : vector<8x8xf32>
    %753 = vector.extract_strided_slice %684 {offsets = [0, 24], sizes = [8, 8], strides = [1, 1]} : vector<8x32xf32> to vector<8x8xf32>
    %cst_246 = arith.constant dense<0.000000e+00> : vector<8x8xf32>
    %754 = tpu.matmul %752, %753, %cst_246 {dimension_numbers = #tpu.dot_dimension_numbers<[1], [0], [0], [1], [0, 0, 1, 1], [], []>} : vector<8x8xf32>, vector<8x8xf32>, vector<8x8xf32> -> vector<8x8xf32>
    %755 = vector.extract_strided_slice %669 {offsets = [24, 0], sizes = [8, 32], strides = [1, 1]} : vector<32x32xf32> to vector<8x32xf32>
    %cst_247 = arith.constant dense<0.000000e+00> : vector<8x32xf32>
    %756 = tpu.matmul %754, %755, %cst_247 {dimension_numbers = #tpu.dot_dimension_numbers<[1], [0], [0], [1], [0, 0, 1, 1], [], []>} : vector<8x8xf32>, vector<8x32xf32>, vector<8x32xf32> -> vector<8x32xf32>
    %757 = arith.addf %739, %756 : vector<8x32xf32>
    %758 = vector.broadcast %670 : vector<1x32xf32> to vector<8x32xf32>
    %759 = arith.addf %757, %758 : vector<8x32xf32>
    %760 = arith.addf %658, %759 : vector<8x32xf32>
    %c1_248 = arith.constant 1 : index
    %c0_249 = arith.constant 0 : index
    %c0_250 = arith.constant 0 : index
    %761 = vector.load %arg14[%c1_248, %c0_249, %c0_250] : memref<2x2x32xf32, #tpu.memory_space<vmem>>, vector<1x2x32xf32>
    %762 = vector.shape_cast %761 : vector<1x2x32xf32> to vector<2x32xf32>
    %763 = vector.extract_strided_slice %762 {offsets = [0, 0], sizes = [1, 32], strides = [1, 1]} : vector<2x32xf32> to vector<1x32xf32>
    %764 = vector.extract_strided_slice %762 {offsets = [1, 0], sizes = [1, 32], strides = [1, 1]} : vector<2x32xf32> to vector<1x32xf32>
    %cst_251 = arith.constant dense<0.000000e+00> : vector<8xf32>
    %765 = vector.multi_reduction <add>, %760, %cst_251 [1] : vector<8x32xf32> to vector<8xf32>
    %766 = vector.shape_cast %765 : vector<8xf32> to vector<8x1xf32>
    %cst_252 = arith.constant 3.200000e+01 : f32
    %767 = vector.broadcast %cst_252 : f32 to vector<8x1xf32>
    %768 = arith.divf %766, %767 : vector<8x1xf32>
    %769 = vector.broadcast %768 : vector<8x1xf32> to vector<8x32xf32>
    %770 = arith.subf %760, %769 : vector<8x32xf32>
    %771 = arith.mulf %770, %770 : vector<8x32xf32>
    %cst_253 = arith.constant dense<0.000000e+00> : vector<8xf32>
    %772 = vector.multi_reduction <add>, %771, %cst_253 [1] : vector<8x32xf32> to vector<8xf32>
    %773 = vector.shape_cast %772 : vector<8xf32> to vector<8x1xf32>
    %cst_254 = arith.constant 3.200000e+01 : f32
    %774 = vector.broadcast %cst_254 : f32 to vector<8x1xf32>
    %775 = arith.divf %773, %774 : vector<8x1xf32>
    %776 = vector.broadcast %768 : vector<8x1xf32> to vector<8x32xf32>
    %777 = arith.subf %760, %776 : vector<8x32xf32>
    %cst_255 = arith.constant 9.99999974E-6 : f32
    %778 = vector.broadcast %cst_255 : f32 to vector<8x1xf32>
    %779 = arith.addf %775, %778 : vector<8x1xf32>
    %780 = math.rsqrt %779 : vector<8x1xf32>
    %781 = vector.broadcast %780 : vector<8x1xf32> to vector<8x32xf32>
    %782 = arith.mulf %777, %781 : vector<8x32xf32>
    %783 = vector.broadcast %763 : vector<1x32xf32> to vector<8x32xf32>
    %784 = arith.mulf %782, %783 : vector<8x32xf32>
    %785 = vector.broadcast %764 : vector<1x32xf32> to vector<8x32xf32>
    %786 = arith.addf %784, %785 : vector<8x32xf32>
    %787 = arith.addf %786, %356 : vector<8x32xf32>
    %c1_256 = arith.constant 1 : index
    %c0_257 = arith.constant 0 : index
    %c0_258 = arith.constant 0 : index
    %788 = vector.load %arg15[%c1_256, %c0_257, %c0_258] : memref<2x33x96xf32, #tpu.memory_space<vmem>>, vector<1x33x96xf32>
    %789 = vector.shape_cast %788 : vector<1x33x96xf32> to vector<33x96xf32>
    %c1_259 = arith.constant 1 : index
    %c0_260 = arith.constant 0 : index
    %c0_261 = arith.constant 0 : index
    %790 = vector.load %arg16[%c1_259, %c0_260, %c0_261] : memref<2x33x32xf32, #tpu.memory_space<vmem>>, vector<1x33x32xf32>
    %791 = vector.shape_cast %790 : vector<1x33x32xf32> to vector<33x32xf32>
    %792 = vector.extract_strided_slice %789 {offsets = [0, 0], sizes = [32, 96], strides = [1, 1]} : vector<33x96xf32> to vector<32x96xf32>
    %793 = vector.extract_strided_slice %789 {offsets = [32, 0], sizes = [1, 96], strides = [1, 1]} : vector<33x96xf32> to vector<1x96xf32>
    %794 = vector.extract_strided_slice %791 {offsets = [0, 0], sizes = [32, 32], strides = [1, 1]} : vector<33x32xf32> to vector<32x32xf32>
    %795 = vector.extract_strided_slice %791 {offsets = [32, 0], sizes = [1, 32], strides = [1, 1]} : vector<33x32xf32> to vector<1x32xf32>
    %796 = vector.extract_strided_slice %792 {offsets = [0, 0], sizes = [32, 32], strides = [1, 1]} : vector<32x96xf32> to vector<32x32xf32>
    %cst_262 = arith.constant dense<0.000000e+00> : vector<8x32xf32>
    %797 = tpu.matmul %787, %796, %cst_262 {dimension_numbers = #tpu.dot_dimension_numbers<[1], [0], [0], [1], [0, 0, 1, 1], [], []>} : vector<8x32xf32>, vector<32x32xf32>, vector<8x32xf32> -> vector<8x32xf32>
    %798 = vector.extract_strided_slice %793 {offsets = [0, 0], sizes = [1, 32], strides = [1, 1]} : vector<1x96xf32> to vector<1x32xf32>
    %799 = vector.broadcast %798 : vector<1x32xf32> to vector<8x32xf32>
    %800 = arith.addf %797, %799 : vector<8x32xf32>
    %cst_263 = arith.constant 0.353553385 : f32
    %801 = vector.broadcast %cst_263 : f32 to vector<8x32xf32>
    %802 = arith.mulf %800, %801 : vector<8x32xf32>
    %803 = vector.extract_strided_slice %792 {offsets = [0, 32], sizes = [32, 32], strides = [1, 1]} : vector<32x96xf32> to vector<32x32xf32>
    %cst_264 = arith.constant dense<0.000000e+00> : vector<16x32xf32>
    %804 = tpu.matmul %354, %803, %cst_264 {dimension_numbers = #tpu.dot_dimension_numbers<[1], [0], [0], [1], [0, 0, 1, 1], [], []>} : vector<16x32xf32>, vector<32x32xf32>, vector<16x32xf32> -> vector<16x32xf32>
    %805 = vector.extract_strided_slice %793 {offsets = [0, 32], sizes = [1, 32], strides = [1, 1]} : vector<1x96xf32> to vector<1x32xf32>
    %806 = vector.broadcast %805 : vector<1x32xf32> to vector<16x32xf32>
    %807 = arith.addf %804, %806 : vector<16x32xf32>
    %808 = vector.extract_strided_slice %792 {offsets = [0, 64], sizes = [32, 32], strides = [1, 1]} : vector<32x96xf32> to vector<32x32xf32>
    %cst_265 = arith.constant dense<0.000000e+00> : vector<16x32xf32>
    %809 = tpu.matmul %353, %808, %cst_265 {dimension_numbers = #tpu.dot_dimension_numbers<[1], [0], [0], [1], [0, 0, 1, 1], [], []>} : vector<16x32xf32>, vector<32x32xf32>, vector<16x32xf32> -> vector<16x32xf32>
    %810 = vector.extract_strided_slice %793 {offsets = [0, 64], sizes = [1, 32], strides = [1, 1]} : vector<1x96xf32> to vector<1x32xf32>
    %811 = vector.broadcast %810 : vector<1x32xf32> to vector<16x32xf32>
    %812 = arith.addf %809, %811 : vector<16x32xf32>
    %813 = vector.shape_cast %5 : vector<1x16xf32> to vector<1x16xf32>
    %814 = vector.broadcast %813 : vector<1x16xf32> to vector<8x16xf32>
    %cst_266 = arith.constant 0.000000e+00 : f32
    %815 = vector.broadcast %cst_266 : f32 to vector<8x32xf32>
    %816 = vector.extract_strided_slice %802 {offsets = [0, 0], sizes = [8, 8], strides = [1, 1]} : vector<8x32xf32> to vector<8x8xf32>
    %817 = vector.extract_strided_slice %807 {offsets = [0, 0], sizes = [16, 8], strides = [1, 1]} : vector<16x32xf32> to vector<16x8xf32>
    %cst_267 = arith.constant dense<0.000000e+00> : vector<8x16xf32>
    %818 = tpu.matmul %816, %817, %cst_267 {dimension_numbers = #tpu.dot_dimension_numbers<[1], [1], [0], [0], [0, 0, 1, 0], [], []>} : vector<8x8xf32>, vector<16x8xf32>, vector<8x16xf32> -> vector<8x16xf32>
    %819 = arith.addf %818, %814 : vector<8x16xf32>
    %cst_268 = arith.constant dense<0xFF800000> : vector<8xf32>
    %820 = vector.multi_reduction <maximumf>, %819, %cst_268 [1] : vector<8x16xf32> to vector<8xf32>
    %821 = vector.shape_cast %820 : vector<8xf32> to vector<8x1xf32>
    %822 = vector.broadcast %821 : vector<8x1xf32> to vector<8x16xf32>
    %823 = arith.subf %819, %822 : vector<8x16xf32>
    %824 = math.exp %823 : vector<8x16xf32>
    %cst_269 = arith.constant dense<0.000000e+00> : vector<8xf32>
    %825 = vector.multi_reduction <add>, %824, %cst_269 [1] : vector<8x16xf32> to vector<8xf32>
    %826 = vector.shape_cast %825 : vector<8xf32> to vector<8x1xf32>
    %827 = tpu.reciprocal %826 {approx = true} : vector<8x1xf32> -> vector<8x1xf32>
    %828 = vector.broadcast %827 : vector<8x1xf32> to vector<8x16xf32>
    %829 = arith.mulf %824, %828 : vector<8x16xf32>
    %830 = vector.extract_strided_slice %812 {offsets = [0, 0], sizes = [16, 8], strides = [1, 1]} : vector<16x32xf32> to vector<16x8xf32>
    %cst_270 = arith.constant dense<0.000000e+00> : vector<8x8xf32>
    %831 = tpu.matmul %829, %830, %cst_270 {dimension_numbers = #tpu.dot_dimension_numbers<[1], [0], [0], [1], [0, 0, 1, 1], [], []>} : vector<8x16xf32>, vector<16x8xf32>, vector<8x8xf32> -> vector<8x8xf32>
    %832 = vector.extract_strided_slice %794 {offsets = [0, 0], sizes = [8, 32], strides = [1, 1]} : vector<32x32xf32> to vector<8x32xf32>
    %cst_271 = arith.constant dense<0.000000e+00> : vector<8x32xf32>
    %833 = tpu.matmul %831, %832, %cst_271 {dimension_numbers = #tpu.dot_dimension_numbers<[1], [0], [0], [1], [0, 0, 1, 1], [], []>} : vector<8x8xf32>, vector<8x32xf32>, vector<8x32xf32> -> vector<8x32xf32>
    %834 = arith.addf %815, %833 : vector<8x32xf32>
    %835 = vector.extract_strided_slice %802 {offsets = [0, 8], sizes = [8, 8], strides = [1, 1]} : vector<8x32xf32> to vector<8x8xf32>
    %836 = vector.extract_strided_slice %807 {offsets = [0, 8], sizes = [16, 8], strides = [1, 1]} : vector<16x32xf32> to vector<16x8xf32>
    %cst_272 = arith.constant dense<0.000000e+00> : vector<8x16xf32>
    %837 = tpu.matmul %835, %836, %cst_272 {dimension_numbers = #tpu.dot_dimension_numbers<[1], [1], [0], [0], [0, 0, 1, 0], [], []>} : vector<8x8xf32>, vector<16x8xf32>, vector<8x16xf32> -> vector<8x16xf32>
    %838 = arith.addf %837, %814 : vector<8x16xf32>
    %cst_273 = arith.constant dense<0xFF800000> : vector<8xf32>
    %839 = vector.multi_reduction <maximumf>, %838, %cst_273 [1] : vector<8x16xf32> to vector<8xf32>
    %840 = vector.shape_cast %839 : vector<8xf32> to vector<8x1xf32>
    %841 = vector.broadcast %840 : vector<8x1xf32> to vector<8x16xf32>
    %842 = arith.subf %838, %841 : vector<8x16xf32>
    %843 = math.exp %842 : vector<8x16xf32>
    %cst_274 = arith.constant dense<0.000000e+00> : vector<8xf32>
    %844 = vector.multi_reduction <add>, %843, %cst_274 [1] : vector<8x16xf32> to vector<8xf32>
    %845 = vector.shape_cast %844 : vector<8xf32> to vector<8x1xf32>
    %846 = tpu.reciprocal %845 {approx = true} : vector<8x1xf32> -> vector<8x1xf32>
    %847 = vector.broadcast %846 : vector<8x1xf32> to vector<8x16xf32>
    %848 = arith.mulf %843, %847 : vector<8x16xf32>
    %849 = vector.extract_strided_slice %812 {offsets = [0, 8], sizes = [16, 8], strides = [1, 1]} : vector<16x32xf32> to vector<16x8xf32>
    %cst_275 = arith.constant dense<0.000000e+00> : vector<8x8xf32>
    %850 = tpu.matmul %848, %849, %cst_275 {dimension_numbers = #tpu.dot_dimension_numbers<[1], [0], [0], [1], [0, 0, 1, 1], [], []>} : vector<8x16xf32>, vector<16x8xf32>, vector<8x8xf32> -> vector<8x8xf32>
    %851 = vector.extract_strided_slice %794 {offsets = [8, 0], sizes = [8, 32], strides = [1, 1]} : vector<32x32xf32> to vector<8x32xf32>
    %cst_276 = arith.constant dense<0.000000e+00> : vector<8x32xf32>
    %852 = tpu.matmul %850, %851, %cst_276 {dimension_numbers = #tpu.dot_dimension_numbers<[1], [0], [0], [1], [0, 0, 1, 1], [], []>} : vector<8x8xf32>, vector<8x32xf32>, vector<8x32xf32> -> vector<8x32xf32>
    %853 = arith.addf %834, %852 : vector<8x32xf32>
    %854 = vector.extract_strided_slice %802 {offsets = [0, 16], sizes = [8, 8], strides = [1, 1]} : vector<8x32xf32> to vector<8x8xf32>
    %855 = vector.extract_strided_slice %807 {offsets = [0, 16], sizes = [16, 8], strides = [1, 1]} : vector<16x32xf32> to vector<16x8xf32>
    %cst_277 = arith.constant dense<0.000000e+00> : vector<8x16xf32>
    %856 = tpu.matmul %854, %855, %cst_277 {dimension_numbers = #tpu.dot_dimension_numbers<[1], [1], [0], [0], [0, 0, 1, 0], [], []>} : vector<8x8xf32>, vector<16x8xf32>, vector<8x16xf32> -> vector<8x16xf32>
    %857 = arith.addf %856, %814 : vector<8x16xf32>
    %cst_278 = arith.constant dense<0xFF800000> : vector<8xf32>
    %858 = vector.multi_reduction <maximumf>, %857, %cst_278 [1] : vector<8x16xf32> to vector<8xf32>
    %859 = vector.shape_cast %858 : vector<8xf32> to vector<8x1xf32>
    %860 = vector.broadcast %859 : vector<8x1xf32> to vector<8x16xf32>
    %861 = arith.subf %857, %860 : vector<8x16xf32>
    %862 = math.exp %861 : vector<8x16xf32>
    %cst_279 = arith.constant dense<0.000000e+00> : vector<8xf32>
    %863 = vector.multi_reduction <add>, %862, %cst_279 [1] : vector<8x16xf32> to vector<8xf32>
    %864 = vector.shape_cast %863 : vector<8xf32> to vector<8x1xf32>
    %865 = tpu.reciprocal %864 {approx = true} : vector<8x1xf32> -> vector<8x1xf32>
    %866 = vector.broadcast %865 : vector<8x1xf32> to vector<8x16xf32>
    %867 = arith.mulf %862, %866 : vector<8x16xf32>
    %868 = vector.extract_strided_slice %812 {offsets = [0, 16], sizes = [16, 8], strides = [1, 1]} : vector<16x32xf32> to vector<16x8xf32>
    %cst_280 = arith.constant dense<0.000000e+00> : vector<8x8xf32>
    %869 = tpu.matmul %867, %868, %cst_280 {dimension_numbers = #tpu.dot_dimension_numbers<[1], [0], [0], [1], [0, 0, 1, 1], [], []>} : vector<8x16xf32>, vector<16x8xf32>, vector<8x8xf32> -> vector<8x8xf32>
    %870 = vector.extract_strided_slice %794 {offsets = [16, 0], sizes = [8, 32], strides = [1, 1]} : vector<32x32xf32> to vector<8x32xf32>
    %cst_281 = arith.constant dense<0.000000e+00> : vector<8x32xf32>
    %871 = tpu.matmul %869, %870, %cst_281 {dimension_numbers = #tpu.dot_dimension_numbers<[1], [0], [0], [1], [0, 0, 1, 1], [], []>} : vector<8x8xf32>, vector<8x32xf32>, vector<8x32xf32> -> vector<8x32xf32>
    %872 = arith.addf %853, %871 : vector<8x32xf32>
    %873 = vector.extract_strided_slice %802 {offsets = [0, 24], sizes = [8, 8], strides = [1, 1]} : vector<8x32xf32> to vector<8x8xf32>
    %874 = vector.extract_strided_slice %807 {offsets = [0, 24], sizes = [16, 8], strides = [1, 1]} : vector<16x32xf32> to vector<16x8xf32>
    %cst_282 = arith.constant dense<0.000000e+00> : vector<8x16xf32>
    %875 = tpu.matmul %873, %874, %cst_282 {dimension_numbers = #tpu.dot_dimension_numbers<[1], [1], [0], [0], [0, 0, 1, 0], [], []>} : vector<8x8xf32>, vector<16x8xf32>, vector<8x16xf32> -> vector<8x16xf32>
    %876 = arith.addf %875, %814 : vector<8x16xf32>
    %cst_283 = arith.constant dense<0xFF800000> : vector<8xf32>
    %877 = vector.multi_reduction <maximumf>, %876, %cst_283 [1] : vector<8x16xf32> to vector<8xf32>
    %878 = vector.shape_cast %877 : vector<8xf32> to vector<8x1xf32>
    %879 = vector.broadcast %878 : vector<8x1xf32> to vector<8x16xf32>
    %880 = arith.subf %876, %879 : vector<8x16xf32>
    %881 = math.exp %880 : vector<8x16xf32>
    %cst_284 = arith.constant dense<0.000000e+00> : vector<8xf32>
    %882 = vector.multi_reduction <add>, %881, %cst_284 [1] : vector<8x16xf32> to vector<8xf32>
    %883 = vector.shape_cast %882 : vector<8xf32> to vector<8x1xf32>
    %884 = tpu.reciprocal %883 {approx = true} : vector<8x1xf32> -> vector<8x1xf32>
    %885 = vector.broadcast %884 : vector<8x1xf32> to vector<8x16xf32>
    %886 = arith.mulf %881, %885 : vector<8x16xf32>
    %887 = vector.extract_strided_slice %812 {offsets = [0, 24], sizes = [16, 8], strides = [1, 1]} : vector<16x32xf32> to vector<16x8xf32>
    %cst_285 = arith.constant dense<0.000000e+00> : vector<8x8xf32>
    %888 = tpu.matmul %886, %887, %cst_285 {dimension_numbers = #tpu.dot_dimension_numbers<[1], [0], [0], [1], [0, 0, 1, 1], [], []>} : vector<8x16xf32>, vector<16x8xf32>, vector<8x8xf32> -> vector<8x8xf32>
    %889 = vector.extract_strided_slice %794 {offsets = [24, 0], sizes = [8, 32], strides = [1, 1]} : vector<32x32xf32> to vector<8x32xf32>
    %cst_286 = arith.constant dense<0.000000e+00> : vector<8x32xf32>
    %890 = tpu.matmul %888, %889, %cst_286 {dimension_numbers = #tpu.dot_dimension_numbers<[1], [0], [0], [1], [0, 0, 1, 1], [], []>} : vector<8x8xf32>, vector<8x32xf32>, vector<8x32xf32> -> vector<8x32xf32>
    %891 = arith.addf %872, %890 : vector<8x32xf32>
    %892 = vector.broadcast %795 : vector<1x32xf32> to vector<8x32xf32>
    %893 = arith.addf %891, %892 : vector<8x32xf32>
    %894 = arith.addf %786, %893 : vector<8x32xf32>
    %c1_287 = arith.constant 1 : index
    %c0_288 = arith.constant 0 : index
    %c0_289 = arith.constant 0 : index
    %895 = vector.load %arg17[%c1_287, %c0_288, %c0_289] : memref<2x2x32xf32, #tpu.memory_space<vmem>>, vector<1x2x32xf32>
    %896 = vector.shape_cast %895 : vector<1x2x32xf32> to vector<2x32xf32>
    %897 = vector.extract_strided_slice %896 {offsets = [0, 0], sizes = [1, 32], strides = [1, 1]} : vector<2x32xf32> to vector<1x32xf32>
    %898 = vector.extract_strided_slice %896 {offsets = [1, 0], sizes = [1, 32], strides = [1, 1]} : vector<2x32xf32> to vector<1x32xf32>
    %cst_290 = arith.constant dense<0.000000e+00> : vector<8xf32>
    %899 = vector.multi_reduction <add>, %894, %cst_290 [1] : vector<8x32xf32> to vector<8xf32>
    %900 = vector.shape_cast %899 : vector<8xf32> to vector<8x1xf32>
    %cst_291 = arith.constant 3.200000e+01 : f32
    %901 = vector.broadcast %cst_291 : f32 to vector<8x1xf32>
    %902 = arith.divf %900, %901 : vector<8x1xf32>
    %903 = vector.broadcast %902 : vector<8x1xf32> to vector<8x32xf32>
    %904 = arith.subf %894, %903 : vector<8x32xf32>
    %905 = arith.mulf %904, %904 : vector<8x32xf32>
    %cst_292 = arith.constant dense<0.000000e+00> : vector<8xf32>
    %906 = vector.multi_reduction <add>, %905, %cst_292 [1] : vector<8x32xf32> to vector<8xf32>
    %907 = vector.shape_cast %906 : vector<8xf32> to vector<8x1xf32>
    %cst_293 = arith.constant 3.200000e+01 : f32
    %908 = vector.broadcast %cst_293 : f32 to vector<8x1xf32>
    %909 = arith.divf %907, %908 : vector<8x1xf32>
    %910 = vector.broadcast %902 : vector<8x1xf32> to vector<8x32xf32>
    %911 = arith.subf %894, %910 : vector<8x32xf32>
    %cst_294 = arith.constant 9.99999974E-6 : f32
    %912 = vector.broadcast %cst_294 : f32 to vector<8x1xf32>
    %913 = arith.addf %909, %912 : vector<8x1xf32>
    %914 = math.rsqrt %913 : vector<8x1xf32>
    %915 = vector.broadcast %914 : vector<8x1xf32> to vector<8x32xf32>
    %916 = arith.mulf %911, %915 : vector<8x32xf32>
    %917 = vector.broadcast %897 : vector<1x32xf32> to vector<8x32xf32>
    %918 = arith.mulf %916, %917 : vector<8x32xf32>
    %919 = vector.broadcast %898 : vector<1x32xf32> to vector<8x32xf32>
    %920 = arith.addf %918, %919 : vector<8x32xf32>
    %c1_295 = arith.constant 1 : index
    %c0_296 = arith.constant 0 : index
    %c0_297 = arith.constant 0 : index
    %921 = vector.load %arg18[%c1_295, %c0_296, %c0_297] : memref<2x33x64xf32, #tpu.memory_space<vmem>>, vector<1x33x64xf32>
    %922 = vector.shape_cast %921 : vector<1x33x64xf32> to vector<33x64xf32>
    %c1_298 = arith.constant 1 : index
    %c0_299 = arith.constant 0 : index
    %c0_300 = arith.constant 0 : index
    %923 = vector.load %arg19[%c1_298, %c0_299, %c0_300] : memref<2x65x32xf32, #tpu.memory_space<vmem>>, vector<1x65x32xf32>
    %924 = vector.shape_cast %923 : vector<1x65x32xf32> to vector<65x32xf32>
    %c1_301 = arith.constant 1 : index
    %c0_302 = arith.constant 0 : index
    %c0_303 = arith.constant 0 : index
    %925 = vector.load %arg20[%c1_301, %c0_302, %c0_303] : memref<2x2x32xf32, #tpu.memory_space<vmem>>, vector<1x2x32xf32>
    %926 = vector.shape_cast %925 : vector<1x2x32xf32> to vector<2x32xf32>
    %927 = vector.extract_strided_slice %922 {offsets = [0, 0], sizes = [32, 64], strides = [1, 1]} : vector<33x64xf32> to vector<32x64xf32>
    %928 = vector.extract_strided_slice %922 {offsets = [32, 0], sizes = [1, 64], strides = [1, 1]} : vector<33x64xf32> to vector<1x64xf32>
    %929 = vector.extract_strided_slice %924 {offsets = [0, 0], sizes = [64, 32], strides = [1, 1]} : vector<65x32xf32> to vector<64x32xf32>
    %930 = vector.extract_strided_slice %924 {offsets = [64, 0], sizes = [1, 32], strides = [1, 1]} : vector<65x32xf32> to vector<1x32xf32>
    %cst_304 = arith.constant dense<0.000000e+00> : vector<8x64xf32>
    %931 = tpu.matmul %920, %927, %cst_304 {dimension_numbers = #tpu.dot_dimension_numbers<[1], [0], [0], [1], [0, 0, 1, 1], [], []>} : vector<8x32xf32>, vector<32x64xf32>, vector<8x64xf32> -> vector<8x64xf32>
    %932 = vector.broadcast %928 : vector<1x64xf32> to vector<8x64xf32>
    %933 = arith.addf %931, %932 : vector<8x64xf32>
    %cst_305 = arith.constant 0.000000e+00 : f32
    %934 = vector.broadcast %cst_305 : f32 to vector<8x64xf32>
    %935 = arith.maximumf %933, %934 : vector<8x64xf32>
    %cst_306 = arith.constant dense<0.000000e+00> : vector<8x32xf32>
    %936 = tpu.matmul %935, %929, %cst_306 {dimension_numbers = #tpu.dot_dimension_numbers<[1], [0], [0], [1], [0, 0, 1, 1], [], []>} : vector<8x64xf32>, vector<64x32xf32>, vector<8x32xf32> -> vector<8x32xf32>
    %937 = vector.broadcast %930 : vector<1x32xf32> to vector<8x32xf32>
    %938 = arith.addf %936, %937 : vector<8x32xf32>
    %939 = arith.addf %920, %938 : vector<8x32xf32>
    %940 = vector.extract_strided_slice %926 {offsets = [0, 0], sizes = [1, 32], strides = [1, 1]} : vector<2x32xf32> to vector<1x32xf32>
    %941 = vector.extract_strided_slice %926 {offsets = [1, 0], sizes = [1, 32], strides = [1, 1]} : vector<2x32xf32> to vector<1x32xf32>
    %cst_307 = arith.constant dense<0.000000e+00> : vector<8xf32>
    %942 = vector.multi_reduction <add>, %939, %cst_307 [1] : vector<8x32xf32> to vector<8xf32>
    %943 = vector.shape_cast %942 : vector<8xf32> to vector<8x1xf32>
    %cst_308 = arith.constant 3.200000e+01 : f32
    %944 = vector.broadcast %cst_308 : f32 to vector<8x1xf32>
    %945 = arith.divf %943, %944 : vector<8x1xf32>
    %946 = vector.broadcast %945 : vector<8x1xf32> to vector<8x32xf32>
    %947 = arith.subf %939, %946 : vector<8x32xf32>
    %948 = arith.mulf %947, %947 : vector<8x32xf32>
    %cst_309 = arith.constant dense<0.000000e+00> : vector<8xf32>
    %949 = vector.multi_reduction <add>, %948, %cst_309 [1] : vector<8x32xf32> to vector<8xf32>
    %950 = vector.shape_cast %949 : vector<8xf32> to vector<8x1xf32>
    %cst_310 = arith.constant 3.200000e+01 : f32
    %951 = vector.broadcast %cst_310 : f32 to vector<8x1xf32>
    %952 = arith.divf %950, %951 : vector<8x1xf32>
    %953 = vector.broadcast %945 : vector<8x1xf32> to vector<8x32xf32>
    %954 = arith.subf %939, %953 : vector<8x32xf32>
    %cst_311 = arith.constant 9.99999974E-6 : f32
    %955 = vector.broadcast %cst_311 : f32 to vector<8x1xf32>
    %956 = arith.addf %952, %955 : vector<8x1xf32>
    %957 = math.rsqrt %956 : vector<8x1xf32>
    %958 = vector.broadcast %957 : vector<8x1xf32> to vector<8x32xf32>
    %959 = arith.mulf %954, %958 : vector<8x32xf32>
    %960 = vector.broadcast %940 : vector<1x32xf32> to vector<8x32xf32>
    %961 = arith.mulf %959, %960 : vector<8x32xf32>
    %962 = vector.broadcast %941 : vector<1x32xf32> to vector<8x32xf32>
    %963 = arith.addf %961, %962 : vector<8x32xf32>
    %c1_312 = arith.constant 1 : index
    %c0_313 = arith.constant 0 : index
    %c0_314 = arith.constant 0 : index
    %c0_315 = arith.constant 0 : index
    %964 = vector.load %arg21[%c1_312, %c0_313, %c0_314, %c0_315] : memref<2x1x8x32xf32, #tpu.memory_space<vmem>>, vector<1x1x8x32xf32>
    %965 = vector.shape_cast %964 : vector<1x1x8x32xf32> to vector<8x32xf32>
    %966 = vector.shape_cast %963 : vector<8x32xf32> to vector<1x1x8x32xf32>
    tpu.vector_store %arg21[%c1_312, %c0_313, %c0_314, %c0_315], %966 {strides = array<i32>} : memref<2x1x8x32xf32, #tpu.memory_space<vmem>>, vector<1x1x8x32xf32>,
    return
  }
  func.func @transform_0(%arg0: i32) -> (i32, i32, i32) {
    %c0_i32 = arith.constant 0 : i32
    %c0_i32_0 = arith.constant 0 : i32
    %c0_i32_1 = arith.constant 0 : i32
    return %arg0, %c0_i32, %c0_i32_0 : i32, i32, i32
  }
  func.func @transform_1(%arg0: i32) -> (i32, i32, i32) {
    %c0_i32 = arith.constant 0 : i32
    %c0_i32_0 = arith.constant 0 : i32
    %c0_i32_1 = arith.constant 0 : i32
    return %arg0, %c0_i32, %c0_i32_0 : i32, i32, i32
  }
  func.func @transform_2(%arg0: i32) -> (i32, i32, i32) {
    %c0_i32 = arith.constant 0 : i32
    %c0_i32_0 = arith.constant 0 : i32
    %c0_i32_1 = arith.constant 0 : i32
    return %arg0, %c0_i32, %c0_i32_0 : i32, i32, i32
  }
  func.func @transform_3(%arg0: i32) -> (i32, i32) {
    %c0_i32 = arith.constant 0 : i32
    %c0_i32_0 = arith.constant 0 : i32
    %c0_i32_1 = arith.constant 0 : i32
    return %c0_i32, %c0_i32_0 : i32, i32
  }
  func.func @transform_4(%arg0: i32) -> (i32, i32) {
    %c0_i32 = arith.constant 0 : i32
    %c0_i32_0 = arith.constant 0 : i32
    %c0_i32_1 = arith.constant 0 : i32
    return %c0_i32, %c0_i32_0 : i32, i32
  }
  func.func @transform_5(%arg0: i32) -> (i32, i32, i32) {
    %c0_i32 = arith.constant 0 : i32
    %c0_i32_0 = arith.constant 0 : i32
    %c0_i32_1 = arith.constant 0 : i32
    %c0_i32_2 = arith.constant 0 : i32
    return %c0_i32, %c0_i32_0, %c0_i32_1 : i32, i32, i32
  }
  func.func @transform_6(%arg0: i32) -> (i32, i32, i32) {
    %c0_i32 = arith.constant 0 : i32
    %c0_i32_0 = arith.constant 0 : i32
    %c0_i32_1 = arith.constant 0 : i32
    %c0_i32_2 = arith.constant 0 : i32
    return %c0_i32, %c0_i32_0, %c0_i32_1 : i32, i32, i32
  }
  func.func @transform_7(%arg0: i32) -> (i32, i32, i32) {
    %c0_i32 = arith.constant 0 : i32
    %c0_i32_0 = arith.constant 0 : i32
    %c0_i32_1 = arith.constant 0 : i32
    %c0_i32_2 = arith.constant 0 : i32
    return %c0_i32, %c0_i32_0, %c0_i32_1 : i32, i32, i32
  }
  func.func @transform_8(%arg0: i32) -> (i32, i32, i32) {
    %c0_i32 = arith.constant 0 : i32
    %c0_i32_0 = arith.constant 0 : i32
    %c0_i32_1 = arith.constant 0 : i32
    %c0_i32_2 = arith.constant 0 : i32
    return %c0_i32, %c0_i32_0, %c0_i32_1 : i32, i32, i32
  }
  func.func @transform_9(%arg0: i32) -> (i32, i32, i32) {
    %c0_i32 = arith.constant 0 : i32
    %c0_i32_0 = arith.constant 0 : i32
    %c0_i32_1 = arith.constant 0 : i32
    %c0_i32_2 = arith.constant 0 : i32
    return %c0_i32, %c0_i32_0, %c0_i32_1 : i32, i32, i32
  }
  func.func @transform_10(%arg0: i32) -> (i32, i32, i32) {
    %c0_i32 = arith.constant 0 : i32
    %c0_i32_0 = arith.constant 0 : i32
    %c0_i32_1 = arith.constant 0 : i32
    %c0_i32_2 = arith.constant 0 : i32
    return %c0_i32, %c0_i32_0, %c0_i32_1 : i32, i32, i32
  }
  func.func @transform_11(%arg0: i32) -> (i32, i32, i32) {
    %c0_i32 = arith.constant 0 : i32
    %c0_i32_0 = arith.constant 0 : i32
    %c0_i32_1 = arith.constant 0 : i32
    %c0_i32_2 = arith.constant 0 : i32
    return %c0_i32, %c0_i32_0, %c0_i32_1 : i32, i32, i32
  }
  func.func @transform_12(%arg0: i32) -> (i32, i32, i32) {
    %c0_i32 = arith.constant 0 : i32
    %c0_i32_0 = arith.constant 0 : i32
    %c0_i32_1 = arith.constant 0 : i32
    %c0_i32_2 = arith.constant 0 : i32
    return %c0_i32, %c0_i32_0, %c0_i32_1 : i32, i32, i32
  }
  func.func @transform_13(%arg0: i32) -> (i32, i32, i32) {
    %c0_i32 = arith.constant 0 : i32
    %c0_i32_0 = arith.constant 0 : i32
    %c0_i32_1 = arith.constant 0 : i32
    %c0_i32_2 = arith.constant 0 : i32
    return %c0_i32, %c0_i32_0, %c0_i32_1 : i32, i32, i32
  }
  func.func @transform_14(%arg0: i32) -> (i32, i32, i32) {
    %c0_i32 = arith.constant 0 : i32
    %c0_i32_0 = arith.constant 0 : i32
    %c0_i32_1 = arith.constant 0 : i32
    %c0_i32_2 = arith.constant 0 : i32
    return %c0_i32, %c0_i32_0, %c0_i32_1 : i32, i32, i32
  }
  func.func @transform_15(%arg0: i32) -> (i32, i32, i32) {
    %c0_i32 = arith.constant 0 : i32
    %c0_i32_0 = arith.constant 0 : i32
    %c0_i32_1 = arith.constant 0 : i32
    %c0_i32_2 = arith.constant 0 : i32
    return %c0_i32, %c0_i32_0, %c0_i32_1 : i32, i32, i32
  }
  func.func @transform_16(%arg0: i32) -> (i32, i32, i32) {
    %c0_i32 = arith.constant 0 : i32
    %c0_i32_0 = arith.constant 0 : i32
    %c0_i32_1 = arith.constant 0 : i32
    %c0_i32_2 = arith.constant 0 : i32
    return %c0_i32, %c0_i32_0, %c0_i32_1 : i32, i32, i32
  }
  func.func @transform_17(%arg0: i32) -> (i32, i32, i32) {
    %c0_i32 = arith.constant 0 : i32
    %c0_i32_0 = arith.constant 0 : i32
    %c0_i32_1 = arith.constant 0 : i32
    %c0_i32_2 = arith.constant 0 : i32
    return %c0_i32, %c0_i32_0, %c0_i32_1 : i32, i32, i32
  }
  func.func @transform_18(%arg0: i32) -> (i32, i32, i32) {
    %c0_i32 = arith.constant 0 : i32
    %c0_i32_0 = arith.constant 0 : i32
    %c0_i32_1 = arith.constant 0 : i32
    %c0_i32_2 = arith.constant 0 : i32
    return %c0_i32, %c0_i32_0, %c0_i32_1 : i32, i32, i32
  }
  func.func @transform_19(%arg0: i32) -> (i32, i32, i32) {
    %c0_i32 = arith.constant 0 : i32
    %c0_i32_0 = arith.constant 0 : i32
    %c0_i32_1 = arith.constant 0 : i32
    %c0_i32_2 = arith.constant 0 : i32
    return %c0_i32, %c0_i32_0, %c0_i32_1 : i32, i32, i32
  }
  func.func @transform_20(%arg0: i32) -> (i32, i32, i32, i32) {
    %c0_i32 = arith.constant 0 : i32
    %c0_i32_0 = arith.constant 0 : i32
    %c0_i32_1 = arith.constant 0 : i32
    %c0_i32_2 = arith.constant 0 : i32
    return %c0_i32, %arg0, %c0_i32_0, %c0_i32_1 : i32, i32, i32, i32
  }
}

</mosaic_0001>

<bundles_post_ra>
// kernel: transformer_forward.1
= control target key start
LH: loop header
LB: loop body
LE: loop exit
PB: predicated region body
PF: predicated region fallthrough
CT: control target
= control target key end

     0   :  { %s12519_s0 = inlined_call_operand.vmem [shape: f32[2,16,32], index: 0, kind: input, shape index: {}]   ;;  %s12520_s1 = inlined_call_operand.vmem [shape: f32[2,16,32], index: 1, kind: input, shape index: {}]   ;;  %s12521_s2 = inlined_call_operand.vmem [shape: f32[2,1,16], index: 2, kind: input, shape index: {}]   ;;  %s12522_s3 = inlined_call_operand.vmem [shape: f32[8,32], index: 3, kind: input, shape index: {}]   ;;  %s12523_s4 = inlined_call_operand.vmem [shape: f32[8,32], index: 4, kind: input, shape index: {}]   ;;  %s12524_s5 = inlined_call_operand.vmem [shape: f32[2,33,96], index: 5, kind: input, shape index: {}]   ;;  %s12525_s6 = inlined_call_operand.vmem [shape: f32[2,33,32], index: 6, kind: input, shape index: {}]   ;;  %s12526_s7 = inlined_call_operand.vmem [shape: f32[2,2,32], index: 7, kind: input, shape index: {}]   ;;  %s12527_s8 = inlined_call_operand.vmem [shape: f32[2,33,64], index: 8, kind: input, shape index: {}]   ;;  %s12528_s9 = inlined_call_operand.vmem [shape: f32[2,65,32], index: 9, kind: input, shape index: {}]   ;;  %s12529_s10 = inlined_call_operand.vmem [shape: f32[2,2,32], index: 10, kind: input, shape index: {}]   ;;  %s12530_s11 = inlined_call_operand.vmem [shape: f32[2,33,96], index: 11, kind: input, shape index: {}]   ;;  %s12531_s12 = inlined_call_operand.vmem [shape: f32[2,33,32], index: 12, kind: input, shape index: {}]   ;;  %s12532_s13 = inlined_call_operand.vmem [shape: f32[2,2,32], index: 13, kind: input, shape index: {}]   ;;  %s12533_s14 = inlined_call_operand.vmem [shape: f32[2,33,96], index: 14, kind: input, shape index: {}]   ;;  %s12534_s15 = inlined_call_operand.vmem [shape: f32[2,33,32], index: 15, kind: input, shape index: {}]   ;;  %s12535_s16 = inlined_call_operand.vmem [shape: f32[2,2,32], index: 16, kind: input, shape index: {}]   ;;  %s12536_s17 = inlined_call_operand.vmem [shape: f32[2,33,64], index: 17, kind: input, shape index: {}]   ;;  %s12537_s18 = inlined_call_operand.vmem [shape: f32[2,65,32], index: 18, kind: input, shape index: {}]   ;;  %s12538_s19 = inlined_call_operand.vmem [shape: f32[2,2,32], index: 19, kind: input, shape index: {}]   ;;  %s12539_s20 = inlined_call_operand.hbm [shape: f32[2,2,8,32], index: 20, kind: output, shape index: {}]  }
   0x1   :  { %12564 = sst [smem:[#allocation11_spill]] %s12519_s0 }
   0x2   :  { %12565 = sst [smem:[#allocation12_spill]] %s12520_s1 }
   0x3   :  { %12566 = sst [smem:[#allocation13_spill]] %s12521_s2 }
   0x4   :  { %12567 = sst [smem:[#allocation14_spill]] %s12522_s3 }
   0x5   :  { %12568 = sst [smem:[#allocation15_spill]] %s12523_s4 }
   0x6   :  { %12569 = sst [smem:[#allocation16_spill]] %s12524_s5 }
   0x7   :  { %12570 = sst [smem:[#allocation17_spill]] %s12525_s6 }
   0x8   :  { %12571 = sst [smem:[#allocation18_spill]] %s12526_s7 }
   0x9   :  { %12572 = sst [smem:[#allocation19_spill]] %s12527_s8 }
   0xa   :  { %12573 = sst [smem:[#allocation20_spill]] %s12528_s9 }
   0xb   :  { %12574 = sst [smem:[#allocation21_spill]] %s12539_s20 }
   0xc   :  { %25 = vsyncpa [#allocation3], 0 }
   0xd   :  { %27 = vsyncpa [#allocation3 + $0x1], 0  ;;  %s10979_s1 = smov 0   ;;  %s10981_s22 = smov 0  }
   0xe   :  { %s10983_s23 = smov 0   ;;  %s10985_s24 = smov 0  }
   0xf LB: > { %12575 = sst [smem:[#allocation5_spill]] %s10846_s1  ;;  %s11000_s2 = sadd.s32 4294967295, %s10858_s24   ;;  %s10858_s24 = sphi %s10985_s24, %s12607_s24   ;;  %s10854_s23 = sphi %s10983_s23, %s12612_s23   ;;  %s10850_s22 = sphi %s10981_s22, %s12611_s22   ;;  %s10846_s1 = sphi %s10979_s1, %s12610_s1  }
  0x10   : > { %12576 = sst [smem:[#allocation6_spill]] %s10854_s23  ;;  %s9278_s25 = sadd.s32 4294967294, %s10858_s24  }
  0x11   : > { %12577 = sst [smem:[#allocation7_spill]] %s10858_s24  ;;  %s11004_s3 = sadd.s32 1, %s10858_s24  }
  0x12   : > { %12578 = sst [smem:[#allocation8_spill]] %s11004_s3  ;;  %s475_s26 = sadd.s32 1, %s10854_s23 }
  0x13   : > { %s472_s27 = ssub.s32 %s10858_s24, %s11004_s3  ;;  %p485_p0 = scmp.ne.s32.totalorder %s10854_s23, %s10850_s22 }
  0x14   : > { %p473_p1 = scmp.eq.s32.totalorder %s472_s27, 0  ;;  %p486_p2 = scmp.eq.s32.totalorder %s11000_s2, 1 }
  0x15   : > { %p491_p3 = scmp.ne.s32.totalorder %s10850_s22, %s10846_s1  ;;  %p492_p4 = scmp.eq.s32.totalorder %s9278_s25, 1 }
  0x16   : > { %s11015_s28 = scalar_select %p473_p1, %s10854_s23, %s475_s26  }
  0x17   : > { %p11017_p5 = por %p486_p2, %p485_p0  ;;  %p11021_p6 = por %p492_p4, %p491_p3 }
  0x18   : > { %12579 = sst [smem:[#allocation9_spill]] %s11015_s28  ;;  %p9281_p7 = scmp.ge.s32.totalorder %s10858_s24, 1 }
  0x19   : > { %s12581_s29 = scalar_select %p11021_p6, 1, 0 }
  0x1a   : > { %p583_p8 = scmp.lt.s32.totalorder %s10858_s24, 3 }
  0x1b   : > { %12582 = sst [smem:[#allocation10_spill]] %s12581_s29 }
  0x1c   : > { %p584_p9 = pnand %p9281_p7, %p583_p8 }
  0x1d   : > { %s12583_s5 = sld [smem:[#allocation16_spill]] (!%p584_p9)  ;;  %p649_p10 = scmp.lt.s32.totalorder (!%p584_p9), %s11000_s2, 1 }
  0x1e   : > { %587 = sbr.rel (%p584_p9) target bundleno = 17443 (0x4423), region = 100  ;;  %s12556_s28 = smov (!%p584_p9), 64  }
  0x1f   : > { %s12584_s27 = sld [smem:[#allocation11_spill]] (!%p584_p9)  ;;  %s12562_s29 = smov (!%p584_p9), 96  }
  0x20   : > { %s12585_s24 = sld [smem:[#allocation12_spill]] (!%p584_p9)  ;;  %s12560_s30 = smov (!%p584_p9), 120  }
  0x21   : > { %s12586_s25 = sld [smem:[#allocation13_spill]] (!%p584_p9)  ;;  %s12548_s1 = smov (!%p584_p9), 72  }
  0x22   : > { %s12587_s6 = sld [smem:[#allocation17_spill]] (!%p584_p9)  ;;  %s12592_s0 = smov (!%p584_p9), 80  }
  0x23   : > { %v672_v0 = vld [vmem:[%s12583_s5 + $0x18] sm:$0xff]  ;;  %v671_v1 = vld [vmem:[%s12583_s5 + $0x10] sm:$0xff]  ;;  %v670_v2 = vld [vmem:[%s12583_s5 + $0x8] sm:$0xff]  ;;  %s11039_s23 = scalar_select %p649_p10, %s11000_s2, 1  ;;  %vm683_vm0 = vcmask 261120   ;;  %vm880_vm1 = vcmask 64512  }
  0x24   : > { %9886 = vmatprep.subr.mxu0 %v672_v0  ;;  %777 = vrot.lane.b32.xlu0 %v672_v0, %s12556_s28  ;;  %v669_v3 = vld [vmem:[%s12583_s5] sm:$0xff]  ;;  %vm966_vm2 = vcmask 130048   ;;  %s12588_s8 = sld [smem:[#allocation19_spill]]  ;;  %vm2154_vm3 = vcmask 523264   ;;  %vm10869_vm4 = vmmov 0  }
  0x25   : > { %9887 = vmatpush3.msra.mxu0 %v672_v0  ;;  %773 = vrot.lane.b32.xlu1 %v670_v2, %s12556_s28  ;;  %s9546_s21 = sshll.u32 %s11039_s23, 4  ;;  %v9287_v14 = vld [vmem:[%s12583_s5 + $0x20] ss:$0 sm:$0xff]  ;;  %s12589_s9 = sld [smem:[#allocation20_spill]] }
  0x26   : > { %9888 = vmatprep.subr.mxu0 %v671_v1  ;;  %s653_s3 = scalar_lea.vmem %s12584_s27, %s9546_s21  ;;  %s11052_s20 = scalar_lea.vmem %s12585_s24, %s9546_s21 }
  0x27   : > { %9889 = vmatpush3.msra.mxu0 %v671_v1  ;;  %v11055_v4 = vld [vmem:[%s653_s3] sm:$0xff]  ;;  %v11057_v5 = vld [vmem:[%s653_s3 + $0x8] sm:$0xff]  ;;  %s12558_s3 = smov 88   ;;  %s11119_s26 = scalar_lea.vmem %s12586_s25, %s11039_s23 }
  0x28   : > { %9890 = vmatprep.subr.mxu0 %v670_v2  ;;  %775 = vrot.lane.b32.xlu0 %v671_v1, %s12556_s28  ;;  %v11060_v6 = vld [vmem:[%s11052_s20] sm:$0xff]  ;;  %v11063_v7 = vld [vmem:[%s11052_s20 + $0x8] sm:$0xff]  ;;  %s12554_s23 = smov 80   ;;  %s12552_s27 = smov 112  }
  0x29   : > { %9891 = vmatpush3.msra.mxu0 %v670_v2  ;;  %v667_v8 = vadd.f32 %v11060_v6, %v11055_v4  ;;  %9905 = vmatprep.mubr.msk.f32.mxu1 %vm683_vm0, %v11055_v4  ;;  %v668_v9 = vadd.f32 %v11063_v7, %v11057_v5  ;;  %v11122_v27 = vld [vmem:[%s11119_s26] ss:$0 sm:$0xff]  ;;  %s12550_s24 = smov 104   ;;  %s12590_s7 = sld [smem:[#allocation18_spill]] }
  0x2a   : > { %9892 = vmatprep.subr.mxu0 %v669_v3 }
  0x2b   : > { %9893 = vmatpush3.msra.mxu0 %v669_v3  ;;  %9894 = vmatprep.mubr.msk.f32.mxu0 %vm683_vm0, %v667_v8 }
  0x2c   : > { %771 = vrot.lane.b32.xlu0 %v669_v3, %s12556_s28  ;;  %9895 = vmatmul.mubr.msk.f32.vlgmr.msra.gmra.mxu0 %vm683_vm0, %v668_v9 }
  0x96   : > { %v778_v10 = vpop.permute.xlu0 %777 }
  0x97   : > { %9897 = vmatprep.subr.mxu1 %v778_v10  ;;  %v774_v12 = vpop.permute.xlu1 %773 }
  0x98   : > { %9898 = vmatpush3.msra.mxu1 %v778_v10 }
  0x9a   : > { %v776_v11 = vpop.permute.xlu0 %775 }
  0x9b   : > { %9899 = vmatprep.subr.mxu1 %v776_v11 }
  0x9c   : > { %9900 = vmatpush3.msra.mxu1 %v776_v11 }
  0x9d   : > { %9901 = vmatprep.subr.mxu1 %v774_v12 }
  0x9e   : > { %v772_v13 = vpop.permute.xlu0 %771  ;;  %9902 = vmatpush3.msra.mxu1 %v774_v12 }
  0x9f   : > { %9903 = vmatprep.subr.mxu1 %v772_v13 }
  0xa0   : > { %9904 = vmatpush3.msra.mxu1 %v772_v13 }
  0xa1   : > { %9906 = vmatmul.mubr.msk.f32.vlgmr.msra.gmra.mxu1 %vm683_vm0, %v11057_v5 }
  0xec   : > { %v9896_v15 = vpop.f32.mrf.mxu0 }
  0xed   : > { %v11079_v16 = vadd.f32 %v9896_v15, %v9287_v14 }
  0xee   : > { %v756_v17 = vpop.f32.mrf.mxu0 }
  0xef   : > { %v11081_v18 = vadd.f32 %v9287_v14, %v756_v17  ;;  %1076 = vrot.lane.b32.xlu0 %v11079_v16, %s12558_s3  ;;  %878 = vrot.lane.b32.xlu1 %v11079_v16, %s12562_s29  ;;  %v11099_v20 = vmul.f32 0.35355338, %v11079_v16 }
  0xf1   : > { %v11088_v19 = vmul.f32 0.35355338, %v11081_v18 }
  0xf3   : > { %876 = vrot.lane.b32.xlu1 %v11081_v18, %s12562_s29  ;;  %1070 = vrot.lane.b32.xlu0 %v11088_v19, %s12560_s30 }
  0xf4   : > { %9912 = vmatprep.mubr.msk.f32.mxu0 %vm880_vm1, %v11088_v19 }
  0xf7   : > { %1074 = vrot.lane.b32.xlu1 %v11081_v18, %s12558_s3 }
  0xfb   : > { %1072 = vrot.lane.b32.xlu1 %v11099_v20, %s12560_s30 }
 0x161   : > { %v1077_v21 = vpop.permute.xlu0 %1076  ;;  %v879_v22 = vpop.permute.xlu1 %878 }
 0x162   : > { %9908 = vmatprep.subr.msk.mxu0 %vm880_vm1, %v879_v22  ;;  %9922 = vmatprep.subr.msk.mxu1 %vm880_vm1, %v1077_v21  ;;  %v9907_v28 = vpop.f32.mrf.mxu1 }
 0x163   : > { %9909 = vmatpush3.xpose.msk.msra.mxu0 %vm880_vm1, %v879_v22  ;;  %9923 = vmatpush3.xpose.msk.msra.mxu1 %vm880_vm1, %v1077_v21  ;;  %v674_v21 = vld [vmem:[%s12587_s6] sm:$0xff] }
 0x164   : > { %v859_v31 = vpop.f32.mrf.mxu1 }
 0x165   : > { %v877_v23 = vpop.permute.xlu1 %876  ;;  %v1071_v24 = vpop.permute.xlu0 %1070 }
 0x166   : > { %9910 = vmatprep.subr.msk.mxu0 %vm880_vm1, %v877_v23  ;;  %9926 = vmatprep.mubr.msk.f32.mxu1 %vm880_vm1, %v1071_v24 }
 0x167   : > { %9911 = vmatpush3.xpose.msk.msra.mxu0 %vm880_vm1, %v877_v23 }
 0x169   : > { %v1075_v25 = vpop.permute.xlu1 %1074 }
 0x16a   : > { %9913 = vmatmul.mubr.msk.f32.vlgmr.msra.gmra.mxu0 %vm880_vm1, %v11099_v20  ;;  %9924 = vmatprep.subr.msk.mxu1 %vm880_vm1, %v1075_v25 }
 0x16b   : > { %9925 = vmatpush3.xpose.msk.msra.mxu1 %vm880_vm1, %v1075_v25 }
 0x16c   : > { %9941 = vmatprep.subr.mxu1 %v674_v21 }
 0x16d   : > { %v1073_v26 = vpop.permute.xlu1 %1072 }
 0x16e   : > { %9927 = vmatmul.mubr.msk.f32.vlgmr.msra.gmra.mxu1 %vm880_vm1, %v1073_v26 }
 0x16f   : > { %9942 = vmatpush3.msra.mxu1 %v674_v21 }
 0x22a   : > { %v9914_v29 = vpop.f32.mrf.mxu0 }
 0x22b   : > { %v963_v30 = vadd.f32 %v9914_v29, %v11122_v27 }
 0x22c   : > { %v957_v32 = vpop.f32.mrf.mxu0 }
 0x22d   : > { %v958_v33 = vadd.f32 %v11122_v27, %v957_v32  ;;  %v970_v34 = vsel %vm966_vm2, %v963_v30, -inf }
 0x22e   : > { %v9928_v35 = vpop.f32.mrf.mxu1  ;;  %971 = vmax.xlane.f32.xlu1 %v970_v34 }
 0x22f   : > { %v967_v36 = vsel %vm966_vm2, %v958_v33, -inf  ;;  %v1158_v39 = vadd.f32 %v9928_v35, %v11122_v27 }
 0x230   : > { %v1152_v37 = vpop.f32.mrf.mxu1  ;;  %968 = vmax.xlane.f32.xlu0 %v967_v36 }
 0x231   : > { %v1153_v38 = vadd.f32 %v11122_v27, %v1152_v37  ;;  %v1164_v41 = vsel %vm966_vm2, %v1158_v39, -inf }
 0x233   : > { %v1161_v40 = vsel %vm966_vm2, %v1153_v38, -inf }
 0x234   : > { %1162 = vmax.xlane.f32.xlu0 %v1161_v40 }
 0x238   : > { %1165 = vmax.xlane.f32.xlu0 %v1164_v41 }
 0x23f   : > { %784 = vrot.lane.b32.xlu1 %v9287_v14, %s12556_s28  ;;  %s12595_s28 = smov 104  }
 0x2b7   : > { %v972_v42 = vpop.xlane.xlu1 %971 }
 0x2b8   : > { %v974_v43 = vsub.f32 %v963_v30, %v972_v42 }
 0x2b9   : > { %v969_v44 = vpop.xlane.xlu0 %968 }
 0x2ba   : > { %v977_v45 = vmul.f32 1.442695, %v974_v43  ;;  %v973_v50 = vsub.f32 %v958_v33, %v969_v44 }
 0x2bb   : > { %v785_v46 = vpop.permute.xlu1 %784 }
 0x2bc   : > { %10636 = vpow2.f32 %v977_v45  ;;  %v11133_v47 = vadd.f32 %v9907_v28, %v785_v46  ;;  %v11135_v49 = vadd.f32 %v859_v31, %v785_v46  ;;  %v975_v53 = vmul.f32 1.442695, %v973_v50 }
 0x2bd   : > { %v1163_v48 = vpop.xlane.xlu0 %1162 }
 0x2be   : > { %1187 = vrot.lane.b32.xlu1 %v11133_v47, %s12560_s30  ;;  %9915 = vmatprep.subr.mxu0 %v11133_v47  ;;  %v1167_v54 = vsub.f32 %v1153_v38, %v1163_v48 }
 0x2bf   : > { %9916 = vmatpush3.msra.mxu0 %v11133_v47 }
 0x2c0   : > { %9917 = vmatprep.subr.mxu0 %v11135_v49  ;;  %v1169_v56 = vmul.f32 1.442695, %v1167_v54 }
 0x2c1   : > { %9918 = vmatpush3.msra.mxu0 %v11135_v49  ;;  %v1166_v51 = vpop.xlane.xlu0 %1165 }
 0x2c2   : > { %v1168_v52 = vsub.f32 %v1158_v39, %v1166_v51  ;;  %1440 = vrot.lane.b32.xlu1 %v11079_v16, %s12554_s23 }
 0x2c4   : > { %v1171_v55 = vmul.f32 1.442695, %v1168_v52 }
 0x2c6   : > { %10638 = vpow2.f32 %v1171_v55  ;;  %1438 = vrot.lane.b32.xlu1 %v11081_v18, %s12554_s23  ;;  %s12597_s23 = sld [smem:[#allocation15_spill]] }
 0x2c7   : > { %10640 = vpow2.f32 %v975_v53 }
 0x2c8   : > { %10642 = vpow2.f32 %v1169_v56 }
 0x2c9   : > { %v10637_v57 = vpop.eup %10636 }
 0x2ca   : > { %1434 = vrot.lane.b32.xlu1 %v11088_v19, %s12552_s27  ;;  %v982_v58 = vsel %vm966_vm2, %v10637_v57, 0.0 }
 0x2cb   : > { %983 = vadd.xlane.f32.xlu0 %v982_v58 }
 0x2cc   : > { %s12598_s21 = smov %s12597_s23 }
 0x2ce   : > { %1436 = vrot.lane.b32.xlu1 %v11099_v20, %s12552_s27 }
 0x2d2   : > { %1723 = vrot.lane.b32.xlu1 %v11079_v16, %s12548_s1 }
 0x2d3   : > { %v10639_v59 = vpop.eup %10638 }
 0x2d4   : > { %v1176_v60 = vsel %vm966_vm2, %v10639_v59, 0.0  ;;  %v10641_v61 = vpop.eup %10640 }
 0x2d5   : > { %1177 = vadd.xlane.f32.xlu0 %v1176_v60  ;;  %v979_v62 = vsel %vm966_vm2, %v10641_v61, 0.0  ;;  %v10643_v63 = vpop.eup %10642 }
 0x2d6   : > { %1717 = vrot.lane.b32.xlu1 %v11088_v19, %s12550_s24  ;;  %v1173_v0 = vsel %vm966_vm2, %v10643_v63, 0.0 }
 0x2d9   : > { %980 = vadd.xlane.f32.xlu0 %v979_v62 }
 0x2dd   : > { %1174 = vadd.xlane.f32.xlu0 %v1173_v0 }
 0x2f3   : > { %1185 = vrot.lane.b32.xlu0 %v11135_v49, %s12560_s30 }
 0x2f7   : > { %1721 = vrot.lane.b32.xlu0 %v11081_v18, %s12548_s1  ;;  %v675_v18 = vld [vmem:[%s12587_s6 + $0x8] sm:$0xff]  ;;  %s12591_s1 = smov 64  }
 0x2fb   : > { %1719 = vrot.lane.b32.xlu0 %v11099_v20, %s12550_s24 }
 0x330   : > { %v1188_v1 = vpop.permute.xlu1 %1187 }
 0x331   : > { %9929 = vmatprep.subr.mxu0 %v1188_v1 }
 0x334   : > { %v1441_v20 = vpop.permute.xlu1 %1440 }
 0x338   : > { %v1439_v22 = vpop.permute.xlu1 %1438 }
 0x33c   : > { %v1435_v23 = vpop.permute.xlu1 %1434 }
 0x340   : > { %v1437_v26 = vpop.permute.xlu1 %1436 }
 0x344   : > { %v1724_v30 = vpop.permute.xlu1 %1723 }
 0x348   : > { %v1718_v31 = vpop.permute.xlu1 %1717 }
 0x354   : > { %v984_v2 = vpop.xlane.xlu0 %983 }
 0x355   : > { %10644 = vrcp.f32 %v984_v2 }
 0x35e   : > { %v1178_v3 = vpop.xlane.xlu0 %1177 }
 0x362   : > { %v981_v8 = vpop.xlane.xlu0 %980  ;;  %v10645_v10 = vpop.eup %10644 }
 0x363   : > { %10646 = vrcp.f32 %v981_v8  ;;  %v988_v13 = vmul.f32 %v10645_v10, %v10637_v57 }
 0x364   : > { %10648 = vrcp.f32 %v1178_v3 }
 0x366   : > { %v1175_v9 = vpop.xlane.xlu0 %1174 }
 0x367   : > { %10650 = vrcp.f32 %v1175_v9 }
 0x36a   : > { %v1186_v16 = vpop.permute.xlu0 %1185 }
 0x36e   : > { %v1722_v32 = vpop.permute.xlu0 %1721 }
 0x370   : > { %v10647_v11 = vpop.eup %10646 }
 0x371   : > { %v987_v12 = vmul.f32 %v10647_v11, %v10641_v61  ;;  %v10649_v14 = vpop.eup %10648 }
 0x372   : > { %v1182_v19 = vmul.f32 %v10649_v14, %v10639_v59  ;;  %v1720_v33 = vpop.permute.xlu0 %1719 }
 0x373   : > { %9919 = vmatprep.mubr.msk.f32.mxu0 %vm966_vm2, %v987_v12 }
 0x374   : > { %v10651_v15 = vpop.eup %10650  ;;  %9920 = vmatmul.mubr.msk.f32.vlgmr.msra.gmra.mxu0 %vm966_vm2, %v988_v13 }
 0x375   : > { %9930 = vmatpush3.msra.mxu0 %v1188_v1  ;;  %v1181_v17 = vmul.f32 %v10651_v15, %v10643_v63 }
 0x376   : > { %9931 = vmatprep.subr.mxu0 %v1186_v16 }
 0x377   : > { %9932 = vmatpush3.msra.mxu0 %v1186_v16  ;;  %9933 = vmatprep.mubr.msk.f32.mxu0 %vm966_vm2, %v1181_v17 }
 0x378   : > { %9936 = vmatprep.subr.mxu0 %v675_v18  ;;  %9934 = vmatmul.mubr.msk.f32.vlgmr.msra.gmra.mxu0 %vm966_vm2, %v1182_v19 }
 0x379   : > { %9937 = vmatpush3.msra.mxu0 %v675_v18 }
 0x37a   : > { %9946 = vmatprep.subr.msk.mxu0 %vm880_vm1, %v1441_v20 }
 0x434   : > { %v9921_v24 = vpop.f32.mrf.mxu0 }
 0x436   : > { %v1061_v25 = vpop.f32.mrf.mxu0 }
 0x437   : > { %9943 = vmatprep.mubr.msk.f32.mxu1 %vm880_vm1, %v1061_v25 }
 0x438   : > { %v9935_v28 = vpop.f32.mrf.mxu0  ;;  %9944 = vmatmul.mubr.msk.f32.vlgmr.msra.gmra.mxu1 %vm880_vm1, %v9921_v24 }
 0x43a   : > { %v1263_v29 = vpop.f32.mrf.mxu0 }
 0x43b   : > { %9938 = vmatprep.mubr.msk.f32.mxu0 %vm880_vm1, %v1263_v29 }
 0x43c   : > { %9939 = vmatmul.mubr.msk.f32.vlgmr.msra.gmra.mxu0 %vm880_vm1, %v9935_v28 }
 0x43d   : > { %9947 = vmatpush3.xpose.msk.msra.mxu0 %vm880_vm1, %v1441_v20  ;;  %9950 = vmatprep.mubr.msk.f32.mxu0 %vm880_vm1, %v1435_v23  ;;  %v676_v20 = vld [vmem:[%s12587_s6 + $0x10] sm:$0xff] }
 0x43e   : > { %9948 = vmatprep.subr.msk.mxu0 %vm880_vm1, %v1439_v22 }
 0x441   : > { %9949 = vmatpush3.xpose.msk.msra.mxu0 %vm880_vm1, %v1439_v22 }
 0x442   : > { %9965 = vmatprep.subr.msk.mxu0 %vm880_vm1, %v1724_v30 }
 0x444   : > { %9951 = vmatmul.mubr.msk.f32.vlgmr.msra.gmra.mxu0 %vm880_vm1, %v1437_v26 }
 0x445   : > { %9966 = vmatpush3.xpose.msk.msra.mxu0 %vm880_vm1, %v1724_v30  ;;  %9969 = vmatprep.mubr.msk.f32.mxu0 %vm880_vm1, %v1718_v31  ;;  %v677_v31 = vld [vmem:[%s12587_s6 + $0x18] sm:$0xff] }
 0x446   : > { %9967 = vmatprep.subr.msk.mxu0 %vm880_vm1, %v1722_v32 }
 0x449   : > { %9968 = vmatpush3.xpose.msk.msra.mxu0 %vm880_vm1, %v1722_v32 }
 0x44c   : > { %9970 = vmatmul.mubr.msk.f32.vlgmr.msra.gmra.mxu0 %vm880_vm1, %v1720_v33 }
 0x4f8   : > { %v9945_v34 = vpop.f32.mrf.mxu1 }
 0x4fa   : > { %v1425_v21 = vpop.f32.mrf.mxu1 }
 0x4fc   : > { %v9940_v35 = vpop.f32.mrf.mxu0 }
 0x4fd   : > { %v11191_v36 = vadd.f32 %v9945_v34, %v9940_v35 }
 0x4fe   : > { %v11193_v37 = vpop.f32.mrf.mxu0 }
 0x4ff   : > { %v1426_v33 = vadd.f32 %v1425_v21, %v11193_v37 }
 0x504   : > { %v9952_v38 = vpop.f32.mrf.mxu0 }
 0x505   : > { %v1522_v39 = vadd.f32 %v9952_v38, %v11122_v27 }
 0x506   : > { %v1516_v40 = vpop.f32.mrf.mxu0 }
 0x507   : > { %v1517_v41 = vadd.f32 %v11122_v27, %v1516_v40  ;;  %v1528_v42 = vsel %vm966_vm2, %v1522_v39, -inf }
 0x508   : > { %1529 = vmax.xlane.f32.xlu0 %v1528_v42 }
 0x509   : > { %v1525_v43 = vsel %vm966_vm2, %v1517_v41, -inf }
 0x50a   : > { %1526 = vmax.xlane.f32.xlu1 %v1525_v43 }
 0x50c   : > { %v9971_v56 = vpop.f32.mrf.mxu0 }
 0x50d   : > { %v1805_v59 = vadd.f32 %v9971_v56, %v11122_v27 }
 0x50e   : > { %v1799_v57 = vpop.f32.mrf.mxu0 }
 0x50f   : > { %v1800_v58 = vadd.f32 %v11122_v27, %v1799_v57  ;;  %v1811_v61 = vsel %vm966_vm2, %v1805_v59, -inf }
 0x511   : > { %v1808_v60 = vsel %vm966_vm2, %v1800_v58, -inf }
 0x591   : > { %v1530_v44 = vpop.xlane.xlu0 %1529 }
 0x592   : > { %v1532_v45 = vsub.f32 %v1522_v39, %v1530_v44 }
 0x593   : > { %v1527_v46 = vpop.xlane.xlu1 %1526 }
 0x594   : > { %v1535_v48 = vmul.f32 1.442695, %v1532_v45  ;;  %v1531_v50 = vsub.f32 %v1517_v41, %v1527_v46  ;;  %v9325_v41 = vld [vmem:[%s12587_s6 + $0x20] ss:$0 sm:$0xff] }
 0x596   : > { %10652 = vpow2.f32 %v1535_v48  ;;  %v1533_v51 = vmul.f32 1.442695, %v1531_v50 }
 0x598   : > { %10654 = vpow2.f32 %v1533_v51 }
 0x5a3   : > { %v10653_v52 = vpop.eup %10652 }
 0x5a4   : > { %v1540_v53 = vsel %vm966_vm2, %v10653_v52, 0.0 }
 0x5a5   : > { %v10655_v54 = vpop.eup %10654  ;;  %1541 = vadd.xlane.f32.xlu1 %v1540_v53 }
 0x5a6   : > { %v1537_v55 = vsel %vm966_vm2, %v10655_v54, 0.0 }
 0x5a7   : > { %1538 = vadd.xlane.f32.xlu0 %v1537_v55 }
 0x5b6   : > { %1547 = vrot.lane.b32.xlu1 %v11135_v49, %s12552_s27 }
 0x5bd   : > { %1549 = vrot.lane.b32.xlu0 %v11133_v47, %s12552_s27  ;;  %s12593_s27 = smov 112  }
 0x5da   : > { %1809 = vmax.xlane.f32.xlu1 %v1808_v60 }
 0x5dc   : > { %1812 = vmax.xlane.f32.xlu0 %v1811_v61  ;;  %v2050_v61 = vld [vmem:[%s12588_s8 + $0x10] sm:$0xff] }
 0x62e   : > { %v1542_v62 = vpop.xlane.xlu1 %1541 }
 0x62f   : > { %10656 = vrcp.f32 %v1542_v62  ;;  %v2049_v62 = vld [vmem:[%s12588_s8 + $0x8] sm:$0xff] }
 0x630   : > { %v1539_v63 = vpop.xlane.xlu0 %1538 }
 0x631   : > { %10658 = vrcp.f32 %v1539_v63  ;;  %v2048_v63 = vld [vmem:[%s12588_s8] sm:$0xff] }
 0x632   : > { %v1548_v1 = vpop.permute.xlu1 %1547 }
 0x634   : > { %v1550_v0 = vpop.permute.xlu0 %1549 }
 0x635   : > { %9953 = vmatprep.subr.mxu1 %v1550_v0 }
 0x636   : > { %9954 = vmatpush3.msra.mxu1 %v1550_v0  ;;  %v2060_v0 = vld [vmem:[%s12589_s9 + $0x38] sm:$0xff] }
 0x637   : > { %9955 = vmatprep.subr.mxu1 %v1548_v1 }
 0x638   : > { %9956 = vmatpush3.msra.mxu1 %v1548_v1  ;;  %v2059_v1 = vld [vmem:[%s12589_s9 + $0x30] sm:$0xff] }
 0x639   : > { %9960 = vmatprep.subr.mxu1 %v676_v20 }
 0x63c   : > { %v10657_v2 = vpop.eup %10656 }
 0x63d   : > { %v1546_v9 = vmul.f32 %v10657_v2, %v10653_v52  ;;  %v2058_v2 = vld [vmem:[%s12589_s9 + $0x28] sm:$0xff] }
 0x63e   : > { %v10659_v3 = vpop.eup %10658 }
 0x63f   : > { %v1545_v8 = vmul.f32 %v10659_v3, %v10655_v54  ;;  %v2057_v3 = vld [vmem:[%s12589_s9 + $0x20] sm:$0xff] }
 0x641   : > { %9957 = vmatprep.mubr.msk.f32.mxu1 %vm966_vm2, %v1545_v8 }
 0x642   : > { %9958 = vmatmul.mubr.msk.f32.vlgmr.msra.gmra.mxu1 %vm966_vm2, %v1546_v9 }
 0x643   : > { %9961 = vmatpush3.msra.mxu1 %v676_v20 }
 0x663   : > { %v1810_v10 = vpop.xlane.xlu1 %1809 }
 0x664   : > { %v1814_v11 = vsub.f32 %v1800_v58, %v1810_v10 }
 0x665   : > { %v1813_v12 = vpop.xlane.xlu0 %1812 }
 0x666   : > { %v1816_v13 = vmul.f32 1.442695, %v1814_v11  ;;  %v1815_v14 = vsub.f32 %v1805_v59, %v1813_v12 }
 0x668   : > { %10660 = vpow2.f32 %v1816_v13  ;;  %v1818_v15 = vmul.f32 1.442695, %v1815_v14  ;;  %v2036_v14 = vlaneseq }
 0x66a   : > { %10662 = vpow2.f32 %v1818_v15  ;;  %v2037_v15 = vshrl.u32 %v2036_v14, 7 }
 0x66c   : > { %v11270_v20 = vsub.s32 1, %v2037_v15 }
 0x675   : > { %v10661_v16 = vpop.eup %10660 }
 0x676   : > { %v1820_v17 = vsel %vm966_vm2, %v10661_v16, 0.0 }
 0x677   : > { %v10663_v18 = vpop.eup %10662  ;;  %1821 = vadd.xlane.f32.xlu0 %v1820_v17  ;;  %v2008_v17 = vld [vmem:[%s12590_s7] sm:$0x3] }
 0x678   : > { %v1823_v19 = vsel %vm966_vm2, %v10663_v18, 0.0 }
 0x679   : > { %1824 = vadd.xlane.f32.xlu1 %v1823_v19 }
 0x68a   : > { %1830 = vrot.lane.b32.xlu1 %v11135_v49, %s12550_s24 }
 0x68d   : > { %1832 = vrot.lane.b32.xlu0 %v11133_v47, %s12550_s24  ;;  %s12594_s24 = smov 72  }
 0x700   : > { %v1822_v22 = vpop.xlane.xlu0 %1821 }
 0x701   : > { %10664 = vrcp.f32 %v1822_v22 }
 0x702   : > { %v9959_v23 = vpop.f32.mrf.mxu1  ;;  %v1825_v24 = vpop.xlane.xlu1 %1824 }
 0x703   : > { %10666 = vrcp.f32 %v1825_v24 }
 0x704   : > { %v1625_v25 = vpop.f32.mrf.mxu1  ;;  %v1833_v26 = vpop.permute.xlu0 %1832 }
 0x705   : > { %9962 = vmatprep.mubr.msk.f32.mxu1 %vm880_vm1, %v1625_v25  ;;  %9972 = vmatprep.subr.mxu1 %v1833_v26  ;;  %v2045_v25 = vrot.slane %v2008_v17, %v11270_v20 }
 0x706   : > { %9963 = vmatmul.mubr.msk.f32.vlgmr.msra.gmra.mxu1 %vm880_vm1, %v9959_v23  ;;  %v1831_v28 = vpop.permute.xlu1 %1830 }
 0x707   : > { %9973 = vmatpush3.msra.mxu1 %v1833_v26 }
 0x708   : > { %9974 = vmatprep.subr.mxu1 %v1831_v28 }
 0x709   : > { %9975 = vmatpush3.msra.mxu1 %v1831_v28 }
 0x70a   : > { %9979 = vmatprep.subr.mxu1 %v677_v31 }
 0x70e   : > { %v10665_v49 = vpop.eup %10664 }
 0x70f   : > { %v1828_v29 = vmul.f32 %v10665_v49, %v10661_v16  ;;  %v11264_v16 = vsub.s32 0, %v2037_v15 }
 0x710   : > { %v10667_v47 = vpop.eup %10666 }
 0x711   : > { %9976 = vmatprep.mubr.msk.f32.mxu1 %vm966_vm2, %v1828_v29  ;;  %v1829_v30 = vmul.f32 %v10667_v47, %v10663_v18  ;;  %v2039_v19 = vrot.slane %v2008_v17, %v11264_v16  ;;  %v2056_v29 = vld [vmem:[%s12589_s9 + $0x18] sm:$0xff]  ;;  %v2055_v47 = vld [vmem:[%s12589_s9 + $0x10] sm:$0xff] }
 0x713   : > { %9977 = vmatmul.mubr.msk.f32.vlgmr.msra.gmra.mxu1 %vm966_vm2, %v1829_v30  ;;  %v2054_v30 = vld [vmem:[%s12589_s9 + $0x8] sm:$0xff] }
 0x714   : > { %9980 = vmatpush3.msra.mxu1 %v677_v31  ;;  %v2053_v31 = vld [vmem:[%s12589_s9] sm:$0xff] }
 0x715   : > { %9995 = vmatprep.subr.mxu1 %v2060_v0 }
 0x7c6   : > { %v9964_v32 = vpop.f32.mrf.mxu1 }
 0x7c7   : > { %v1716_v34 = vadd.f32 %v9964_v32, %v11191_v36  ;;  %v9326_v32 = vld [vmem:[%s12588_s8 + $0x20] ss:$0 sm:$0xff] }
 0x7c8   : > { %v1706_v35 = vpop.f32.mrf.mxu1 }
 0x7c9   : > { %v1715_v38 = vadd.f32 %v1706_v35, %v1426_v33 }
 0x7d3   : > { %v9978_v39 = vpop.f32.mrf.mxu1 }
 0x7d5   : > { %v1908_v40 = vpop.f32.mrf.mxu1 }
 0x7d6   : > { %9981 = vmatprep.mubr.msk.f32.mxu1 %vm880_vm1, %v1908_v40 }
 0x7d7   : > { %9982 = vmatmul.mubr.msk.f32.vlgmr.msra.gmra.mxu1 %vm880_vm1, %v9978_v39 }
 0x7d8   : > { %9996 = vmatpush3.msra.mxu1 %v2060_v0 }
 0x7d9   : > { %9997 = vmatprep.subr.mxu1 %v2059_v1 }
 0x7da   : > { %9998 = vmatpush3.msra.mxu1 %v2059_v1 }
 0x7db   : > { %9999 = vmatprep.subr.mxu1 %v2058_v2 }
 0x7dc   : > { %10000 = vmatpush3.msra.mxu1 %v2058_v2 }
 0x7dd   : > { %10001 = vmatprep.subr.mxu1 %v2057_v3 }
 0x7de   : > { %10002 = vmatpush3.msra.mxu1 %v2057_v3 }
 0x7df   : > { %10003 = vmatprep.subr.mxu1 %v2056_v29 }
 0x7e0   : > { %10004 = vmatpush3.msra.mxu1 %v2056_v29 }
 0x7e1   : > { %10005 = vmatprep.subr.mxu1 %v2055_v47 }
 0x7e2   : > { %10006 = vmatpush3.msra.mxu1 %v2055_v47 }
 0x7e3   : > { %10007 = vmatprep.subr.mxu1 %v2054_v30 }
 0x7e4   : > { %10008 = vmatpush3.msra.mxu1 %v2054_v30 }
 0x7e5   : > { %10009 = vmatprep.subr.mxu1 %v2053_v31 }
 0x7e6   : > { %10010 = vmatpush3.msra.mxu1 %v2053_v31 }
 0x897   : > { %v9983_v42 = vpop.f32.mrf.mxu1 }
 0x898   : > { %v1999_v43 = vadd.f32 %v9983_v42, %v1716_v34 }
 0x899   : > { %v1989_v44 = vpop.f32.mrf.mxu1 }
 0x89a   : > { %v2005_v45 = vadd.f32 %v9325_v41, %v1999_v43  ;;  %v1998_v46 = vadd.f32 %v1989_v44, %v1715_v38 }
 0x89c   : > { %v2004_v37 = vadd.f32 %v9325_v41, %v1998_v46  ;;  %v2007_v36 = vadd.f32 %v2005_v45, %v11057_v5  ;;  %v9329_v41 = vld [vmem:[%s12589_s9 + $0x40] ss:$0 sm:$0xff] }
 0x89e   : > { %v2012_v48 = vsel %vm683_vm0, %v2007_v36, 0.0  ;;  %v2006_v50 = vadd.f32 %v2004_v37, %v11055_v4  ;;  %v2051_v4 = vld [vmem:[%s12588_s8 + $0x18] sm:$0xff] }
 0x89f   : > { %2013 = vadd.xlane.f32.xlu0 %v2012_v48  ;;  %9984 = vmatprep.subr.mxu0 %v2051_v4 }
 0x8a0   : > { %v2009_v51 = vsel %vm683_vm0, %v2006_v50, 0.0  ;;  %9985 = vmatpush3.msra.mxu0 %v2051_v4  ;;  %v9333_v4 = vld [vmem:[%s12583_s5 + $0x30] sm:$0xff] }
 0x8a1   : > { %2010 = vadd.xlane.f32.xlu1 %v2009_v51  ;;  %9986 = vmatprep.subr.mxu0 %v2050_v61 }
 0x8a2   : > { %9987 = vmatpush3.msra.mxu0 %v2050_v61  ;;  %v9332_v61 = vld [vmem:[%s12583_s5 + $0x28] sm:$0xff] }
 0x8a3   : > { %9988 = vmatprep.subr.mxu0 %v2049_v62 }
 0x8a4   : > { %9989 = vmatpush3.msra.mxu0 %v2049_v62 }
 0x8a5   : > { %9990 = vmatprep.subr.mxu0 %v2048_v63 }
 0x8a6   : > { %9991 = vmatpush3.msra.mxu0 %v2048_v63 }
 0x928   : > { %v2014_v52 = vpop.xlane.xlu0 %2013 }
 0x929   : > { %v2017_v53 = vmul.f32 0.03125, %v2014_v52 }
 0x92a   : > { %v2011_v54 = vpop.xlane.xlu1 %2010 }
 0x92b   : > { %v2019_v55 = vsub.f32 %v2007_v36, %v2017_v53  ;;  %v2016_v56 = vmul.f32 0.03125, %v2011_v54 }
 0x92d   : > { %v2018_v57 = vsub.f32 %v2006_v50, %v2016_v56  ;;  %v2021_v58 = vmul.f32 %v2019_v55, %v2019_v55 }
 0x92f   : > { %v2025_v59 = vsel %vm683_vm0, %v2021_v58, 0.0  ;;  %v2020_v60 = vmul.f32 %v2018_v57, %v2018_v57 }
 0x930   : > { %2026 = vadd.xlane.f32.xlu1 %v2025_v59 }
 0x931   : > { %v2022_v5 = vsel %vm683_vm0, %v2020_v60, 0.0  ;;  %v9335_v60 = vld [vmem:[%s12583_s5 + $0x40] sm:$0xff] }
 0x932   : > { %2023 = vadd.xlane.f32.xlu0 %v2022_v5  ;;  %v9334_v5 = vld [vmem:[%s12583_s5 + $0x38] sm:$0xff]  ;;  %10014 = vmatprep.subr.mxu0 %v9335_v60 }
 0x9b9   : > { %v2027_v8 = vpop.xlane.xlu1 %2026 }
 0x9ba   : > { %v2029_v9 = vmul.f32 0.03125, %v2027_v8  ;;  %v2062_v8 = vld [vmem:[%s12529_s10] sm:$0x3] }
 0x9bb   : > { %v2024_v10 = vpop.xlane.xlu0 %2023 }
 0x9bc   : > { %v2031_v11 = vadd.f32 1e-05, %v2029_v9  ;;  %v2028_v12 = vmul.f32 0.03125, %v2024_v10  ;;  %v2267_v9 = vrot.slane %v2062_v8, %v11264_v16 }
 0x9be   : > { %10668 = vrsqrt.f32 %v2031_v11  ;;  %v2030_v13 = vadd.f32 1e-05, %v2028_v12 }
 0x9c0   : > { %10670 = vrsqrt.f32 %v2030_v13  ;;  %v2273_v13 = vrot.slane %v2062_v8, %v11270_v20 }
 0x9cb   : > { %v10669_v18 = vpop.eup %10668 }
 0x9cc   : > { %v2035_v21 = vmul.f32 %v10669_v18, %v2019_v55 }
 0x9cd   : > { %v10671_v22 = vpop.eup %10670 }
 0x9ce   : > { %v2034_v23 = vmul.f32 %v10671_v22, %v2018_v57  ;;  %v2041_v24 = vmul.f32 %v2039_v19, %v2035_v21 }
 0x9d0   : > { %v2040_v26 = vmul.f32 %v2039_v19, %v2034_v23  ;;  %v2047_v49 = vadd.f32 %v2045_v25, %v2041_v24  ;;  %v11331_v23 = vld [vmem:[%s12583_s5 + $0x48] ss:$0 sm:$0xff]  ;;  %s12596_s5 = sld [smem:[#allocation14_spill]] }
 0x9d2   : > { %v2046_v28 = vadd.f32 %v2045_v25, %v2040_v26 }
 0x9d4   : > { %9992 = vmatprep.mubr.msk.f32.mxu0 %vm683_vm0, %v2046_v28 }
 0x9d5   : > { %9993 = vmatmul.mubr.msk.f32.vlgmr.msra.gmra.mxu0 %vm683_vm0, %v2047_v49 }
 0x9d6   : > { %10015 = vmatpush3.msra.mxu0 %v9335_v60 }
 0x9d7   : > { %10016 = vmatprep.subr.mxu0 %v9334_v5 }
 0x9d8   : > { %10017 = vmatpush3.msra.mxu0 %v9334_v5 }
 0x9d9   : > { %10018 = vmatprep.subr.mxu0 %v9333_v4 }
 0x9da   : > { %10019 = vmatpush3.msra.mxu0 %v9333_v4 }
 0x9db   : > { %10020 = vmatprep.subr.mxu0 %v9332_v61 }
 0x9dc   : > { %10021 = vmatpush3.msra.mxu0 %v9332_v61 }
 0xa95   : > { %v9994_v33 = vpop.f32.mrf.mxu0 }
 0xa96   : > { %v2145_v34 = vadd.f32 %v9994_v33, %v9326_v32 }
 0xa97   : > { %v2139_v35 = vpop.f32.mrf.mxu0 }
 0xa98   : > { %v2140_v38 = vadd.f32 %v9326_v32, %v2139_v35  ;;  %v2149_v40 = vmax.f32 %v2145_v34, 0.0 }
 0xa9a   : > { %v2148_v39 = vmax.f32 %v2140_v38, 0.0 }
 0xa9c   : > { %10011 = vmatprep.mubr.msk.f32.mxu1 %vm2154_vm3, %v2148_v39 }
 0xa9d   : > { %10012 = vmatmul.mubr.msk.f32.vlgmr.msra.gmra.mxu1 %vm2154_vm3, %v2149_v40 }
 0xb5d   : > { %v10013_v42 = vpop.f32.mrf.mxu1 }
 0xb5e   : > { %v2233_v43 = vadd.f32 %v10013_v42, %v9329_v41 }
 0xb5f   : > { %v2227_v44 = vpop.f32.mrf.mxu1 }
 0xb60   : > { %v2228_v45 = vadd.f32 %v9329_v41, %v2227_v44  ;;  %v2237_v46 = vadd.f32 %v2233_v43, %v2047_v49 }
 0xb62   : > { %v2241_v37 = vsel %vm683_vm0, %v2237_v46, 0.0  ;;  %v2236_v36 = vadd.f32 %v2228_v45, %v2046_v28 }
 0xb63   : > { %2242 = vadd.xlane.f32.xlu1 %v2241_v37 }
 0xb64   : > { %v2238_v48 = vsel %vm683_vm0, %v2236_v36, 0.0 }
 0xb65   : > { %2239 = vadd.xlane.f32.xlu0 %v2238_v48 }
 0xbec   : > { %v2243_v50 = vpop.xlane.xlu1 %2242 }
 0xbed   : > { %v2245_v51 = vmul.f32 0.03125, %v2243_v50 }
 0xbee   : > { %v2240_v52 = vpop.xlane.xlu0 %2239 }
 0xbef   : > { %v2247_v53 = vsub.f32 %v2237_v46, %v2245_v51  ;;  %v2244_v54 = vmul.f32 0.03125, %v2240_v52 }
 0xbf1   : > { %v2246_v55 = vsub.f32 %v2236_v36, %v2244_v54  ;;  %v2249_v56 = vmul.f32 %v2247_v53, %v2247_v53 }
 0xbf3   : > { %v2253_v57 = vsel %vm683_vm0, %v2249_v56, 0.0  ;;  %v2248_v58 = vmul.f32 %v2246_v55, %v2246_v55 }
 0xbf4   : > { %2254 = vadd.xlane.f32.xlu1 %v2253_v57 }
 0xbf5   : > { %v2250_v59 = vsel %vm683_vm0, %v2248_v58, 0.0 }
 0xbf6   : > { %2251 = vadd.xlane.f32.xlu0 %v2250_v59 }
 0xc7d   : > { %v2255_v62 = vpop.xlane.xlu1 %2254 }
 0xc7e   : > { %v2257_v63 = vmul.f32 0.03125, %v2255_v62 }
 0xc7f   : > { %v2252_v0 = vpop.xlane.xlu0 %2251 }
 0xc80   : > { %v2259_v1 = vadd.f32 1e-05, %v2257_v63  ;;  %v2256_v2 = vmul.f32 0.03125, %v2252_v0 }
 0xc82   : > { %10672 = vrsqrt.f32 %v2259_v1  ;;  %v2258_v3 = vadd.f32 1e-05, %v2256_v2 }
 0xc84   : > { %10674 = vrsqrt.f32 %v2258_v3 }
 0xc8f   : > { %v10673_v10 = vpop.eup %10672 }
 0xc90   : > { %v2263_v11 = vmul.f32 %v10673_v10, %v2247_v53 }
 0xc91   : > { %v10675_v12 = vpop.eup %10674 }
 0xc92   : > { %v2262_v14 = vmul.f32 %v10675_v12, %v2246_v55  ;;  %v2269_v15 = vmul.f32 %v2267_v9, %v2263_v11 }
 0xc94   : > { %v2268_v17 = vmul.f32 %v2267_v9, %v2262_v14  ;;  %v11316_v18 = vadd.f32 %v2273_v13, %v2269_v15 }
 0xc96   : > { %v11318_v19 = vadd.f32 %v2273_v13, %v2268_v17  ;;  %v2277_v22 = vadd.f32 %v11316_v18, %v11063_v7 }
 0xc98   : > { %v2276_v21 = vadd.f32 %v11318_v19, %v11060_v6 }
 0xc9a   : > { %10022 = vmatprep.mubr.msk.f32.mxu0 %vm683_vm0, %v2276_v21 }
 0xc9b   : > { %10023 = vmatmul.mubr.msk.f32.vlgmr.msra.gmra.mxu0 %vm683_vm0, %v2277_v22 }
 0xc9c   : > { %10033 = vmatprep.mubr.msk.f32.mxu0 %vm683_vm0, %v11318_v19 }
 0xd5b   : > { %v10024_v24 = vpop.f32.mrf.mxu0 }
 0xd5c   : > { %v11334_v25 = vadd.f32 %v10024_v24, %v11331_v23 }
 0xd5d   : > { %v2366_v6 = vpop.f32.mrf.mxu0 }
 0xd5e   : > { %v11337_v26 = vadd.f32 %v11331_v23, %v2366_v6  ;;  %2482 = vrot.lane.b32.xlu0 %v11334_v25, %s12562_s29  ;;  %v11353_v28 = vmul.f32 0.35355338, %v11334_v25 }
 0xd60   : > { %2480 = vrot.lane.b32.xlu1 %v11337_v26, %s12562_s29  ;;  %v11344_v7 = vmul.f32 0.35355338, %v11337_v26 }
 0xd62   : > { %2676 = vrot.lane.b32.xlu0 %v11337_v26, %s12558_s3  ;;  %10040 = vmatprep.mubr.msk.f32.mxu1 %vm880_vm1, %v11344_v7 }
 0xd64   : > { %2678 = vrot.lane.b32.xlu1 %v11334_v25, %s12558_s3  ;;  %s12601_s3 = smov 88  }
 0xd66   : > { %2674 = vrot.lane.b32.xlu0 %v11353_v28, %s12560_s30 }
 0xd68   : > { %2672 = vrot.lane.b32.xlu1 %v11344_v7, %s12560_s30 }
 0xd6a   : > { %2385 = vrot.lane.b32.xlu0 %v9334_v5, %s12591_s1 }
 0xd6c   : > { %2387 = vrot.lane.b32.xlu1 %v9335_v60, %s12591_s1 }
 0xd6e   : > { %2381 = vrot.lane.b32.xlu0 %v9332_v61, %s12591_s1 }
 0xd70   : > { %2383 = vrot.lane.b32.xlu1 %v9333_v4, %s12591_s1 }
 0xdd0   : > { %v2483_v49 = vpop.permute.xlu0 %2482 }
 0xdd1   : > { %10036 = vmatprep.subr.msk.mxu1 %vm880_vm1, %v2483_v49 }
 0xdd2   : > { %10037 = vmatpush3.xpose.msk.msra.mxu1 %vm880_vm1, %v2483_v49  ;;  %v2481_v29 = vpop.permute.xlu1 %2480 }
 0xdd3   : > { %10038 = vmatprep.subr.msk.mxu1 %vm880_vm1, %v2481_v29 }
 0xdd4   : > { %v2677_v47 = vpop.permute.xlu0 %2676 }
 0xdd6   : > { %10039 = vmatpush3.xpose.msk.msra.mxu1 %vm880_vm1, %v2481_v29  ;;  %v2679_v30 = vpop.permute.xlu1 %2678 }
 0xdd7   : > { %10050 = vmatprep.subr.msk.mxu1 %vm880_vm1, %v2679_v30 }
 0xdd8   : > { %v2675_v31 = vpop.permute.xlu0 %2674 }
 0xdd9   : > { %10041 = vmatmul.mubr.msk.f32.vlgmr.msra.gmra.mxu1 %vm880_vm1, %v11353_v28 }
 0xdda   : > { %v2673_v32 = vpop.permute.xlu1 %2672  ;;  %10051 = vmatpush3.xpose.msk.msra.mxu1 %vm880_vm1, %v2679_v30  ;;  %v9337_v30 = vld [vmem:[%s12587_s6 + $0x28] sm:$0xff] }
 0xddb   : > { %10052 = vmatprep.subr.msk.mxu1 %vm880_vm1, %v2677_v47  ;;  %10054 = vmatprep.mubr.msk.f32.mxu1 %vm880_vm1, %v2673_v32 }
 0xddc   : > { %v2386_v33 = vpop.permute.xlu0 %2385 }
 0xdde   : > { %v2388_v34 = vpop.permute.xlu1 %2387  ;;  %10053 = vmatpush3.xpose.msk.msra.mxu1 %vm880_vm1, %v2677_v47 }
 0xddf   : > { %10025 = vmatprep.subr.mxu0 %v2388_v34  ;;  %10069 = vmatprep.subr.mxu1 %v9337_v30 }
 0xde0   : > { %10026 = vmatpush3.msra.mxu0 %v2388_v34  ;;  %v2382_v38 = vpop.permute.xlu0 %2381 }
 0xde1   : > { %10027 = vmatprep.subr.mxu0 %v2386_v33  ;;  %10055 = vmatmul.mubr.msk.f32.vlgmr.msra.gmra.mxu1 %vm880_vm1, %v2675_v31 }
 0xde2   : > { %10028 = vmatpush3.msra.mxu0 %v2386_v33  ;;  %v2384_v35 = vpop.permute.xlu1 %2383  ;;  %10070 = vmatpush3.msra.mxu1 %v9337_v30 }
 0xde3   : > { %10029 = vmatprep.subr.mxu0 %v2384_v35 }
 0xde4   : > { %10030 = vmatpush3.msra.mxu0 %v2384_v35 }
 0xde5   : > { %10031 = vmatprep.subr.mxu0 %v2382_v38 }
 0xde6   : > { %10032 = vmatpush3.msra.mxu0 %v2382_v38 }
 0xde7   : > { %10034 = vmatmul.mubr.msk.f32.vlgmr.msra.gmra.mxu0 %vm683_vm0, %v11316_v18 }
 0xe99   : > { %v10042_v39 = vpop.f32.mrf.mxu1 }
 0xe9a   : > { %v2566_v40 = vadd.f32 %v10042_v39, %v11122_v27 }
 0xe9b   : > { %v2560_v41 = vpop.f32.mrf.mxu1 }
 0xe9c   : > { %v2561_v42 = vadd.f32 %v11122_v27, %v2560_v41  ;;  %v2572_v43 = vsel %vm966_vm2, %v2566_v40, -inf }
 0xe9d   : > { %2573 = vmax.xlane.f32.xlu0 %v2572_v43 }
 0xe9e   : > { %v2569_v44 = vsel %vm966_vm2, %v2561_v42, -inf }
 0xe9f   : > { %2570 = vmax.xlane.f32.xlu1 %v2569_v44 }
 0xea1   : > { %v10056_v45 = vpop.f32.mrf.mxu1 }
 0xea2   : > { %v2760_v46 = vadd.f32 %v10056_v45, %v11122_v27 }
 0xea3   : > { %v2754_v37 = vpop.f32.mrf.mxu1 }
 0xea4   : > { %v2755_v36 = vadd.f32 %v11122_v27, %v2754_v37  ;;  %v2766_v48 = vsel %vm966_vm2, %v2760_v46, -inf }
 0xea5   : > { %2767 = vmax.xlane.f32.xlu1 %v2766_v48  ;;  %v10792_v48 = vld [vmem:[%s11119_s26] ss:$0 sm:$0xff] }
 0xea6   : > { %v2763_v50 = vsel %vm966_vm2, %v2755_v36, -inf }
 0xea7   : > { %2764 = vmax.xlane.f32.xlu0 %v2763_v50  ;;  %v10035_v27 = vpop.f32.mrf.mxu0 }
 0xea9   : > { %v2469_v61 = vpop.f32.mrf.mxu0 }
 0xebd   : > { %2394 = vrot.lane.b32.xlu0 %v11331_v23, %s12591_s1 }
 0xf26   : > { %v2574_v51 = vpop.xlane.xlu0 %2573 }
 0xf27   : > { %v2576_v52 = vsub.f32 %v2566_v40, %v2574_v51 }
 0xf28   : > { %v2571_v53 = vpop.xlane.xlu1 %2570 }
 0xf29   : > { %v2579_v54 = vmul.f32 1.442695, %v2576_v52  ;;  %v2575_v55 = vsub.f32 %v2561_v42, %v2571_v53 }
 0xf2b   : > { %10676 = vpow2.f32 %v2579_v54  ;;  %v2577_v56 = vmul.f32 1.442695, %v2575_v55 }
 0xf2d   : > { %10678 = vpow2.f32 %v2577_v56 }
 0xf2e   : > { %v2768_v57 = vpop.xlane.xlu1 %2767 }
 0xf2f   : > { %v2770_v58 = vsub.f32 %v2760_v46, %v2768_v57 }
 0xf30   : > { %v2765_v59 = vpop.xlane.xlu0 %2764 }
 0xf31   : > { %v2773_v60 = vmul.f32 1.442695, %v2770_v58  ;;  %v2769_v5 = vsub.f32 %v2755_v36, %v2765_v59 }
 0xf33   : > { %10680 = vpow2.f32 %v2773_v60  ;;  %v2771_v4 = vmul.f32 1.442695, %v2769_v5 }
 0xf34   : > { %v2395_v62 = vpop.permute.xlu0 %2394 }
 0xf35   : > { %10682 = vpow2.f32 %v2771_v4  ;;  %v11387_v63 = vadd.f32 %v2469_v61, %v2395_v62  ;;  %v11389_v0 = vadd.f32 %v10035_v27, %v2395_v62 }
 0xf37   : > { %10043 = vmatprep.subr.mxu0 %v11389_v0  ;;  %2787 = vrot.lane.b32.xlu0 %v11387_v63, %s12560_s30 }
 0xf38   : > { %v10677_v1 = vpop.eup %10676  ;;  %10044 = vmatpush3.msra.mxu0 %v11389_v0 }
 0xf39   : > { %10045 = vmatprep.subr.mxu0 %v11387_v63  ;;  %v2584_v2 = vsel %vm966_vm2, %v10677_v1, 0.0 }
 0xf3a   : > { %v10679_v3 = vpop.eup %10678  ;;  %10046 = vmatpush3.msra.mxu0 %v11387_v63  ;;  %2585 = vadd.xlane.f32.xlu1 %v2584_v2 }
 0xf3b   : > { %3042 = vrot.lane.b32.xlu0 %v11334_v25, %s12592_s0  ;;  %v2581_v8 = vsel %vm966_vm2, %v10679_v3, 0.0 }
 0xf3e   : > { %2582 = vadd.xlane.f32.xlu1 %v2581_v8 }
 0xf3f   : > { %3040 = vrot.lane.b32.xlu0 %v11337_v26, %s12592_s0 }
 0xf40   : > { %v10681_v9 = vpop.eup %10680 }
 0xf41   : > { %v2778_v10 = vsel %vm966_vm2, %v10681_v9, 0.0 }
 0xf42   : > { %v10683_v11 = vpop.eup %10682  ;;  %2779 = vadd.xlane.f32.xlu1 %v2778_v10 }
 0xf43   : > { %3036 = vrot.lane.b32.xlu0 %v11344_v7, %s12593_s27  ;;  %v2775_v12 = vsel %vm966_vm2, %v10683_v11, 0.0 }
 0xf46   : > { %2776 = vadd.xlane.f32.xlu1 %v2775_v12 }
 0xf47   : > { %3325 = vrot.lane.b32.xlu0 %v11334_v25, %s12594_s24 }
 0xf4b   : > { %3319 = vrot.lane.b32.xlu0 %v11344_v7, %s12595_s28 }
 0xf57   : > { %2789 = vrot.lane.b32.xlu1 %v11389_v0, %s12560_s30 }
 0xf5b   : > { %3038 = vrot.lane.b32.xlu1 %v11353_v28, %s12593_s27 }
 0xf5f   : > { %3323 = vrot.lane.b32.xlu1 %v11337_v26, %s12594_s24  ;;  %v9338_v26 = vld [vmem:[%s12587_s6 + $0x30] sm:$0xff] }
 0xf63   : > { %3321 = vrot.lane.b32.xlu1 %v11353_v28, %s12595_s28 }
 0xfa9   : > { %v2788_v6 = vpop.permute.xlu0 %2787 }
 0xfad   : > { %v3043_v47 = vpop.permute.xlu0 %3042 }
 0xfb1   : > { %v3041_v32 = vpop.permute.xlu0 %3040 }
 0xfb5   : > { %v3037_v34 = vpop.permute.xlu0 %3036 }
 0xfb9   : > { %v3326_v39 = vpop.permute.xlu0 %3325 }
 0xfbd   : > { %v3320_v41 = vpop.permute.xlu0 %3319 }
 0xfc3   : > { %v2586_v13 = vpop.xlane.xlu1 %2585 }
 0xfc4   : > { %10684 = vrcp.f32 %v2586_v13 }
 0xfc7   : > { %v2583_v14 = vpop.xlane.xlu1 %2582 }
 0xfc8   : > { %10686 = vrcp.f32 %v2583_v14 }
 0xfcb   : > { %v2780_v15 = vpop.xlane.xlu1 %2779 }
 0xfcc   : > { %10688 = vrcp.f32 %v2780_v15 }
 0xfcf   : > { %v2777_v17 = vpop.xlane.xlu1 %2776 }
 0xfd0   : > { %10690 = vrcp.f32 %v2777_v17 }
 0xfd1   : > { %v10685_v22 = vpop.eup %10684 }
 0xfd2   : > { %v2590_v25 = vmul.f32 %v10685_v22, %v10677_v1 }
 0xfd3   : > { %v2790_v21 = vpop.permute.xlu1 %2789 }
 0xfd4   : > { %10057 = vmatprep.subr.mxu0 %v2790_v21 }
 0xfd5   : > { %v10687_v23 = vpop.eup %10686 }
 0xfd6   : > { %v2589_v24 = vmul.f32 %v10687_v23, %v10679_v3  ;;  %v9339_v23 = vld [vmem:[%s12587_s6 + $0x38] sm:$0xff] }
 0xfd7   : > { %v3039_v40 = vpop.permute.xlu1 %3038 }
 0xfd8   : > { %10047 = vmatprep.mubr.msk.f32.mxu0 %vm966_vm2, %v2589_v24 }
 0xfd9   : > { %10048 = vmatmul.mubr.msk.f32.vlgmr.msra.gmra.mxu0 %vm966_vm2, %v2590_v25  ;;  %v10689_v7 = vpop.eup %10688 }
 0xfda   : > { %10058 = vmatpush3.msra.mxu0 %v2790_v21  ;;  %v2784_v29 = vmul.f32 %v10689_v7, %v10681_v9 }
 0xfdb   : > { %10059 = vmatprep.subr.mxu0 %v2788_v6  ;;  %v3324_v42 = vpop.permute.xlu1 %3323 }
 0xfdc   : > { %10060 = vmatpush3.msra.mxu0 %v2788_v6 }
 0xfdd   : > { %v10691_v28 = vpop.eup %10690  ;;  %10064 = vmatprep.subr.mxu0 %v9338_v26 }
 0xfde   : > { %v2783_v49 = vmul.f32 %v10691_v28, %v10683_v11 }
 0xfdf   : > { %v3322_v43 = vpop.permute.xlu1 %3321 }
 0xfe0   : > { %10061 = vmatprep.mubr.msk.f32.mxu0 %vm966_vm2, %v2783_v49 }
 0xfe1   : > { %10062 = vmatmul.mubr.msk.f32.vlgmr.msra.gmra.mxu0 %vm966_vm2, %v2784_v29 }
 0xfe2   : > { %10065 = vmatpush3.msra.mxu0 %v9338_v26 }
 0xfe3   : > { %10074 = vmatprep.subr.msk.mxu0 %vm880_vm1, %v3043_v47 }
0x1099   : > { %v10049_v31 = vpop.f32.mrf.mxu0 }
0x109b   : > { %v2663_v33 = vpop.f32.mrf.mxu0 }
0x109c   : > { %10071 = vmatprep.mubr.msk.f32.mxu1 %vm880_vm1, %v2663_v33 }
0x109d   : > { %10072 = vmatmul.mubr.msk.f32.vlgmr.msra.gmra.mxu1 %vm880_vm1, %v10049_v31 }
0x10a1   : > { %v10063_v35 = vpop.f32.mrf.mxu0 }
0x10a3   : > { %v2865_v38 = vpop.f32.mrf.mxu0 }
0x10a4   : > { %10066 = vmatprep.mubr.msk.f32.mxu0 %vm880_vm1, %v2865_v38 }
0x10a5   : > { %10067 = vmatmul.mubr.msk.f32.vlgmr.msra.gmra.mxu0 %vm880_vm1, %v10063_v35 }
0x10a6   : > { %10075 = vmatpush3.xpose.msk.msra.mxu0 %vm880_vm1, %v3043_v47  ;;  %10078 = vmatprep.mubr.msk.f32.mxu0 %vm880_vm1, %v3037_v34 }
0x10a7   : > { %10076 = vmatprep.subr.msk.mxu0 %vm880_vm1, %v3041_v32 }
0x10aa   : > { %10077 = vmatpush3.xpose.msk.msra.mxu0 %vm880_vm1, %v3041_v32 }
0x10ab   : > { %10093 = vmatprep.subr.msk.mxu0 %vm880_vm1, %v3326_v39 }
0x10ad   : > { %10079 = vmatmul.mubr.msk.f32.vlgmr.msra.gmra.mxu0 %vm880_vm1, %v3039_v40 }
0x10ae   : > { %10094 = vmatpush3.xpose.msk.msra.mxu0 %vm880_vm1, %v3326_v39  ;;  %10097 = vmatprep.mubr.msk.f32.mxu0 %vm880_vm1, %v3320_v41  ;;  %v9340_v41 = vld [vmem:[%s12587_s6 + $0x40] sm:$0xff] }
0x10af   : > { %10095 = vmatprep.subr.msk.mxu0 %vm880_vm1, %v3324_v42 }
0x10b2   : > { %10096 = vmatpush3.xpose.msk.msra.mxu0 %vm880_vm1, %v3324_v42 }
0x10b5   : > { %10098 = vmatmul.mubr.msk.f32.vlgmr.msra.gmra.mxu0 %vm880_vm1, %v3322_v43 }
0x115d   : > { %v10073_v44 = vpop.f32.mrf.mxu1 }
0x115f   : > { %v3027_v31 = vpop.f32.mrf.mxu1 }
0x1165   : > { %v10068_v45 = vpop.f32.mrf.mxu0 }
0x1166   : > { %v11445_v46 = vadd.f32 %v10073_v44, %v10068_v45 }
0x1167   : > { %v11447_v37 = vpop.f32.mrf.mxu0 }
0x1168   : > { %v3028_v43 = vadd.f32 %v3027_v31, %v11447_v37 }
0x116d   : > { %v10080_v36 = vpop.f32.mrf.mxu0 }
0x116e   : > { %v3124_v50 = vadd.f32 %v10792_v48, %v10080_v36 }
0x116f   : > { %v3118_v51 = vpop.f32.mrf.mxu0 }
0x1170   : > { %v3119_v52 = vadd.f32 %v10792_v48, %v3118_v51  ;;  %v3130_v53 = vsel %vm966_vm2, %v3124_v50, -inf  ;;  %v9379_v51 = vld [vmem:[%s12587_s6 + $0x48] ss:$0 sm:$0xff]  ;;  %s12600_s6 = smov 120  }
0x1171   : > { %3131 = vmax.xlane.f32.xlu1 %v3130_v53 }
0x1172   : > { %v3127_v54 = vsel %vm966_vm2, %v3119_v52, -inf }
0x1173   : > { %3128 = vmax.xlane.f32.xlu0 %v3127_v54 }
0x1175   : > { %v10099_v55 = vpop.f32.mrf.mxu0 }
0x1176   : > { %v3407_v13 = vadd.f32 %v10792_v48, %v10099_v55 }
0x1177   : > { %v3401_v56 = vpop.f32.mrf.mxu0 }
0x1178   : > { %v3402_v57 = vadd.f32 %v10792_v48, %v3401_v56  ;;  %v3413_v15 = vsel %vm966_vm2, %v3407_v13, -inf }
0x117a   : > { %v3410_v58 = vsel %vm966_vm2, %v3402_v57, -inf }
0x1182   : > { %3151 = vrot.lane.b32.xlu1 %v11389_v0, %s12593_s27 }
0x11a6   : > { %3411 = vmax.xlane.f32.xlu1 %v3410_v58 }
0x11fa   : > { %v3132_v27 = vpop.xlane.xlu1 %3131 }
0x11fb   : > { %v3134_v59 = vsub.f32 %v3124_v50, %v3132_v27 }
0x11fc   : > { %v3129_v60 = vpop.xlane.xlu0 %3128 }
0x11fd   : > { %v3137_v5 = vmul.f32 1.442695, %v3134_v59  ;;  %v3133_v4 = vsub.f32 %v3119_v52, %v3129_v60 }
0x11fe   : > { %v3152_v61 = vpop.permute.xlu1 %3151 }
0x11ff   : > { %10692 = vpow2.f32 %v3137_v5  ;;  %v3135_v62 = vmul.f32 1.442695, %v3133_v4  ;;  %10081 = vmatprep.subr.mxu1 %v3152_v61 }
0x1200   : > { %10082 = vmatpush3.msra.mxu1 %v3152_v61 }
0x1201   : > { %10694 = vpow2.f32 %v3135_v62 }
0x120c   : > { %v10693_v1 = vpop.eup %10692 }
0x120d   : > { %v3142_v2 = vsel %vm966_vm2, %v10693_v1, 0.0 }
0x120e   : > { %v10695_v3 = vpop.eup %10694  ;;  %3143 = vadd.xlane.f32.xlu0 %v3142_v2 }
0x120f   : > { %v3139_v8 = vsel %vm966_vm2, %v10695_v3, 0.0 }
0x1212   : > { %3140 = vadd.xlane.f32.xlu0 %v3139_v8  ;;  %v9383_v8 = vld [vmem:[%s12588_s8 + $0x38] sm:$0xff] }
0x1228   : > { %3149 = vrot.lane.b32.xlu0 %v11387_v63, %s12593_s27 }
0x122f   : > { %v3412_v9 = vpop.xlane.xlu1 %3411 }
0x1230   : > { %v3416_v10 = vsub.f32 %v3402_v57, %v3412_v9  ;;  %v9382_v9 = vld [vmem:[%s12588_s8 + $0x30] sm:$0xff] }
0x1232   : > { %v3418_v11 = vmul.f32 1.442695, %v3416_v10  ;;  %v9381_v10 = vld [vmem:[%s12588_s8 + $0x28] sm:$0xff] }
0x1234   : > { %10696 = vpow2.f32 %v3418_v11  ;;  %v10868_v11 = vmov 0.0  }
0x1241   : > { %v10697_v12 = vpop.eup %10696 }
0x1242   : > { %v3422_v14 = vsel %vm966_vm2, %v10697_v12, 0.0 }
0x1243   : > { %3423 = vadd.xlane.f32.xlu1 %v3422_v14  ;;  %v3886_v14 = vld [vmem:[%s12530_s11 + $0x8] sm:$0xff] }
0x1247   : > { %3414 = vmax.xlane.f32.xlu0 %v3413_v15  ;;  %v3885_v15 = vld [vmem:[%s12530_s11] sm:$0xff] }
0x1254   : > { %3434 = vrot.lane.b32.xlu1 %v11389_v0, %s12595_s28 }
0x1297   : > { %v3144_v17 = vpop.xlane.xlu0 %3143 }
0x1298   : > { %10698 = vrcp.f32 %v3144_v17  ;;  %v9393_v17 = vld [vmem:[%s12589_s9 + $0x80] sm:$0xff] }
0x129b   : > { %v3141_v21 = vpop.xlane.xlu0 %3140 }
0x129c   : > { %10700 = vrcp.f32 %v3141_v21  ;;  %v9392_v21 = vld [vmem:[%s12589_s9 + $0x78] sm:$0xff] }
0x129f   : > { %v3150_v22 = vpop.permute.xlu0 %3149 }
0x12a0   : > { %10083 = vmatprep.subr.mxu1 %v3150_v22 }
0x12a1   : > { %10084 = vmatpush3.msra.mxu1 %v3150_v22  ;;  %v9391_v22 = vld [vmem:[%s12589_s9 + $0x70] sm:$0xff] }
0x12a2   : > { %10088 = vmatprep.subr.mxu1 %v9339_v23 }
0x12a5   : > { %v10699_v24 = vpop.eup %10698 }
0x12a6   : > { %v3148_v26 = vmul.f32 %v10699_v24, %v10693_v1 }
0x12a9   : > { %v10701_v25 = vpop.eup %10700 }
0x12aa   : > { %v3147_v6 = vmul.f32 %v10701_v25, %v10695_v3 }
0x12ac   : > { %10085 = vmatprep.mubr.msk.f32.mxu1 %vm966_vm2, %v3147_v6 }
0x12ad   : > { %10086 = vmatmul.mubr.msk.f32.vlgmr.msra.gmra.mxu1 %vm966_vm2, %v3148_v26 }
0x12ae   : > { %10089 = vmatpush3.msra.mxu1 %v9339_v23  ;;  %v9390_v23 = vld [vmem:[%s12589_s9 + $0x68] sm:$0xff] }
0x12cc   : > { %v3424_v0 = vpop.xlane.xlu1 %3423 }
0x12d0   : > { %v3415_v7 = vpop.xlane.xlu0 %3414  ;;  %v3435_v28 = vpop.permute.xlu1 %3434 }
0x12d1   : > { %v3417_v49 = vsub.f32 %v3407_v13, %v3415_v7  ;;  %10100 = vmatprep.subr.mxu1 %v3435_v28  ;;  %v3887_v13 = vld [vmem:[%s12530_s11 + $0x10] sm:$0xff] }
0x12d3   : > { %v3420_v29 = vmul.f32 1.442695, %v3417_v49 }
0x12d5   : > { %10702 = vpow2.f32 %v3420_v29 }
0x12d6   : > { %10704 = vrcp.f32 %v3424_v0 }
0x12e2   : > { %v10703_v47 = vpop.eup %10702 }
0x12e3   : > { %v3425_v30 = vsel %vm966_vm2, %v10703_v47, 0.0  ;;  %v10705_v32 = vpop.eup %10704 }
0x12e4   : > { %3426 = vadd.xlane.f32.xlu0 %v3425_v30  ;;  %v3430_v38 = vmul.f32 %v10705_v32, %v10697_v12  ;;  %v3888_v12 = vld [vmem:[%s12530_s11 + $0x18] sm:$0xff] }
0x12fa   : > { %3432 = vrot.lane.b32.xlu0 %v11387_v63, %s12595_s28 }
0x136d   : > { %v3427_v33 = vpop.xlane.xlu0 %3426  ;;  %v10087_v34 = vpop.f32.mrf.mxu1 }
0x136e   : > { %10706 = vrcp.f32 %v3427_v33 }
0x136f   : > { %v3227_v35 = vpop.f32.mrf.mxu1 }
0x1370   : > { %10090 = vmatprep.mubr.msk.f32.mxu1 %vm880_vm1, %v3227_v35 }
0x1371   : > { %v3433_v39 = vpop.permute.xlu0 %3432  ;;  %10091 = vmatmul.mubr.msk.f32.vlgmr.msra.gmra.mxu1 %vm880_vm1, %v10087_v34 }
0x1372   : > { %10101 = vmatpush3.msra.mxu1 %v3435_v28  ;;  %10104 = vmatprep.mubr.msk.f32.mxu1 %vm966_vm2, %v3430_v38  ;;  %v9380_v28 = vld [vmem:[%s12590_s7 + $0x2] sm:$0x3] }
0x1373   : > { %10102 = vmatprep.subr.mxu1 %v3433_v39  ;;  %v3641_v29 = vrot.slane %v9380_v28, %v11264_v16  ;;  %v3647_v33 = vrot.slane %v9380_v28, %v11270_v20 }
0x1374   : > { %10103 = vmatpush3.msra.mxu1 %v3433_v39  ;;  %v11550_v39 = vld [vmem:[%s12596_s5] sm:$0xff]  ;;  %s12599_s5 = smov 96  }
0x1375   : > { %10107 = vmatprep.subr.mxu1 %v9340_v41 }
0x137b   : > { %v10707_v40 = vpop.eup %10706 }
0x137c   : > { %v3431_v63 = vmul.f32 %v10707_v40, %v10703_v47  ;;  %v11555_v40 = vld [vmem:[%s12597_s23] sm:$0xff]  ;;  %s646_s23 = sand.u32 1, %s10850_s22  }
0x137d   : > { %s9282_s7 = sshll.u32 %s646_s23, 4 }
0x137e   : > { %10105 = vmatmul.mubr.msk.f32.vlgmr.msra.gmra.mxu1 %vm966_vm2, %v3431_v63  ;;  %v3884_v63 = vadd.f32 %v11555_v40, %v11550_v39 }
0x137f   : > { %10108 = vmatpush3.msra.mxu1 %v9340_v41  ;;  %v9389_v41 = vld [vmem:[%s12589_s9 + $0x60] sm:$0xff] }
0x1380   : > { %10123 = vmatprep.subr.mxu1 %v9393_v17 }
0x1431   : > { %v10092_v42 = vpop.f32.mrf.mxu1 }
0x1432   : > { %v3318_v44 = vadd.f32 %v10092_v42, %v11445_v46  ;;  %v9388_v42 = vld [vmem:[%s12589_s9 + $0x58] sm:$0xff] }
0x1433   : > { %v3308_v45 = vpop.f32.mrf.mxu1 }
0x1434   : > { %v3317_v36 = vadd.f32 %v3308_v45, %v3028_v43  ;;  %v9387_v43 = vld [vmem:[%s12589_s9 + $0x50] sm:$0xff] }
0x143e   : > { %v10106_v48 = vpop.f32.mrf.mxu1 }
0x1440   : > { %v3510_v50 = vpop.f32.mrf.mxu1 }
0x1441   : > { %10109 = vmatprep.mubr.msk.f32.mxu1 %vm880_vm1, %v3510_v50 }
0x1442   : > { %10110 = vmatmul.mubr.msk.f32.vlgmr.msra.gmra.mxu1 %vm880_vm1, %v10106_v48 }
0x1443   : > { %10124 = vmatpush3.msra.mxu1 %v9393_v17 }
0x1444   : > { %10125 = vmatprep.subr.mxu1 %v9392_v21 }
0x1445   : > { %10126 = vmatpush3.msra.mxu1 %v9392_v21 }
0x1446   : > { %10127 = vmatprep.subr.mxu1 %v9391_v22 }
0x1447   : > { %10128 = vmatpush3.msra.mxu1 %v9391_v22 }
0x1448   : > { %10129 = vmatprep.subr.mxu1 %v9390_v23 }
0x1449   : > { %10130 = vmatpush3.msra.mxu1 %v9390_v23 }
0x144a   : > { %10131 = vmatprep.subr.mxu1 %v9389_v41 }
0x144b   : > { %10132 = vmatpush3.msra.mxu1 %v9389_v41 }
0x144c   : > { %10133 = vmatprep.subr.mxu1 %v9388_v42 }
0x144d   : > { %10134 = vmatpush3.msra.mxu1 %v9388_v42 }
0x144e   : > { %10135 = vmatprep.subr.mxu1 %v9387_v43 }
0x144f   : > { %10136 = vmatpush3.msra.mxu1 %v9387_v43 }
0x1502   : > { %v10111_v52 = vpop.f32.mrf.mxu1 }
0x1503   : > { %v3601_v53 = vadd.f32 %v10111_v52, %v3318_v44  ;;  %v9386_v44 = vld [vmem:[%s12589_s9 + $0x48] sm:$0xff] }
0x1504   : > { %v3591_v54 = vpop.f32.mrf.mxu1  ;;  %10137 = vmatprep.subr.mxu1 %v9386_v44 }
0x1505   : > { %v3607_v55 = vadd.f32 %v9379_v51, %v3601_v53  ;;  %v3600_v56 = vadd.f32 %v3591_v54, %v3317_v36  ;;  %10138 = vmatpush3.msra.mxu1 %v9386_v44 }
0x1506   : > { %10164 = vmatprep.subr.mxu1 %v10868_v11 }
0x1507   : > { %v3606_v37 = vadd.f32 %v9379_v51, %v3600_v56  ;;  %v3609_v46 = vadd.f32 %v3607_v55, %v11316_v18  ;;  %v9396_v51 = vld [vmem:[%s12588_s8 + $0x48] ss:$0 sm:$0xff] }
0x1509   : > { %v3615_v57 = vsel %vm683_vm0, %v3609_v46, 0.0  ;;  %v3608_v58 = vadd.f32 %v3606_v37, %v11318_v19  ;;  %v9384_v19 = vld [vmem:[%s12588_s8 + $0x40] sm:$0xff] }
0x150a   : > { %3616 = vadd.xlane.f32.xlu0 %v3615_v57  ;;  %10112 = vmatprep.subr.mxu0 %v9384_v19 }
0x150b   : > { %v3612_v27 = vsel %vm683_vm0, %v3608_v58, 0.0  ;;  %10113 = vmatpush3.msra.mxu0 %v9384_v19 }
0x150c   : > { %3613 = vadd.xlane.f32.xlu1 %v3612_v27  ;;  %10114 = vmatprep.subr.mxu0 %v9383_v8 }
0x150d   : > { %10115 = vmatpush3.msra.mxu0 %v9383_v8 }
0x150e   : > { %10116 = vmatprep.subr.mxu0 %v9382_v9 }
0x150f   : > { %10117 = vmatpush3.msra.mxu0 %v9382_v9 }
0x1510   : > { %10118 = vmatprep.subr.mxu0 %v9381_v10 }
0x1511   : > { %10119 = vmatpush3.msra.mxu0 %v9381_v10 }
0x1512   : > { %10142 = vmatprep.subr.mxu0 %v10868_v11 }
0x1593   : > { %v3617_v59 = vpop.xlane.xlu0 %3616 }
0x1594   : > { %v3619_v60 = vmul.f32 0.03125, %v3617_v59 }
0x1595   : > { %v3614_v5 = vpop.xlane.xlu1 %3613 }
0x1596   : > { %v3621_v4 = vsub.f32 %v3609_v46, %v3619_v60  ;;  %v3618_v61 = vmul.f32 0.03125, %v3614_v5  ;;  %v9402_v46 = vld [vmem:[%s12530_s11 + $0x20] ss:$0 sm:$0xff] }
0x1598   : > { %v3620_v62 = vsub.f32 %v3608_v58, %v3618_v61  ;;  %v3623_v1 = vmul.f32 %v3621_v4, %v3621_v4 }
0x159a   : > { %v3627_v2 = vsel %vm683_vm0, %v3623_v1, 0.0  ;;  %v3622_v3 = vmul.f32 %v3620_v62, %v3620_v62 }
0x159b   : > { %3628 = vadd.xlane.f32.xlu0 %v3627_v2 }
0x159c   : > { %v3624_v18 = vsel %vm683_vm0, %v3622_v3, 0.0 }
0x159d   : > { %3625 = vadd.xlane.f32.xlu1 %v3624_v18 }
0x15ae   : > { %3983 = vrot.lane.b32.xlu1 %v3888_v12, %s12591_s1 }
0x15b1   : > { %3981 = vrot.lane.b32.xlu0 %v3887_v13, %s12591_s1 }
0x15b2   : > { %3979 = vrot.lane.b32.xlu1 %v3886_v14, %s12591_s1 }
0x15b5   : > { %3977 = vrot.lane.b32.xlu0 %v3885_v15, %s12591_s1 }
0x1624   : > { %v3629_v24 = vpop.xlane.xlu0 %3628 }
0x1625   : > { %v3631_v25 = vmul.f32 0.03125, %v3629_v24 }
0x1626   : > { %v3626_v6 = vpop.xlane.xlu1 %3625 }
0x1627   : > { %v3633_v26 = vadd.f32 1e-05, %v3631_v25  ;;  %v3630_v0 = vmul.f32 0.03125, %v3626_v6 }
0x1628   : > { %v3982_v36 = vpop.permute.xlu0 %3981 }
0x1629   : > { %10708 = vrsqrt.f32 %v3633_v26  ;;  %v3632_v7 = vadd.f32 1e-05, %v3630_v0 }
0x162a   : > { %v3984_v45 = vpop.permute.xlu1 %3983 }
0x162b   : > { %10710 = vrsqrt.f32 %v3632_v7 }
0x162c   : > { %v3978_v50 = vpop.permute.xlu0 %3977 }
0x162e   : > { %v3980_v48 = vpop.permute.xlu1 %3979 }
0x1636   : > { %v10709_v49 = vpop.eup %10708 }
0x1637   : > { %v3637_v47 = vmul.f32 %v10709_v49, %v3621_v4 }
0x1638   : > { %v10711_v30 = vpop.eup %10710 }
0x1639   : > { %v3636_v31 = vmul.f32 %v10711_v30, %v3620_v62  ;;  %v3643_v32 = vmul.f32 %v3641_v29, %v3637_v47 }
0x163b   : > { %v3642_v34 = vmul.f32 %v3641_v29, %v3636_v31  ;;  %v11539_v38 = vadd.f32 %v3647_v33, %v3643_v32  ;;  %v3890_v31 = vld [vmem:[%s12531_s12] sm:$0xff]  ;;  %v3891_v32 = vld [vmem:[%s12531_s12 + $0x8] sm:$0xff] }
0x163d   : > { %v11537_v35 = vadd.f32 %v3647_v33, %v3642_v34 }
0x163f   : > { %10120 = vmatprep.mubr.msk.f32.mxu0 %vm683_vm0, %v11537_v35 }
0x1640   : > { %10121 = vmatmul.mubr.msk.f32.vlgmr.msra.gmra.mxu0 %vm683_vm0, %v11539_v38 }
0x1641   : > { %10143 = vmatpush3.msra.mxu0 %v3888_v12  ;;  %10150 = vmatprep.mubr.msk.f32.mxu0 %vm10869_vm4, %v10868_v11 }
0x1642   : > { %10144 = vmatprep.subr.mxu0 %v10868_v11 }
0x1643   : > { %10145 = vmatpush3.msra.mxu0 %v3887_v13 }
0x1644   : > { %10146 = vmatprep.subr.mxu0 %v10868_v11 }
0x1645   : > { %10147 = vmatpush3.msra.mxu0 %v3886_v14 }
0x1646   : > { %10148 = vmatprep.subr.mxu0 %v10868_v11 }
0x1647   : > { %10149 = vmatpush3.msra.mxu0 %v3885_v15 }
0x1648   : > { %10151 = vmatmul.mubr.msk.f32.vlgmr.msra.gmra.mxu0 %vm683_vm0, %v3884_v63  ;;  %10153 = vmatprep.subr.mxu0 %v10868_v11 }
0x1649   : > { %10161 = vmatprep.mubr.msk.f32.mxu0 %vm10869_vm4, %v10868_v11  ;;  %10154 = vmatpush3.msra.mxu0 %v3984_v45 }
0x164a   : > { %10155 = vmatprep.subr.mxu0 %v10868_v11 }
0x164b   : > { %10156 = vmatpush3.msra.mxu0 %v3982_v36 }
0x164c   : > { %10157 = vmatprep.subr.mxu0 %v10868_v11 }
0x164d   : > { %10158 = vmatpush3.msra.mxu0 %v3980_v48 }
0x164e   : > { %10159 = vmatprep.subr.mxu0 %v10868_v11 }
0x164f   : > { %10160 = vmatpush3.msra.mxu0 %v3978_v50 }
0x1650   : > { %10162 = vmatmul.mubr.msk.f32.vlgmr.msra.gmra.mxu0 %vm683_vm0, %v11550_v39  ;;  %10174 = vmatprep.subr.mxu0 %v10868_v11 }
0x1651   : > { %10176 = vmatprep.mubr.msk.f32.mxu0 %vm10869_vm4, %v10868_v11 }
0x1700   : > { %v10122_v52 = vpop.f32.mrf.mxu0 }
0x1701   : > { %v3750_v53 = vadd.f32 %v10122_v52, %v9396_v51 }
0x1702   : > { %v3744_v54 = vpop.f32.mrf.mxu0 }
0x1703   : > { %v3745_v55 = vadd.f32 %v9396_v51, %v3744_v54  ;;  %v3754_v37 = vmax.f32 %v3750_v53, 0.0 }
0x1705   : > { %v3753_v56 = vmax.f32 %v3745_v55, 0.0 }
0x1707   : > { %10139 = vmatprep.mubr.msk.f32.mxu1 %vm2154_vm3, %v3753_v56 }
0x1708   : > { %v3968_v57 = vpop.f32.mrf.mxu0  ;;  %10140 = vmatmul.mubr.msk.f32.vlgmr.msra.gmra.mxu1 %vm2154_vm3, %v3754_v37 }
0x1709   : > { %v11595_v58 = vadd.f32 %v9402_v46, %v3968_v57  ;;  %10166 = vmatprep.mubr.msk.f32.mxu1 %vm10869_vm4, %v10868_v11 }
0x170a   : > { %v10152_v27 = vpop.f32.mrf.mxu0 }
0x170b   : > { %4067 = vrot.lane.b32.xlu1 %v11595_v58, %s12599_s5  ;;  %v11602_v59 = vmul.f32 0.35355338, %v11595_v58 }
0x170d   : > { %4228 = vrot.lane.b32.xlu0 %v11602_v59, %s12600_s6 }
0x170f   : > { %4230 = vrot.lane.b32.xlu1 %v11595_v58, %s12601_s3 }
0x1710   : > { %v4062_v60 = vpop.f32.mrf.mxu0 }
0x1712   : > { %v10163_v5 = vpop.f32.mrf.mxu0 }
0x177d   : > { %v4068_v4 = vpop.permute.xlu1 %4067 }
0x177e   : > { %10165 = vmatpush3.xpose.msk.msra.mxu1 %vm880_vm1, %v4068_v4  ;;  %v3892_v4 = vld [vmem:[%s12531_s12 + $0x10] sm:$0xff] }
0x177f   : > { %10169 = vmatprep.subr.mxu1 %v10868_v11  ;;  %v4229_v62 = vpop.permute.xlu0 %4228 }
0x1781   : > { %10167 = vmatmul.mubr.msk.f32.vlgmr.msra.gmra.mxu1 %vm880_vm1, %v11602_v59  ;;  %v4231_v61 = vpop.permute.xlu1 %4230 }
0x1782   : > { %10175 = vmatpush3.xpose.msk.msra.mxu0 %vm880_vm1, %v4231_v61  ;;  %10171 = vmatprep.mubr.msk.f32.mxu1 %vm10869_vm4, %v10868_v11 }
0x1783   : > { %10184 = vmatprep.subr.mxu0 %v10868_v11 }
0x1785   : > { %10177 = vmatmul.mubr.msk.f32.vlgmr.msra.gmra.mxu0 %vm880_vm1, %v4229_v62 }
0x1786   : > { %10186 = vmatprep.mubr.msk.f32.mxu0 %vm10869_vm4, %v10868_v11  ;;  %10185 = vmatpush3.msra.mxu0 %v3891_v32 }
0x1787   : > { %10194 = vmatprep.subr.mxu0 %v10868_v11 }
0x17c8   : > { %v11619_v1 = vpop.f32.mrf.mxu1 }
0x17ca   : > { %v11621_v2 = vpop.f32.mrf.mxu1 }
0x1841   : > { %v4140_v3 = vpop.f32.mrf.mxu1 }
0x1842   : > { %v4144_v18 = vsel %vm880_vm1, %v4140_v3, -inf }
0x1843   : > { %4145 = vmax.xlane.f32.xlu1 %v4144_v18  ;;  %v10168_v19 = vpop.f32.mrf.mxu1 }
0x1845   : > { %v4302_v8 = vpop.f32.mrf.mxu0 }
0x1846   : > { %v4306_v9 = vsel %vm880_vm1, %v4302_v8, -inf }
0x1847   : > { %4307 = vmax.xlane.f32.xlu0 %v4306_v9  ;;  %v10178_v10 = vpop.f32.mrf.mxu0 }
0x185d   : > { %3990 = vrot.lane.b32.xlu0 %v9402_v46, %s12591_s1 }
0x1861   : > { %4542 = vrot.lane.b32.xlu0 %v11595_v58, %s12592_s0 }
0x1865   : > { %4540 = vrot.lane.b32.xlu0 %v11602_v59, %s12593_s27 }
0x18cc   : > { %v4146_v12 = vpop.xlane.xlu1 %4145 }
0x18cd   : > { %v4147_v13 = vsub.f32 %v4140_v3, %v4146_v12 }
0x18cf   : > { %v4148_v14 = vmul.f32 1.442695, %v4147_v13  ;;  %v9399_v13 = vld [vmem:[%s12589_s9 + $0x88] ss:$0 sm:$0xff] }
0x18d0   : > { %v4308_v15 = vpop.xlane.xlu0 %4307 }
0x18d1   : > { %10712 = vpow2.f32 %v4148_v14  ;;  %v4309_v17 = vsub.f32 %v4302_v8, %v4308_v15  ;;  %v3832_v14 = vadd.f32 %v9399_v13, %v11621_v2  ;;  %v3893_v2 = vld [vmem:[%s12531_s12 + $0x18] sm:$0xff] }
0x18d3   : > { %v4310_v21 = vmul.f32 1.442695, %v4309_v17  ;;  %v3837_v17 = vadd.f32 %v11619_v1, %v9399_v13 }
0x18d4   : > { %v3991_v22 = vpop.permute.xlu0 %3990 }
0x18d5   : > { %10714 = vpow2.f32 %v4310_v21  ;;  %v11630_v23 = vadd.f32 %v4062_v60, %v3991_v22  ;;  %v3840_v21 = vadd.f32 %v3832_v14, %v11537_v35 }
0x18d7   : > { %10170 = vmatpush3.msra.mxu1 %v11630_v23 }
0x18d8   : > { %10179 = vmatprep.subr.mxu1 %v10868_v11  ;;  %v4543_v34 = vpop.permute.xlu0 %4542 }
0x18dc   : > { %v4541_v43 = vpop.permute.xlu0 %4540 }
0x18de   : > { %v10713_v24 = vpop.eup %10712 }
0x18df   : > { %v4150_v25 = vsel %vm880_vm1, %v10713_v24, 0.0 }
0x18e0   : > { %4151 = vadd.xlane.f32.xlu1 %v4150_v25 }
0x18e2   : > { %v10715_v6 = vpop.eup %10714 }
0x18e3   : > { %v4312_v26 = vsel %vm880_vm1, %v10715_v6, 0.0 }
0x18e4   : > { %4313 = vadd.xlane.f32.xlu1 %v4312_v26 }
0x18f5   : > { %4318 = vrot.lane.b32.xlu1 %v11630_v23, %s12600_s6 }
0x1969   : > { %v4152_v0 = vpop.xlane.xlu1 %4151 }
0x196a   : > { %10716 = vrcp.f32 %v4152_v0 }
0x196d   : > { %v4314_v7 = vpop.xlane.xlu1 %4313 }
0x196e   : > { %10718 = vrcp.f32 %v4314_v7 }
0x1971   : > { %v4319_v29 = vpop.permute.xlu1 %4318 }
0x1977   : > { %v10717_v28 = vpop.eup %10716 }
0x1978   : > { %v4154_v49 = vmul.f32 %v10717_v28, %v10713_v24  ;;  %v3842_v24 = vsel %vm683_vm0, %v3840_v21, 0.0 }
0x197a   : > { %10172 = vmatmul.mubr.msk.f32.vlgmr.msra.gmra.mxu1 %vm880_vm1, %v4154_v49  ;;  %v11715_v49 = vld [vmem:[%s12533_s14 + $0x18] sm:$0xff] }
0x197b   : > { %v10719_v47 = vpop.eup %10718  ;;  %10180 = vmatpush3.msra.mxu1 %v4319_v29  ;;  %10181 = vmatprep.mubr.msk.f32.mxu1 %vm10869_vm4, %v10868_v11  ;;  %v11722_v29 = vld [vmem:[%s12533_s14 + $0x10] sm:$0xff] }
0x197c   : > { %v4316_v30 = vmul.f32 %v10719_v47, %v10715_v6  ;;  %10189 = vmatprep.subr.mxu1 %v10868_v11  ;;  %v11729_v47 = vld [vmem:[%s12533_s14 + $0x8] sm:$0xff] }
0x197e   : > { %10182 = vmatmul.mubr.msk.f32.vlgmr.msra.gmra.mxu1 %vm880_vm1, %v4316_v30  ;;  %v11736_v30 = vld [vmem:[%s12533_s14] sm:$0xff] }
0x197f   : > { %10191 = vmatprep.mubr.msk.f32.mxu1 %vm10869_vm4, %v10868_v11  ;;  %10190 = vmatpush3.msra.mxu1 %v3890_v31 }
0x1980   : > { %10199 = vmatprep.subr.mxu1 %v10868_v11 }
0x1a3a   : > { %v4224_v33 = vpop.f32.mrf.mxu1 }
0x1a3b   : > { %10192 = vmatmul.mubr.msk.f32.vlgmr.msra.gmra.mxu1 %vm880_vm1, %v4224_v33 }
0x1a3c   : > { %v10173_v63 = vpop.f32.mrf.mxu1  ;;  %10201 = vmatprep.mubr.msk.f32.mxu1 %vm10869_vm4, %v10868_v11 }
0x1a3e   : > { %v4390_v41 = vpop.f32.mrf.mxu1 }
0x1a3f   : > { %10187 = vmatmul.mubr.msk.f32.vlgmr.msra.gmra.mxu0 %vm880_vm1, %v4390_v41 }
0x1a40   : > { %10195 = vmatpush3.xpose.msk.msra.mxu0 %vm880_vm1, %v4543_v34  ;;  %v10183_v42 = vpop.f32.mrf.mxu1  ;;  %10196 = vmatprep.mubr.msk.f32.mxu0 %vm10869_vm4, %v10868_v11  ;;  %v9421_v34 = vld [vmem:[%s12531_s12 + $0x20] ss:$0 sm:$0xff] }
0x1a41   : > { %10204 = vmatprep.subr.mxu0 %v10868_v11 }
0x1a43   : > { %10197 = vmatmul.mubr.msk.f32.vlgmr.msra.gmra.mxu0 %vm880_vm1, %v4541_v43 }
0x1a44   : > { %10206 = vmatprep.mubr.msk.f32.mxu0 %vm10869_vm4, %v10868_v11  ;;  %10205 = vmatpush3.msra.mxu0 %v3892_v4 }
0x1a45   : > { %10214 = vmatprep.subr.mxu0 %v10868_v11 }
0x1afb   : > { %v4536_v44 = vpop.f32.mrf.mxu1 }
0x1afd   : > { %v10193_v45 = vpop.f32.mrf.mxu1 }
0x1aff   : > { %v4463_v36 = vpop.f32.mrf.mxu0 }
0x1b00   : > { %v11664_v48 = vadd.f32 %v4536_v44, %v4463_v36 }
0x1b01   : > { %v10188_v50 = vpop.f32.mrf.mxu0 }
0x1b03   : > { %v4614_v51 = vpop.f32.mrf.mxu0 }
0x1b04   : > { %v4618_v52 = vsel %vm880_vm1, %v4614_v51, -inf }
0x1b05   : > { %4619 = vmax.xlane.f32.xlu1 %v4618_v52  ;;  %v10198_v53 = vpop.f32.mrf.mxu0 }
0x1b16   : > { %4781 = vrot.lane.b32.xlu1 %v11595_v58, %s12594_s24 }
0x1b1a   : > { %4779 = vrot.lane.b32.xlu1 %v11602_v59, %s12595_s28 }
0x1b8e   : > { %v4620_v54 = vpop.xlane.xlu1 %4619 }
0x1b8f   : > { %v4621_v55 = vsub.f32 %v4614_v51, %v4620_v54 }
0x1b91   : > { %v4622_v56 = vmul.f32 1.442695, %v4621_v55 }
0x1b92   : > { %v4782_v60 = vpop.permute.xlu1 %4781 }
0x1b93   : > { %10720 = vpow2.f32 %v4622_v56 }
0x1b96   : > { %v4780_v5 = vpop.permute.xlu1 %4779 }
0x1ba0   : > { %v10721_v37 = vpop.eup %10720 }
0x1ba1   : > { %v4624_v46 = vsel %vm880_vm1, %v10721_v37, 0.0 }
0x1ba2   : > { %4625 = vadd.xlane.f32.xlu0 %v4624_v46 }
0x1bb8   : > { %4629 = vrot.lane.b32.xlu0 %v11630_v23, %s12593_s27 }
0x1c2b   : > { %v4626_v57 = vpop.xlane.xlu0 %4625 }
0x1c2c   : > { %10722 = vrcp.f32 %v4626_v57 }
0x1c2f   : > { %v4630_v27 = vpop.permute.xlu0 %4629 }
0x1c30   : > { %10200 = vmatpush3.msra.mxu1 %v4630_v27 }
0x1c31   : > { %10209 = vmatprep.subr.mxu1 %v10868_v11 }
0x1c39   : > { %v10723_v58 = vpop.eup %10722 }
0x1c3a   : > { %v4628_v59 = vmul.f32 %v10723_v58, %v10721_v37 }
0x1c3c   : > { %10202 = vmatmul.mubr.msk.f32.vlgmr.msra.gmra.mxu1 %vm880_vm1, %v4628_v59 }
0x1c3d   : > { %10210 = vmatpush3.xpose.msk.msra.mxu1 %vm880_vm1, %v4782_v60  ;;  %10211 = vmatprep.mubr.msk.f32.mxu1 %vm10869_vm4, %v10868_v11 }
0x1c3e   : > { %10219 = vmatprep.subr.mxu1 %v10868_v11 }
0x1c40   : > { %10212 = vmatmul.mubr.msk.f32.vlgmr.msra.gmra.mxu1 %vm880_vm1, %v4780_v5 }
0x1c41   : > { %10221 = vmatprep.mubr.msk.f32.mxu1 %vm10869_vm4, %v10868_v11  ;;  %10220 = vmatpush3.msra.mxu1 %v3893_v2 }
0x1cfc   : > { %v4701_v61 = vpop.f32.mrf.mxu1 }
0x1cfd   : > { %10207 = vmatmul.mubr.msk.f32.vlgmr.msra.gmra.mxu0 %vm880_vm1, %v4701_v61 }
0x1cfe   : > { %v10203_v62 = vpop.f32.mrf.mxu1  ;;  %10216 = vmatprep.mubr.msk.f32.mxu0 %vm10869_vm4, %v10868_v11 }
0x1cff   : > { %v9395_v62 = vld [vmem:[%s12529_s10 + $0x2] sm:$0x3] }
0x1d00   : > { %v4853_v3 = vpop.f32.mrf.mxu1 }
0x1d01   : > { %v4857_v18 = vsel %vm880_vm1, %v4853_v3, -inf }
0x1d02   : > { %4858 = vmax.xlane.f32.xlu0 %v4857_v18  ;;  %v10213_v19 = vpop.f32.mrf.mxu1  ;;  %v3871_v18 = vrot.slane %v9395_v62, %v11264_v16 }
0x1d18   : > { %4868 = vrot.lane.b32.xlu0 %v11630_v23, %s12595_s28  ;;  %v3841_v23 = vadd.f32 %v3837_v17, %v11539_v38  ;;  %v11765_v17 = vld [vmem:[%s12533_s14 + $0x20] ss:$0 sm:$0xff] }
0x1d1a   : > { %v3845_v25 = vsel %vm683_vm0, %v3841_v23, 0.0 }
0x1d8b   : > { %v4859_v8 = vpop.xlane.xlu0 %4858 }
0x1d8c   : > { %v4860_v9 = vsub.f32 %v4853_v3, %v4859_v8 }
0x1d8e   : > { %v4861_v10 = vmul.f32 1.442695, %v4860_v9  ;;  %v3877_v9 = vrot.slane %v9395_v62, %v11270_v20 }
0x1d8f   : > { %v4869_v12 = vpop.permute.xlu0 %4868 }
0x1d90   : > { %10724 = vpow2.f32 %v4861_v10  ;;  %10215 = vmatpush3.msra.mxu0 %v4869_v12 }
0x1d91   : > { %10224 = vmatprep.subr.mxu0 %v10868_v11 }
0x1d9d   : > { %v10725_v15 = vpop.eup %10724 }
0x1d9e   : > { %v4863_v22 = vsel %vm880_vm1, %v10725_v15, 0.0 }
0x1d9f   : > { %4864 = vadd.xlane.f32.xlu1 %v4863_v22  ;;  %v10793_v22 = vld [vmem:[%s11052_s20] sm:$0xff] }
0x1da3   : > { %3843 = vadd.xlane.f32.xlu1 %v3842_v24 }
0x1da7   : > { %3846 = vadd.xlane.f32.xlu1 %v3845_v25  ;;  %v10794_v25 = vld [vmem:[%s11052_s20 + $0x8] sm:$0xff]  ;;  %s12066_s20 = scalar_lea.vmem [#allocation2], %s9282_s7 }
0x1dbd   : > { %v4774_v6 = vpop.f32.mrf.mxu0 }
0x1dbe   : > { %v4778_v1 = vadd.f32 %v4774_v6, %v11664_v48 }
0x1dbf   : > { %v10208_v35 = vpop.f32.mrf.mxu0 }
0x1e28   : > { %v4865_v26 = vpop.xlane.xlu1 %4864 }
0x1e29   : > { %10726 = vrcp.f32 %v4865_v26  ;;  %v5024_v26 = vld [vmem:[%s12532_s13] sm:$0x3] }
0x1e2c   : > { %v3844_v31 = vpop.xlane.xlu1 %3843 }
0x1e2d   : > { %v3848_v32 = vmul.f32 0.03125, %v3844_v31 }
0x1e2f   : > { %v3850_v43 = vsub.f32 %v3840_v21, %v3848_v32 }
0x1e30   : > { %v3847_v33 = vpop.xlane.xlu1 %3846 }
0x1e31   : > { %v3849_v44 = vmul.f32 0.03125, %v3847_v33  ;;  %v3852_v51 = vmul.f32 %v3850_v43, %v3850_v43 }
0x1e33   : > { %v3851_v48 = vsub.f32 %v3841_v23, %v3849_v44  ;;  %v3854_v52 = vsel %vm683_vm0, %v3852_v51, 0.0 }
0x1e35   : > { %v3853_v53 = vmul.f32 %v3851_v48, %v3851_v48 }
0x1e36   : > { %v10727_v0 = vpop.eup %10726 }
0x1e37   : > { %v4867_v7 = vmul.f32 %v10727_v0, %v10725_v15  ;;  %v3857_v54 = vsel %vm683_vm0, %v3853_v53, 0.0  ;;  %v5041_v0 = vrot.slane %v5024_v26, %v11264_v16 }
0x1e39   : > { %10217 = vmatmul.mubr.msk.f32.vlgmr.msra.gmra.mxu0 %vm880_vm1, %v4867_v7 }
0x1e3a   : > { %10232 = vmatprep.mubr.msk.f32.mxu0 %vm10869_vm4, %v10868_v11  ;;  %10225 = vmatpush3.msra.mxu0 %v11715_v49 }
0x1e3b   : > { %10226 = vmatprep.subr.mxu0 %v10868_v11 }
0x1e3c   : > { %10227 = vmatpush3.msra.mxu0 %v11722_v29 }
0x1e3d   : > { %10228 = vmatprep.subr.mxu0 %v10868_v11 }
0x1e3e   : > { %10229 = vmatpush3.msra.mxu0 %v11729_v47 }
0x1e3f   : > { %10230 = vmatprep.subr.mxu0 %v10868_v11 }
0x1e40   : > { %10231 = vmatpush3.msra.mxu0 %v11736_v30 }
0x1ef9   : > { %v4940_v38 = vpop.f32.mrf.mxu0 }
0x1efa   : > { %10222 = vmatmul.mubr.msk.f32.vlgmr.msra.gmra.mxu1 %vm880_vm1, %v4940_v38 }
0x1efb   : > { %v10218_v28 = vpop.f32.mrf.mxu0 }
0x1efc   : > { %v5046_v28 = vrot.slane %v5024_v26, %v11270_v20  ;;  %v5055_v26 = vld [vmem:[%s12534_s15 + $0x8] sm:$0xff] }
0x1fba   : > { %v5013_v63 = vpop.f32.mrf.mxu1 }
0x1fbb   : > { %v5017_v41 = vadd.f32 %v5013_v63, %v4778_v1 }
0x1fbc   : > { %v10223_v42 = vpop.f32.mrf.mxu1 }
0x1fbd   : > { %v5022_v45 = vadd.f32 %v9421_v34, %v5017_v41 }
0x1fbf   : > { %v5023_v36 = vadd.f32 %v5022_v45, %v11550_v39 }
0x1fc1   : > { %v5025_v50 = vsel %vm683_vm0, %v5023_v36, 0.0 }
0x1fc2   : > { %5026 = vadd.xlane.f32.xlu1 %v5025_v50 }
0x1fc6   : > { %3855 = vadd.xlane.f32.xlu1 %v3854_v52 }
0x1fca   : > { %3858 = vadd.xlane.f32.xlu1 %v3857_v54 }
0x1fdb   : > { %5147 = vrot.lane.b32.xlu1 %v11715_v49, %s12599_s5 }
0x1fdf   : > { %5145 = vrot.lane.b32.xlu1 %v11722_v29, %s12599_s5 }
0x1fe3   : > { %5143 = vrot.lane.b32.xlu1 %v11729_v47, %s12599_s5 }
0x1fe7   : > { %5141 = vrot.lane.b32.xlu1 %v11736_v30, %s12599_s5 }
0x204b   : > { %v5027_v39 = vpop.xlane.xlu1 %5026 }
0x204c   : > { %v5028_v55 = vmul.f32 0.03125, %v5027_v39 }
0x204e   : > { %v5029_v56 = vsub.f32 %v5023_v36, %v5028_v55 }
0x204f   : > { %v3856_v37 = vpop.xlane.xlu1 %3855 }
0x2050   : > { %v3860_v46 = vmul.f32 0.03125, %v3856_v37  ;;  %v5030_v57 = vmul.f32 %v5029_v56, %v5029_v56 }
0x2052   : > { %v3862_v27 = vadd.f32 1e-05, %v3860_v46  ;;  %v5031_v58 = vsel %vm683_vm0, %v5030_v57, 0.0 }
0x2053   : > { %5032 = vadd.xlane.f32.xlu0 %v5031_v58  ;;  %v3859_v60 = vpop.xlane.xlu1 %3858 }
0x2054   : > { %10728 = vrsqrt.f32 %v3862_v27  ;;  %v3861_v59 = vmul.f32 0.03125, %v3859_v60 }
0x2056   : > { %v3863_v5 = vadd.f32 1e-05, %v3861_v59 }
0x2057   : > { %v5148_v4 = vpop.permute.xlu1 %5147 }
0x2058   : > { %10730 = vrsqrt.f32 %v3863_v5  ;;  %10235 = vmatprep.subr.mxu1 %v5148_v4 }
0x2059   : > { %10236 = vmatpush3.msra.mxu1 %v5148_v4 }
0x205b   : > { %v5146_v61 = vpop.permute.xlu1 %5145 }
0x205c   : > { %10237 = vmatprep.subr.mxu1 %v5146_v61 }
0x205d   : > { %10238 = vmatpush3.msra.mxu1 %v5146_v61 }
0x205f   : > { %v5144_v3 = vpop.permute.xlu1 %5143 }
0x2060   : > { %10239 = vmatprep.subr.mxu1 %v5144_v3 }
0x2061   : > { %v10729_v19 = vpop.eup %10728  ;;  %10240 = vmatpush3.msra.mxu1 %v5144_v3 }
0x2062   : > { %v3866_v8 = vmul.f32 %v10729_v19, %v3850_v43 }
0x2063   : > { %v5142_v10 = vpop.permute.xlu1 %5141 }
0x2064   : > { %v3872_v12 = vmul.f32 %v3871_v18, %v3866_v8  ;;  %10241 = vmatprep.subr.mxu1 %v5142_v10 }
0x2065   : > { %v10731_v13 = vpop.eup %10730  ;;  %10242 = vmatpush3.msra.mxu1 %v5142_v10 }
0x2066   : > { %v3867_v14 = vmul.f32 %v10731_v13, %v3851_v48  ;;  %v11760_v15 = vadd.f32 %v3877_v9, %v3872_v12  ;;  %10257 = vmatprep.subr.mxu1 %v10868_v11 }
0x2068   : > { %v3873_v21 = vmul.f32 %v3871_v18, %v3867_v14  ;;  %v11770_v23 = vadd.f32 %v10793_v22, %v11760_v15 }
0x2069   : > { %5154 = vrot.lane.b32.xlu0 %v11765_v17, %s12599_s5 }
0x206a   : > { %v11774_v24 = vadd.f32 %v3877_v9, %v3873_v21  ;;  %10243 = vmatprep.mubr.msk.f32.mxu1 %vm683_vm0, %v11770_v23  ;;  %v5054_v21 = vld [vmem:[%s12534_s15] sm:$0xff] }
0x206c   : > { %v11780_v2 = vadd.f32 %v10794_v25, %v11774_v24 }
0x206d   : > { %5238 = vrot.lane.b32.xlu0 %v11736_v30, %s12591_s1 }
0x206e   : > { %10244 = vmatmul.mubr.msk.f32.vlgmr.msra.gmra.mxu1 %vm683_vm0, %v11780_v2 }
0x206f   : > { %10261 = vmatprep.mubr.msk.f32.mxu1 %vm10869_vm4, %v10868_v11 }
0x20dc   : > { %v5033_v6 = vpop.xlane.xlu0 %5032 }
0x20dd   : > { %v5034_v1 = vmul.f32 0.03125, %v5033_v6 }
0x20df   : > { %v5035_v35 = vadd.f32 1e-05, %v5034_v1 }
0x20e0   : > { %v5155_v33 = vpop.permute.xlu0 %5154 }
0x20e1   : > { %10732 = vrsqrt.f32 %v5035_v35 }
0x20e4   : > { %v5239_v53 = vpop.permute.xlu0 %5238 }
0x20ee   : > { %v10733_v7 = vpop.eup %10732 }
0x20ef   : > { %v5037_v38 = vmul.f32 %v10733_v7, %v5029_v56 }
0x20f1   : > { %v5042_v30 = vmul.f32 %v5041_v0, %v5037_v38 }
0x20f3   : > { %v11793_v31 = vadd.f32 %v5046_v28, %v5042_v30 }
0x20f5   : > { %v5048_v32 = vadd.f32 %v11793_v31, %v11555_v40 }
0x20f7   : > { %10233 = vmatmul.mubr.msk.f32.vlgmr.msra.gmra.mxu0 %vm683_vm0, %v5048_v32 }
0x20f8   : > { %10254 = vmatprep.mubr.msk.f32.mxu0 %vm683_vm0, %v11760_v15 }
0x212e   : > { %v10245_v34 = vpop.f32.mrf.mxu1 }
0x212f   : > { %v11800_v63 = vadd.f32 %v10245_v34, %v5155_v33 }
0x2130   : > { %v5229_v41 = vpop.f32.mrf.mxu1 }
0x2131   : > { %5501 = vrot.lane.b32.xlu1 %v11800_v63, %s12600_s6  ;;  %10258 = vmatpush3.xpose.msk.msra.mxu1 %vm880_vm1, %v11800_v63  ;;  %v11807_v42 = vadd.f32 %v5229_v41, %v5155_v33 }
0x2132   : > { %10259 = vmatprep.subr.mxu1 %v10868_v11 }
0x2135   : > { %5499 = vrot.lane.b32.xlu1 %v11807_v42, %s12600_s6  ;;  %10260 = vmatpush3.xpose.msk.msra.mxu1 %vm880_vm1, %v11807_v42 }
0x2136   : > { %10271 = vmatprep.subr.mxu1 %v10868_v11 }
0x21a3   : > { %v5502_v45 = vpop.permute.xlu1 %5501 }
0x21a7   : > { %v5500_v48 = vpop.permute.xlu1 %5499 }
0x21b7   : > { %v5132_v40 = vpop.f32.mrf.mxu0 }
0x21b8   : > { %v5133_v43 = vadd.f32 %v11765_v17, %v5132_v40 }
0x21b9   : > { %v10234_v44 = vpop.f32.mrf.mxu0 }
0x21ba   : > { %v11815_v36 = vmul.f32 0.35355338, %v5133_v43 }
0x21bc   : > { %5497 = vrot.lane.b32.xlu1 %v11815_v36, %s12600_s6  ;;  %10262 = vmatmul.mubr.msk.f32.vlgmr.msra.gmra.mxu1 %vm880_vm1, %v11815_v36 }
0x21bd   : > { %10272 = vmatpush3.xpose.msk.msra.mxu1 %vm880_vm1, %v5502_v45  ;;  %10275 = vmatprep.mubr.msk.f32.mxu1 %vm10869_vm4, %v10868_v11 }
0x21be   : > { %10273 = vmatprep.subr.mxu1 %v10868_v11 }
0x21c0   : > { %5244 = vrot.lane.b32.xlu1 %v11715_v49, %s12591_s1 }
0x21c1   : > { %10274 = vmatpush3.xpose.msk.msra.mxu1 %vm880_vm1, %v5500_v48 }
0x21c2   : > { %10290 = vmatprep.subr.mxu1 %v10868_v11 }
0x21c4   : > { %5242 = vrot.lane.b32.xlu1 %v11722_v29, %s12591_s1 }
0x21c8   : > { %5240 = vrot.lane.b32.xlu1 %v11729_v47, %s12591_s1  ;;  %v11842_v47 = vld [vmem:[%s11119_s26] ss:$0 sm:$0xff] }
0x222e   : > { %v5498_v50 = vpop.permute.xlu1 %5497 }
0x222f   : > { %10276 = vmatmul.mubr.msk.f32.vlgmr.msra.gmra.mxu1 %vm880_vm1, %v5498_v50 }
0x2230   : > { %10292 = vmatprep.mubr.msk.f32.mxu1 %vm10869_vm4, %v10868_v11  ;;  %10291 = vmatpush3.msra.mxu1 %v5054_v21 }
0x2231   : > { %10302 = vmatprep.subr.mxu1 %v10868_v11 }
0x2232   : > { %v5245_v51 = vpop.permute.xlu1 %5244 }
0x2233   : > { %10246 = vmatprep.subr.mxu0 %v5245_v51 }
0x2234   : > { %10247 = vmatpush3.msra.mxu0 %v5245_v51 }
0x2236   : > { %v5243_v49 = vpop.permute.xlu1 %5242 }
0x2237   : > { %10248 = vmatprep.subr.mxu0 %v5243_v49 }
0x2238   : > { %10249 = vmatpush3.msra.mxu0 %v5243_v49 }
0x223a   : > { %v5241_v52 = vpop.permute.xlu1 %5240 }
0x223b   : > { %10250 = vmatprep.subr.mxu0 %v5241_v52 }
0x223c   : > { %10251 = vmatpush3.msra.mxu0 %v5241_v52 }
0x223d   : > { %10252 = vmatprep.subr.mxu0 %v5239_v53 }
0x223e   : > { %10253 = vmatpush3.msra.mxu0 %v5239_v53 }
0x223f   : > { %10255 = vmatmul.mubr.msk.f32.vlgmr.msra.gmra.mxu0 %vm683_vm0, %v11774_v24  ;;  %10264 = vmatprep.subr.mxu0 %v10868_v11 }
0x2240   : > { %10268 = vmatprep.mubr.msk.f32.mxu0 %vm10869_vm4, %v10868_v11 }
0x227c   : > { %v5409_v29 = vpop.f32.mrf.mxu1 }
0x227d   : > { %v5410_v54 = vadd.f32 %v11842_v47, %v5409_v29 }
0x227e   : > { %v10263_v39 = vpop.f32.mrf.mxu1 }
0x227f   : > { %v5413_v55 = vsel %vm966_vm2, %v5410_v54, -inf }
0x2280   : > { %5414 = vmax.xlane.f32.xlu1 %v5413_v55 }
0x22ef   : > { %v5575_v56 = vpop.f32.mrf.mxu1 }
0x22f0   : > { %v5576_v37 = vadd.f32 %v11842_v47, %v5575_v56 }
0x22f1   : > { %v10277_v46 = vpop.f32.mrf.mxu1 }
0x22f2   : > { %v5579_v57 = vsel %vm966_vm2, %v5576_v37, -inf }
0x22f3   : > { %5580 = vmax.xlane.f32.xlu0 %v5579_v57 }
0x22ff   : > { %v10256_v4 = vpop.f32.mrf.mxu0 }
0x2301   : > { %v5325_v18 = vpop.f32.mrf.mxu0 }
0x2309   : > { %v5415_v27 = vpop.xlane.xlu1 %5414  ;;  %5250 = vrot.lane.b32.xlu0 %v11765_v17, %s12591_s1 }
0x230a   : > { %v5416_v58 = vsub.f32 %v5410_v54, %v5415_v27 }
0x230c   : > { %v5417_v60 = vmul.f32 1.442695, %v5416_v58 }
0x230e   : > { %10734 = vpow2.f32 %v5417_v60 }
0x231b   : > { %v10735_v59 = vpop.eup %10734 }
0x231c   : > { %v5419_v5 = vsel %vm966_vm2, %v10735_v59, 0.0 }
0x231d   : > { %5420 = vadd.xlane.f32.xlu1 %v5419_v5 }
0x237c   : > { %v5581_v61 = vpop.xlane.xlu0 %5580 }
0x237d   : > { %v5582_v62 = vsub.f32 %v5576_v37, %v5581_v61  ;;  %v5056_v61 = vld [vmem:[%s12534_s15 + $0x10] sm:$0xff] }
0x237f   : > { %v5583_v3 = vmul.f32 1.442695, %v5582_v62 }
0x2380   : > { %v5251_v19 = vpop.permute.xlu0 %5250 }
0x2381   : > { %10736 = vpow2.f32 %v5583_v3  ;;  %v11851_v8 = vadd.f32 %v5325_v18, %v5251_v19  ;;  %v11853_v9 = vadd.f32 %v10256_v4, %v5251_v19 }
0x2383   : > { %10265 = vmatpush3.msra.mxu0 %v11853_v9  ;;  %5592 = vrot.lane.b32.xlu0 %v11851_v8, %s12600_s6 }
0x2384   : > { %10266 = vmatprep.subr.mxu0 %v10868_v11 }
0x2385   : > { %10267 = vmatpush3.msra.mxu0 %v11851_v8 }
0x2386   : > { %10278 = vmatprep.subr.mxu0 %v10868_v11 }
0x2387   : > { %5821 = vrot.lane.b32.xlu0 %v11800_v63, %s12593_s27 }
0x238b   : > { %5817 = vrot.lane.b32.xlu0 %v11815_v36, %s12593_s27 }
0x238e   : > { %v10737_v10 = vpop.eup %10736 }
0x238f   : > { %6065 = vrot.lane.b32.xlu0 %v11807_v42, %s12595_s28  ;;  %v5585_v12 = vsel %vm966_vm2, %v10737_v10, 0.0 }
0x2390   : > { %5586 = vadd.xlane.f32.xlu1 %v5585_v12  ;;  %v5057_v12 = vld [vmem:[%s12534_s15 + $0x18] sm:$0xff] }
0x23a1   : > { %5594 = vrot.lane.b32.xlu1 %v11853_v9, %s12600_s6 }
0x23a5   : > { %5819 = vrot.lane.b32.xlu1 %v11807_v42, %s12593_s27 }
0x23a6   : > { %v5421_v13 = vpop.xlane.xlu1 %5420 }
0x23a7   : > { %10738 = vrcp.f32 %v5421_v13 }
0x23a9   : > { %6067 = vrot.lane.b32.xlu1 %v11800_v63, %s12595_s28 }
0x23ad   : > { %6063 = vrot.lane.b32.xlu1 %v11815_v36, %s12595_s28 }
0x23b4   : > { %v10739_v14 = vpop.eup %10738 }
0x23b5   : > { %v5423_v17 = vmul.f32 %v10739_v14, %v10735_v59 }
0x23b7   : > { %10269 = vmatmul.mubr.msk.f32.vlgmr.msra.gmra.mxu0 %vm966_vm2, %v5423_v17 }
0x23b8   : > { %10282 = vmatprep.mubr.msk.f32.mxu0 %vm10869_vm4, %v10868_v11 }
0x23f5   : > { %v5593_v6 = vpop.permute.xlu0 %5592 }
0x23f9   : > { %v5822_v28 = vpop.permute.xlu0 %5821 }
0x23fd   : > { %v5818_v33 = vpop.permute.xlu0 %5817 }
0x2401   : > { %v6066_v63 = vpop.permute.xlu0 %6065 }
0x2419   : > { %v5587_v22 = vpop.xlane.xlu1 %5586 }
0x241a   : > { %10740 = vrcp.f32 %v5587_v22 }
0x241d   : > { %v5595_v25 = vpop.permute.xlu1 %5594 }
0x241e   : > { %10279 = vmatpush3.msra.mxu0 %v5595_v25 }
0x241f   : > { %10280 = vmatprep.subr.mxu0 %v10868_v11 }
0x2420   : > { %10281 = vmatpush3.msra.mxu0 %v5593_v6  ;;  %v9448_v6 = vld [vmem:[%s12534_s15 + $0x20] ss:$0 sm:$0xff] }
0x2421   : > { %10285 = vmatprep.subr.mxu0 %v10868_v11  ;;  %v5820_v32 = vpop.permute.xlu1 %5819 }
0x2425   : > { %v6068_v34 = vpop.permute.xlu1 %6067 }
0x2427   : > { %v10741_v1 = vpop.eup %10740 }
0x2428   : > { %v5589_v35 = vmul.f32 %v10741_v1, %v10737_v10 }
0x2429   : > { %v6064_v41 = vpop.permute.xlu1 %6063 }
0x242a   : > { %10283 = vmatmul.mubr.msk.f32.vlgmr.msra.gmra.mxu0 %vm966_vm2, %v5589_v35 }
0x242b   : > { %10286 = vmatpush3.msra.mxu0 %v5055_v26  ;;  %10287 = vmatprep.mubr.msk.f32.mxu0 %vm10869_vm4, %v10868_v11 }
0x242c   : > { %10295 = vmatprep.subr.mxu0 %v10868_v11 }
0x2477   : > { %v5493_v0 = vpop.f32.mrf.mxu0 }
0x2478   : > { %10293 = vmatmul.mubr.msk.f32.vlgmr.msra.gmra.mxu1 %vm880_vm1, %v5493_v0 }
0x2479   : > { %v10270_v7 = vpop.f32.mrf.mxu0  ;;  %10306 = vmatprep.mubr.msk.f32.mxu1 %vm10869_vm4, %v10868_v11 }
0x24ea   : > { %v5667_v38 = vpop.f32.mrf.mxu0 }
0x24eb   : > { %10288 = vmatmul.mubr.msk.f32.vlgmr.msra.gmra.mxu0 %vm880_vm1, %v5667_v38 }
0x24ec   : > { %10296 = vmatpush3.xpose.msk.msra.mxu0 %vm880_vm1, %v5822_v28  ;;  %v10284_v30 = vpop.f32.mrf.mxu0  ;;  %10299 = vmatprep.mubr.msk.f32.mxu0 %vm10869_vm4, %v10868_v11 }
0x24ed   : > { %10297 = vmatprep.subr.mxu0 %v10868_v11 }
0x24f0   : > { %10298 = vmatpush3.xpose.msk.msra.mxu0 %vm880_vm1, %v5820_v32 }
0x24f1   : > { %10314 = vmatprep.subr.mxu0 %v10868_v11 }
0x24f3   : > { %10300 = vmatmul.mubr.msk.f32.vlgmr.msra.gmra.mxu0 %vm880_vm1, %v5818_v33 }
0x24f4   : > { %10315 = vmatpush3.xpose.msk.msra.mxu0 %vm880_vm1, %v6068_v34  ;;  %10318 = vmatprep.mubr.msk.f32.mxu0 %vm10869_vm4, %v10868_v11 }
0x24f5   : > { %10316 = vmatprep.subr.mxu0 %v10868_v11 }
0x24f8   : > { %10317 = vmatpush3.xpose.msk.msra.mxu0 %vm880_vm1, %v6066_v63  ;;  %v6342_v63 = vld [vmem:[%s12536_s17 + $0x18] sm:$0xff] }
0x24f9   : > { %10333 = vmatprep.subr.mxu0 %v10868_v11 }
0x24fb   : > { %10319 = vmatmul.mubr.msk.f32.vlgmr.msra.gmra.mxu0 %vm880_vm1, %v6064_v41  ;;  %v6341_v41 = vld [vmem:[%s12536_s17 + $0x10] sm:$0xff] }
0x24fc   : > { %10341 = vmatprep.mubr.msk.f32.mxu0 %vm10869_vm4, %v10868_v11  ;;  %10334 = vmatpush3.msra.mxu0 %v6342_v63 }
0x24fd   : > { %10335 = vmatprep.subr.mxu0 %v10868_v11 }
0x24fe   : > { %10336 = vmatpush3.msra.mxu0 %v6341_v41  ;;  %v9463_v41 = vld [vmem:[%s12530_s11 + $0x48] ss:$0 sm:$0xff] }
0x24ff   : > { %10337 = vmatprep.subr.mxu0 %v10868_v11 }
0x2538   : > { %v11912_v42 = vpop.f32.mrf.mxu1 }
0x253a   : > { %v10294_v40 = vpop.f32.mrf.mxu1 }
0x253b   : > { %v6351_v40 = vld [vmem:[%s12537_s18 + $0x38] sm:$0xff] }
0x25ab   : > { %v11914_v43 = vpop.f32.mrf.mxu0 }
0x25ac   : > { %v5814_v13 = vadd.f32 %v11912_v42, %v11914_v43  ;;  %v6339_v42 = vld [vmem:[%s12536_s17] sm:$0xff]  ;;  %v6350_v43 = vld [vmem:[%s12537_s18 + $0x30] sm:$0xff] }
0x25ad   : > { %v10289_v44 = vpop.f32.mrf.mxu0 }
0x25ae   : > { %v6349_v44 = vld [vmem:[%s12537_s18 + $0x28] sm:$0xff] }
0x25b3   : > { %v5895_v45 = vpop.f32.mrf.mxu0 }
0x25b4   : > { %v5896_v36 = vadd.f32 %v11842_v47, %v5895_v45  ;;  %v6348_v45 = vld [vmem:[%s12537_s18 + $0x20] sm:$0xff] }
0x25b5   : > { %v10301_v48 = vpop.f32.mrf.mxu0 }
0x25b6   : > { %v5899_v50 = vsel %vm966_vm2, %v5896_v36, -inf }
0x25b7   : > { %5900 = vmax.xlane.f32.xlu0 %v5899_v50 }
0x25bb   : > { %v6141_v51 = vpop.f32.mrf.mxu0 }
0x25bc   : > { %v6142_v52 = vadd.f32 %v11842_v47, %v6141_v51 }
0x25bd   : > { %v10320_v49 = vpop.f32.mrf.mxu0 }
0x25be   : > { %v6145_v53 = vsel %vm966_vm2, %v6142_v52, -inf  ;;  %v6315_v49 = vld [vmem:[%s12535_s16] sm:$0x3] }
0x25cd   : > { %5912 = vrot.lane.b32.xlu0 %v11853_v9, %s12593_s27 }
0x25ec   : > { %6146 = vmax.xlane.f32.xlu0 %v6145_v53 }
0x2602   : > { %6158 = vrot.lane.b32.xlu0 %v11853_v9, %s12595_s28 }
0x2640   : > { %v5901_v29 = vpop.xlane.xlu0 %5900 }
0x2641   : > { %v5902_v54 = vsub.f32 %v5896_v36, %v5901_v29  ;;  %v6347_v36 = vld [vmem:[%s12537_s18 + $0x18] sm:$0xff] }
0x2643   : > { %v5903_v39 = vmul.f32 1.442695, %v5902_v54  ;;  %v6337_v54 = vrot.slane %v6315_v49, %v11270_v20 }
0x2644   : > { %v5913_v55 = vpop.permute.xlu0 %5912 }
0x2645   : > { %10742 = vpow2.f32 %v5903_v39  ;;  %10303 = vmatpush3.msra.mxu1 %v5913_v55 }
0x2646   : > { %10304 = vmatprep.subr.mxu1 %v10868_v11 }
0x2652   : > { %v10743_v56 = vpop.eup %10742 }
0x2653   : > { %v5905_v37 = vsel %vm966_vm2, %v10743_v56, 0.0 }
0x2654   : > { %5906 = vadd.xlane.f32.xlu1 %v5905_v37  ;;  %v6345_v37 = vld [vmem:[%s12537_s18 + $0x8] sm:$0xff] }
0x2665   : > { %5910 = vrot.lane.b32.xlu1 %v11851_v8, %s12593_s27 }
0x2675   : > { %v6147_v47 = vpop.xlane.xlu0 %6146 }
0x2676   : > { %v6148_v46 = vsub.f32 %v6142_v52, %v6147_v47  ;;  %v6332_v52 = vrot.slane %v6315_v49, %v11264_v16  ;;  %v6344_v47 = vld [vmem:[%s12537_s18] sm:$0xff] }
0x2678   : > { %v6149_v57 = vmul.f32 1.442695, %v6148_v46  ;;  %v9449_v46 = vld [vmem:[%s12536_s17 + $0x20] ss:$0 sm:$0xff] }
0x2679   : > { %v6159_v19 = vpop.permute.xlu0 %6158 }
0x267a   : > { %10744 = vpow2.f32 %v6149_v57 }
0x2687   : > { %v10745_v27 = vpop.eup %10744 }
0x2688   : > { %v6151_v58 = vsel %vm966_vm2, %v10745_v27, 0.0 }
0x2689   : > { %6152 = vadd.xlane.f32.xlu1 %v6151_v58 }
0x269a   : > { %6156 = vrot.lane.b32.xlu1 %v11851_v8, %s12595_s28 }
0x26dd   : > { %v5907_v60 = vpop.xlane.xlu1 %5906 }
0x26de   : > { %10746 = vrcp.f32 %v5907_v60 }
0x26e1   : > { %v5911_v59 = vpop.permute.xlu1 %5910 }
0x26e2   : > { %10305 = vmatpush3.msra.mxu1 %v5911_v59  ;;  %v9451_v59 = vld [vmem:[%s12537_s18 + $0x40] ss:$0 sm:$0xff] }
0x26e3   : > { %10309 = vmatprep.subr.mxu1 %v10868_v11 }
0x26eb   : > { %v10747_v5 = vpop.eup %10746 }
0x26ec   : > { %v5909_v4 = vmul.f32 %v10747_v5, %v10743_v56  ;;  %v6346_v56 = vld [vmem:[%s12537_s18 + $0x10] sm:$0xff] }
0x26ee   : > { %10307 = vmatmul.mubr.msk.f32.vlgmr.msra.gmra.mxu1 %vm966_vm2, %v5909_v4 }
0x26ef   : > { %10310 = vmatpush3.msra.mxu1 %v5056_v61  ;;  %10311 = vmatprep.mubr.msk.f32.mxu1 %vm10869_vm4, %v10868_v11 }
0x26f0   : > { %10321 = vmatprep.subr.mxu1 %v10868_v11 }
0x2712   : > { %v6153_v62 = vpop.xlane.xlu1 %6152 }
0x2713   : > { %10748 = vrcp.f32 %v6153_v62 }
0x2716   : > { %v6157_v9 = vpop.permute.xlu1 %6156 }
0x2720   : > { %v10749_v3 = vpop.eup %10748 }
0x2721   : > { %v6155_v10 = vmul.f32 %v10749_v3, %v10745_v27 }
0x27ae   : > { %v5985_v18 = vpop.f32.mrf.mxu1 }
0x27af   : > { %10312 = vmatmul.mubr.msk.f32.vlgmr.msra.gmra.mxu1 %vm880_vm1, %v5985_v18  ;;  %v9455_v18 = vld [vmem:[%s12530_s11 + $0x38] sm:$0xff] }
0x27b0   : > { %10322 = vmatpush3.msra.mxu1 %v6159_v19  ;;  %v10308_v8 = vpop.f32.mrf.mxu1  ;;  %10325 = vmatprep.mubr.msk.f32.mxu1 %vm10869_vm4, %v10868_v11  ;;  %v9456_v19 = vld [vmem:[%s12530_s11 + $0x40] sm:$0xff] }
0x27b1   : > { %10323 = vmatprep.subr.mxu1 %v10868_v11  ;;  %v9454_v8 = vld [vmem:[%s12530_s11 + $0x30] sm:$0xff] }
0x27b2   : > { %10324 = vmatpush3.msra.mxu1 %v6157_v9  ;;  %v9453_v9 = vld [vmem:[%s12530_s11 + $0x28] sm:$0xff] }
0x27b3   : > { %10326 = vmatmul.mubr.msk.f32.vlgmr.msra.gmra.mxu1 %vm966_vm2, %v6155_v10  ;;  %10328 = vmatprep.subr.mxu1 %v10868_v11 }
0x27b4   : > { %10330 = vmatprep.mubr.msk.f32.mxu1 %vm10869_vm4, %v10868_v11  ;;  %10329 = vmatpush3.msra.mxu1 %v5057_v12 }
0x27b5   : > { %10344 = vmatprep.subr.mxu1 %v10868_v11 }
0x286f   : > { %v6058_v14 = vpop.f32.mrf.mxu1 }
0x2870   : > { %v6062_v17 = vadd.f32 %v6058_v14, %v5814_v13 }
0x2871   : > { %v10313_v21 = vpop.f32.mrf.mxu1 }
0x2873   : > { %v6231_v22 = vpop.f32.mrf.mxu1 }
0x2874   : > { %10331 = vmatmul.mubr.msk.f32.vlgmr.msra.gmra.mxu1 %vm880_vm1, %v6231_v22 }
0x2875   : > { %v10327_v25 = vpop.f32.mrf.mxu1  ;;  %10360 = vmatprep.mubr.msk.f32.mxu1 %vm10869_vm4, %v10868_v11  ;;  %10345 = vmatpush3.msra.mxu1 %v6351_v40 }
0x2876   : > { %10346 = vmatprep.subr.mxu1 %v10868_v11 }
0x2877   : > { %10347 = vmatpush3.msra.mxu1 %v6350_v43 }
0x2878   : > { %10348 = vmatprep.subr.mxu1 %v10868_v11 }
0x2879   : > { %10349 = vmatpush3.msra.mxu1 %v6349_v44 }
0x287a   : > { %10350 = vmatprep.subr.mxu1 %v10868_v11 }
0x287b   : > { %10351 = vmatpush3.msra.mxu1 %v6348_v45 }
0x287c   : > { %10352 = vmatprep.subr.mxu1 %v10868_v11 }
0x287d   : > { %10353 = vmatpush3.msra.mxu1 %v6347_v36 }
0x287e   : > { %10354 = vmatprep.subr.mxu1 %v10868_v11 }
0x287f   : > { %10355 = vmatpush3.msra.mxu1 %v6346_v56 }
0x2880   : > { %10356 = vmatprep.subr.mxu1 %v10868_v11 }
0x2881   : > { %10357 = vmatpush3.msra.mxu1 %v6345_v37 }
0x2882   : > { %10358 = vmatprep.subr.mxu1 %v10868_v11 }
0x2883   : > { %10359 = vmatpush3.msra.mxu1 %v6344_v47 }
0x2884   : > { %10385 = vmatprep.subr.mxu1 %v10868_v11 }
0x2934   : > { %v6304_v1 = vpop.f32.mrf.mxu1 }
0x2935   : > { %v6308_v35 = vadd.f32 %v6304_v1, %v6062_v17 }
0x2936   : > { %v10332_v26 = vpop.f32.mrf.mxu1 }
0x2937   : > { %v6313_v0 = vadd.f32 %v9448_v6, %v6308_v35  ;;  %v6353_v6 = vld [vmem:[%s12538_s19] sm:$0x3] }
0x2938   : > { %v6526_v1 = vrot.slane %v6353_v6, %v11264_v16  ;;  %v6531_v26 = vrot.slane %v6353_v6, %v11270_v20 }
0x2939   : > { %v6314_v7 = vadd.f32 %v6313_v0, %v11793_v31  ;;  %v6340_v31 = vld [vmem:[%s12536_s17 + $0x8] sm:$0xff] }
0x293a   : > { %10338 = vmatpush3.msra.mxu0 %v6340_v31 }
0x293b   : > { %v6316_v38 = vsel %vm683_vm0, %v6314_v7, 0.0  ;;  %10339 = vmatprep.subr.mxu0 %v10868_v11 }
0x293c   : > { %6317 = vadd.xlane.f32.xlu0 %v6316_v38  ;;  %10340 = vmatpush3.msra.mxu0 %v6339_v42 }
0x293d   : > { %10363 = vmatprep.subr.mxu0 %v10868_v11 }
0x29c5   : > { %v6318_v28 = vpop.xlane.xlu0 %6317 }
0x29c6   : > { %v6319_v30 = vmul.f32 0.03125, %v6318_v28 }
0x29c8   : > { %v6320_v32 = vsub.f32 %v6314_v7, %v6319_v30 }
0x29ca   : > { %v6321_v33 = vmul.f32 %v6320_v32, %v6320_v32 }
0x29cc   : > { %v6322_v34 = vsel %vm683_vm0, %v6321_v33, 0.0 }
0x29cd   : > { %6323 = vadd.xlane.f32.xlu1 %v6322_v34 }
0x29de   : > { %6633 = vrot.lane.b32.xlu1 %v9455_v18, %s12591_s1 }
0x29e2   : > { %6631 = vrot.lane.b32.xlu1 %v9454_v8, %s12591_s1 }
0x2a56   : > { %v6324_v48 = vpop.xlane.xlu1 %6323 }
0x2a57   : > { %v6325_v50 = vmul.f32 0.03125, %v6324_v48 }
0x2a59   : > { %v6326_v51 = vadd.f32 1e-05, %v6325_v50 }
0x2a5a   : > { %v6634_v28 = vpop.permute.xlu1 %6633 }
0x2a5b   : > { %10750 = vrsqrt.f32 %v6326_v51 }
0x2a5e   : > { %v6632_v34 = vpop.permute.xlu1 %6631 }
0x2a68   : > { %v10751_v53 = vpop.eup %10750 }
0x2a69   : > { %v6328_v29 = vmul.f32 %v10751_v53, %v6320_v32  ;;  %v12062_v32 = vld [vmem:[%s12598_s21] sm:$0xff] }
0x2a6b   : > { %v6333_v39 = vmul.f32 %v6332_v52, %v6328_v29 }
0x2a6d   : > { %v6338_v55 = vadd.f32 %v6337_v54, %v6333_v39 }
0x2a6f   : > { %10342 = vmatmul.mubr.msk.f32.vlgmr.msra.gmra.mxu0 %vm683_vm0, %v6338_v55 }
0x2a70   : > { %10371 = vmatprep.mubr.msk.f32.mxu0 %vm10869_vm4, %v10868_v11  ;;  %10364 = vmatpush3.msra.mxu0 %v9456_v19 }
0x2a71   : > { %10365 = vmatprep.subr.mxu0 %v10868_v11 }
0x2a72   : > { %10366 = vmatpush3.msra.mxu0 %v9455_v18 }
0x2a73   : > { %10367 = vmatprep.subr.mxu0 %v10868_v11 }
0x2a74   : > { %10368 = vmatpush3.msra.mxu0 %v9454_v8 }
0x2a75   : > { %10369 = vmatprep.subr.mxu0 %v10868_v11 }
0x2a76   : > { %10370 = vmatpush3.msra.mxu0 %v9453_v9 }
0x2a77   : > { %10374 = vmatprep.subr.mxu0 %v10868_v11 }
0x2b2f   : > { %v6427_v57 = vpop.f32.mrf.mxu0 }
0x2b30   : > { %v6428_v27 = vadd.f32 %v9449_v46, %v6427_v57 }
0x2b31   : > { %v10343_v58 = vpop.f32.mrf.mxu0 }
0x2b32   : > { %v6431_v60 = vmax.f32 %v6428_v27, 0.0 }
0x2b34   : > { %10361 = vmatmul.mubr.msk.f32.vlgmr.msra.gmra.mxu1 %vm2154_vm3, %v6431_v60 }
0x2b35   : > { %10387 = vmatprep.mubr.msk.f32.mxu1 %vm10869_vm4, %v10868_v11 }
0x2bf4   : > { %v6505_v5 = vpop.f32.mrf.mxu1 }
0x2bf5   : > { %v6506_v4 = vadd.f32 %v9451_v59, %v6505_v5 }
0x2bf6   : > { %v10362_v61 = vpop.f32.mrf.mxu1 }
0x2bf7   : > { %v6509_v62 = vadd.f32 %v6506_v4, %v6338_v55 }
0x2bf9   : > { %v6510_v3 = vsel %vm683_vm0, %v6509_v62, 0.0 }
0x2bfa   : > { %6511 = vadd.xlane.f32.xlu0 %v6510_v3 }
0x2c83   : > { %v6512_v10 = vpop.xlane.xlu0 %6511 }
0x2c84   : > { %v6513_v12 = vmul.f32 0.03125, %v6512_v10  ;;  %v9459_v10 = vld [vmem:[%s12531_s12 + $0x30] sm:$0xff] }
0x2c86   : > { %v6514_v13 = vsub.f32 %v6509_v62, %v6513_v12 }
0x2c88   : > { %v6515_v14 = vmul.f32 %v6514_v13, %v6514_v13 }
0x2c8a   : > { %v6516_v17 = vsel %vm683_vm0, %v6515_v14, 0.0 }
0x2c8b   : > { %6517 = vadd.xlane.f32.xlu0 %v6516_v17 }
0x2ca1   : > { %6635 = vrot.lane.b32.xlu0 %v9456_v19, %s12591_s1 }
0x2ca5   : > { %6629 = vrot.lane.b32.xlu0 %v9453_v9, %s12591_s1  ;;  %v9458_v9 = vld [vmem:[%s12531_s12 + $0x28] sm:$0xff] }
0x2d14   : > { %v6518_v21 = vpop.xlane.xlu0 %6517 }
0x2d15   : > { %v6519_v22 = vmul.f32 0.03125, %v6518_v21 }
0x2d17   : > { %v6520_v25 = vadd.f32 1e-05, %v6519_v22 }
0x2d18   : > { %v6636_v30 = vpop.permute.xlu0 %6635 }
0x2d19   : > { %10752 = vrsqrt.f32 %v6520_v25 }
0x2d1c   : > { %v6630_v63 = vpop.permute.xlu0 %6629 }
0x2d26   : > { %v10753_v35 = vpop.eup %10752 }
0x2d27   : > { %v6522_v0 = vmul.f32 %v10753_v35, %v6514_v13 }
0x2d29   : > { %v6527_v7 = vmul.f32 %v6526_v1, %v6522_v0 }
0x2d2b   : > { %v12057_v38 = vadd.f32 %v6531_v26, %v6527_v7 }
0x2d2d   : > { %v6534_v33 = vadd.f32 %v12062_v32, %v12057_v38  ;;  %6533 = vst.msk [vmem:[%s12066_s20] sm:$0xff] %vm683_vm0, %v12057_v38 }
0x2d2f   : > { %10372 = vmatmul.mubr.msk.f32.vlgmr.msra.gmra.mxu0 %vm683_vm0, %v6534_v33 }
0x2d30   : > { %10375 = vmatpush3.msra.mxu0 %v6636_v30  ;;  %10382 = vmatprep.mubr.msk.f32.mxu0 %vm10869_vm4, %v10868_v11 }
0x2d31   : > { %10376 = vmatprep.subr.mxu0 %v10868_v11 }
0x2d32   : > { %10377 = vmatpush3.msra.mxu0 %v6634_v28 }
0x2d33   : > { %10378 = vmatprep.subr.mxu0 %v10868_v11 }
0x2d34   : > { %10379 = vmatpush3.msra.mxu0 %v6632_v34 }
0x2d35   : > { %10380 = vmatprep.subr.mxu0 %v10868_v11 }
0x2d36   : > { %10381 = vmatpush3.msra.mxu0 %v6630_v63 }
0x2d37   : > { %10383 = vmatmul.mubr.msk.f32.vlgmr.msra.gmra.mxu0 %vm683_vm0, %v12057_v38  ;;  %10395 = vmatprep.subr.mxu0 %v10868_v11 }
0x2d38   : > { %10397 = vmatprep.mubr.msk.f32.mxu0 %vm10869_vm4, %v10868_v11 }
0x2def   : > { %v6620_v31 = vpop.f32.mrf.mxu0 }
0x2df0   : > { %v12085_v42 = vadd.f32 %v9463_v41, %v6620_v31 }
0x2df1   : > { %v10373_v40 = vpop.f32.mrf.mxu0 }
0x2df2   : > { %6719 = vrot.lane.b32.xlu1 %v12085_v42, %s12599_s5  ;;  %v12090_v43 = vmul.f32 0.35355338, %v12085_v42 }
0x2df4   : > { %6880 = vrot.lane.b32.xlu0 %v12090_v43, %s12600_s6 }
0x2df6   : > { %6882 = vrot.lane.b32.xlu1 %v12085_v42, %s12601_s3  ;;  %s9543_s3 = sshll.u32 %s11000_s2, 7  ;;  %s12479_s2 = scalar_lea.sflag [#allocation3], %s646_s23 }
0x2df7   : > { %v6714_v44 = vpop.f32.mrf.mxu0 }
0x2df9   : > { %v10384_v45 = vpop.f32.mrf.mxu0 }
0x2e64   : > { %v6720_v36 = vpop.permute.xlu1 %6719 }
0x2e65   : > { %10386 = vmatpush3.xpose.msk.msra.mxu1 %vm880_vm1, %v6720_v36  ;;  %v9460_v36 = vld [vmem:[%s12531_s12 + $0x38] sm:$0xff] }
0x2e66   : > { %10390 = vmatprep.subr.mxu1 %v10868_v11  ;;  %v6881_v50 = vpop.permute.xlu0 %6880 }
0x2e68   : > { %v6883_v48 = vpop.permute.xlu1 %6882  ;;  %10388 = vmatmul.mubr.msk.f32.vlgmr.msra.gmra.mxu1 %vm880_vm1, %v12090_v43 }
0x2e69   : > { %10396 = vmatpush3.xpose.msk.msra.mxu0 %vm880_vm1, %v6883_v48  ;;  %10392 = vmatprep.mubr.msk.f32.mxu1 %vm10869_vm4, %v10868_v11 }
0x2e6a   : > { %10405 = vmatprep.subr.mxu0 %v10868_v11 }
0x2e6c   : > { %10398 = vmatmul.mubr.msk.f32.vlgmr.msra.gmra.mxu0 %vm880_vm1, %v6881_v50 }
0x2e6d   : > { %10407 = vmatprep.mubr.msk.f32.mxu0 %vm10869_vm4, %v10868_v11  ;;  %10406 = vmatpush3.msra.mxu0 %v9459_v10  ;;  %v9484_v10 = vld [vmem:[%s12533_s14 + $0x28] sm:$0xff] }
0x2e6e   : > { %10415 = vmatprep.subr.mxu0 %v10868_v11 }
0x2f28   : > { %v6792_v51 = vpop.f32.mrf.mxu1 }
0x2f29   : > { %v6796_v49 = vsel %vm880_vm1, %v6792_v51, -inf }
0x2f2a   : > { %6797 = vmax.xlane.f32.xlu1 %v6796_v49  ;;  %v10389_v52 = vpop.f32.mrf.mxu1 }
0x2f2c   : > { %v6954_v53 = vpop.f32.mrf.mxu0 }
0x2f2d   : > { %v6958_v29 = vsel %vm880_vm1, %v6954_v53, -inf }
0x2f2e   : > { %6959 = vmax.xlane.f32.xlu0 %v6958_v29  ;;  %v10399_v54 = vpop.f32.mrf.mxu0 }
0x2f44   : > { %6642 = vrot.lane.b32.xlu0 %v9463_v41, %s12591_s1 }
0x2f48   : > { %7194 = vrot.lane.b32.xlu0 %v12085_v42, %s12592_s0 }
0x2f4c   : > { %7192 = vrot.lane.b32.xlu0 %v12090_v43, %s12593_s27 }
0x2fb3   : > { %v6798_v39 = vpop.xlane.xlu1 %6797 }
0x2fb4   : > { %v6799_v55 = vsub.f32 %v6792_v51, %v6798_v39 }
0x2fb6   : > { %v6800_v56 = vmul.f32 1.442695, %v6799_v55 }
0x2fb7   : > { %v6960_v37 = vpop.xlane.xlu0 %6959 }
0x2fb8   : > { %10754 = vpow2.f32 %v6800_v56  ;;  %v6961_v47 = vsub.f32 %v6954_v53, %v6960_v37  ;;  %v9461_v37 = vld [vmem:[%s12531_s12 + $0x40] sm:$0xff] }
0x2fba   : > { %v6962_v46 = vmul.f32 1.442695, %v6961_v47 }
0x2fbb   : > { %v6643_v57 = vpop.permute.xlu0 %6642 }
0x2fbc   : > { %10756 = vpow2.f32 %v6962_v46  ;;  %v12114_v27 = vadd.f32 %v6714_v44, %v6643_v57 }
0x2fbe   : > { %10391 = vmatpush3.msra.mxu1 %v12114_v27 }
0x2fbf   : > { %10400 = vmatprep.subr.mxu1 %v10868_v11  ;;  %v7195_v13 = vpop.permute.xlu0 %7194 }
0x2fc3   : > { %v7193_v22 = vpop.permute.xlu0 %7192 }
0x2fc5   : > { %v10755_v58 = vpop.eup %10754 }
0x2fc6   : > { %v6802_v60 = vsel %vm880_vm1, %v10755_v58, 0.0 }
0x2fc7   : > { %6803 = vadd.xlane.f32.xlu1 %v6802_v60 }
0x2fc9   : > { %v10757_v59 = vpop.eup %10756 }
0x2fca   : > { %v6964_v5 = vsel %vm880_vm1, %v10757_v59, 0.0 }
0x2fcb   : > { %6965 = vadd.xlane.f32.xlu1 %v6964_v5 }
0x2fdc   : > { %6970 = vrot.lane.b32.xlu1 %v12114_v27, %s12600_s6 }
0x3050   : > { %v6804_v4 = vpop.xlane.xlu1 %6803 }
0x3051   : > { %10758 = vrcp.f32 %v6804_v4  ;;  %v9482_v4 = vld [vmem:[%s12531_s12 + $0x48] ss:$0 sm:$0xff] }
0x3054   : > { %v6966_v61 = vpop.xlane.xlu1 %6965 }
0x3055   : > { %10760 = vrcp.f32 %v6966_v61 }
0x3058   : > { %v6971_v18 = vpop.permute.xlu1 %6970 }
0x305e   : > { %v10759_v62 = vpop.eup %10758 }
0x305f   : > { %v6806_v3 = vmul.f32 %v10759_v62, %v10755_v58 }
0x3061   : > { %10393 = vmatmul.mubr.msk.f32.vlgmr.msra.gmra.mxu1 %vm880_vm1, %v6806_v3 }
0x3062   : > { %v10761_v19 = vpop.eup %10760  ;;  %10401 = vmatpush3.msra.mxu1 %v6971_v18  ;;  %10402 = vmatprep.mubr.msk.f32.mxu1 %vm10869_vm4, %v10868_v11 }
0x3063   : > { %v6968_v8 = vmul.f32 %v10761_v19, %v10757_v59  ;;  %10410 = vmatprep.subr.mxu1 %v10868_v11 }
0x3065   : > { %10403 = vmatmul.mubr.msk.f32.vlgmr.msra.gmra.mxu1 %vm880_vm1, %v6968_v8 }
0x3066   : > { %10412 = vmatprep.mubr.msk.f32.mxu1 %vm10869_vm4, %v10868_v11  ;;  %10411 = vmatpush3.msra.mxu1 %v9458_v9  ;;  %v12194_v9 = vld [vmem:[%s12533_s14 + $0x38] sm:$0xff] }
0x3067   : > { %10420 = vmatprep.subr.mxu1 %v10868_v11 }
0x3121   : > { %v6876_v12 = vpop.f32.mrf.mxu1 }
0x3122   : > { %10413 = vmatmul.mubr.msk.f32.vlgmr.msra.gmra.mxu1 %vm880_vm1, %v6876_v12 }
0x3123   : > { %v10394_v14 = vpop.f32.mrf.mxu1  ;;  %10422 = vmatprep.mubr.msk.f32.mxu1 %vm10869_vm4, %v10868_v11 }
0x3125   : > { %v7042_v17 = vpop.f32.mrf.mxu1 }
0x3126   : > { %10408 = vmatmul.mubr.msk.f32.vlgmr.msra.gmra.mxu0 %vm880_vm1, %v7042_v17 }
0x3127   : > { %10416 = vmatpush3.xpose.msk.msra.mxu0 %vm880_vm1, %v7195_v13  ;;  %v10404_v21 = vpop.f32.mrf.mxu1  ;;  %10417 = vmatprep.mubr.msk.f32.mxu0 %vm10869_vm4, %v10868_v11 }
0x3128   : > { %10425 = vmatprep.subr.mxu0 %v10868_v11 }
0x312a   : > { %10418 = vmatmul.mubr.msk.f32.vlgmr.msra.gmra.mxu0 %vm880_vm1, %v7193_v22  ;;  %v12218_v22 = vld [vmem:[%s12533_s14 + $0x48] ss:$0 sm:$0xff] }
0x312b   : > { %10427 = vmatprep.mubr.msk.f32.mxu0 %vm10869_vm4, %v10868_v11  ;;  %10426 = vmatpush3.msra.mxu0 %v9460_v36 }
0x312c   : > { %10435 = vmatprep.subr.mxu0 %v10868_v11 }
0x31e2   : > { %v7188_v25 = vpop.f32.mrf.mxu1 }
0x31e4   : > { %v10414_v6 = vpop.f32.mrf.mxu1 }
0x31e6   : > { %v7115_v1 = vpop.f32.mrf.mxu0 }
0x31e7   : > { %v7189_v35 = vadd.f32 %v7188_v25, %v7115_v1 }
0x31e8   : > { %v10409_v26 = vpop.f32.mrf.mxu0 }
0x31ea   : > { %v7266_v0 = vpop.f32.mrf.mxu0 }
0x31eb   : > { %v7270_v7 = vsel %vm880_vm1, %v7266_v0, -inf }
0x31ec   : > { %7271 = vmax.xlane.f32.xlu1 %v7270_v7  ;;  %v10419_v28 = vpop.f32.mrf.mxu0 }
0x31ed   : > { %v9483_v28 = vld [vmem:[%s12532_s13 + $0x2] sm:$0x3] }
0x31fd   : > { %7433 = vrot.lane.b32.xlu1 %v12085_v42, %s12594_s24  ;;  %s10870_s24 = smov [#allocation2]  }
0x3201   : > { %7431 = vrot.lane.b32.xlu1 %v12090_v43, %s12595_s28 }
0x3275   : > { %v7272_v30 = vpop.xlane.xlu1 %7271 }
0x3276   : > { %v7273_v33 = vsub.f32 %v7266_v0, %v7272_v30  ;;  %v7694_v30 = vrot.slane %v9483_v28, %v11264_v16 }
0x3278   : > { %v7274_v34 = vmul.f32 1.442695, %v7273_v33 }
0x3279   : > { %v7434_v44 = vpop.permute.xlu1 %7433 }
0x327a   : > { %10762 = vpow2.f32 %v7274_v34 }
0x327d   : > { %v7432_v45 = vpop.permute.xlu1 %7431 }
0x3287   : > { %v10763_v63 = vpop.eup %10762 }
0x3288   : > { %v7276_v41 = vsel %vm880_vm1, %v10763_v63, 0.0 }
0x3289   : > { %7277 = vadd.xlane.f32.xlu0 %v7276_v41 }
0x329f   : > { %7281 = vrot.lane.b32.xlu0 %v12114_v27, %s12593_s27 }
0x3312   : > { %v7278_v31 = vpop.xlane.xlu0 %7277 }
0x3313   : > { %10764 = vrcp.f32 %v7278_v31 }
0x3316   : > { %v7282_v40 = vpop.permute.xlu0 %7281 }
0x3317   : > { %10421 = vmatpush3.msra.mxu1 %v7282_v40 }
0x3318   : > { %10430 = vmatprep.subr.mxu1 %v10868_v11 }
0x3320   : > { %v10765_v42 = vpop.eup %10764 }
0x3321   : > { %v7280_v43 = vmul.f32 %v10765_v42, %v10763_v63  ;;  %v7699_v63 = vrot.slane %v9483_v28, %v11270_v20 }
0x3323   : > { %10423 = vmatmul.mubr.msk.f32.vlgmr.msra.gmra.mxu1 %vm880_vm1, %v7280_v43 }
0x3324   : > { %10431 = vmatpush3.xpose.msk.msra.mxu1 %vm880_vm1, %v7434_v44  ;;  %10432 = vmatprep.mubr.msk.f32.mxu1 %vm10869_vm4, %v10868_v11 }
0x3325   : > { %10440 = vmatprep.subr.mxu1 %v10868_v11 }
0x3327   : > { %10433 = vmatmul.mubr.msk.f32.vlgmr.msra.gmra.mxu1 %vm880_vm1, %v7432_v45 }
0x3328   : > { %10442 = vmatprep.mubr.msk.f32.mxu1 %vm10869_vm4, %v10868_v11  ;;  %10441 = vmatpush3.msra.mxu1 %v9461_v37 }
0x33e3   : > { %v7353_v48 = vpop.f32.mrf.mxu1 }
0x33e4   : > { %10428 = vmatmul.mubr.msk.f32.vlgmr.msra.gmra.mxu0 %vm880_vm1, %v7353_v48 }
0x33e5   : > { %v10424_v50 = vpop.f32.mrf.mxu1  ;;  %10437 = vmatprep.mubr.msk.f32.mxu0 %vm10869_vm4, %v10868_v11 }
0x33e7   : > { %v7505_v51 = vpop.f32.mrf.mxu1 }
0x33e8   : > { %v7509_v49 = vsel %vm880_vm1, %v7505_v51, -inf }
0x33e9   : > { %7510 = vmax.xlane.f32.xlu0 %v7509_v49  ;;  %v10434_v52 = vpop.f32.mrf.mxu1 }
0x33ff   : > { %7520 = vrot.lane.b32.xlu0 %v12114_v27, %s12595_s28 }
0x3403   : > { %7800 = vrot.lane.b32.xlu0 %v12194_v9, %s12599_s5 }
0x3472   : > { %v7511_v53 = vpop.xlane.xlu0 %7510 }
0x3473   : > { %v7512_v29 = vsub.f32 %v7505_v51, %v7511_v53 }
0x3475   : > { %v7513_v54 = vmul.f32 1.442695, %v7512_v29 }
0x3476   : > { %v7521_v39 = vpop.permute.xlu0 %7520 }
0x3477   : > { %10766 = vpow2.f32 %v7513_v54  ;;  %10436 = vmatpush3.msra.mxu0 %v7521_v39 }
0x3478   : > { %10445 = vmatprep.subr.mxu0 %v10868_v11 }
0x347a   : > { %v7801_v25 = vpop.permute.xlu0 %7800 }
0x3484   : > { %v10767_v55 = vpop.eup %10766 }
0x3485   : > { %v7515_v56 = vsel %vm880_vm1, %v10767_v55, 0.0 }
0x3486   : > { %7516 = vadd.xlane.f32.xlu1 %v7515_v56 }
0x34a4   : > { %v7426_v47 = vpop.f32.mrf.mxu0 }
0x34a5   : > { %v7430_v46 = vadd.f32 %v7426_v47, %v7189_v35 }
0x34a6   : > { %v10429_v57 = vpop.f32.mrf.mxu0 }
0x350f   : > { %v7517_v27 = vpop.xlane.xlu1 %7516 }
0x3510   : > { %10768 = vrcp.f32 %v7517_v27 }
0x351d   : > { %v10769_v58 = vpop.eup %10768 }
0x351e   : > { %v7519_v60 = vmul.f32 %v10769_v58, %v10767_v55  ;;  %v12280_v55 = vld [vmem:[%s11119_s26] ss:$0 sm:$0xff] }
0x3520   : > { %10438 = vmatmul.mubr.msk.f32.vlgmr.msra.gmra.mxu0 %vm880_vm1, %v7519_v60 }
0x3521   : > { %10453 = vmatprep.mubr.msk.f32.mxu0 %vm10869_vm4, %v10868_v11 }
0x35e0   : > { %v7592_v59 = vpop.f32.mrf.mxu0 }
0x35e1   : > { %10443 = vmatmul.mubr.msk.f32.vlgmr.msra.gmra.mxu1 %vm880_vm1, %v7592_v59 }
0x35e2   : > { %v10439_v5 = vpop.f32.mrf.mxu0  ;;  %10464 = vmatprep.mubr.msk.f32.mxu1 %vm683_vm0, %v11770_v23  ;;  %v9487_v23 = vld [vmem:[%s12533_s14 + $0x40] sm:$0xff] }
0x35e3   : > { %10446 = vmatpush3.msra.mxu0 %v9487_v23 }
0x35e4   : > { %10447 = vmatprep.subr.mxu0 %v10868_v11 }
0x35e5   : > { %10448 = vmatpush3.msra.mxu0 %v12194_v9 }
0x35e6   : > { %10449 = vmatprep.subr.mxu0 %v10868_v11 }
0x36a1   : > { %v7665_v61 = vpop.f32.mrf.mxu1 }
0x36a2   : > { %v7669_v62 = vadd.f32 %v7665_v61, %v7430_v46 }
0x36a3   : > { %v10444_v3 = vpop.f32.mrf.mxu1 }
0x36a4   : > { %v7674_v18 = vadd.f32 %v9482_v4, %v7669_v62 }
0x36a6   : > { %v7675_v19 = vadd.f32 %v7674_v18, %v12057_v38  ;;  %v9485_v38 = vld [vmem:[%s12533_s14 + $0x30] sm:$0xff] }
0x36a7   : > { %7798 = vrot.lane.b32.xlu0 %v9485_v38, %s12599_s5  ;;  %10450 = vmatpush3.msra.mxu0 %v9485_v38 }
0x36a8   : > { %v7678_v8 = vsel %vm683_vm0, %v7675_v19, 0.0  ;;  %10451 = vmatprep.subr.mxu0 %v10868_v11 }
0x36a9   : > { %7679 = vadd.xlane.f32.xlu1 %v7678_v8  ;;  %10452 = vmatpush3.msra.mxu0 %v9484_v10 }
0x36ab   : > { %7796 = vrot.lane.b32.xlu0 %v9484_v10, %s12599_s5 }
0x3719   : > { %v7799_v35 = vpop.permute.xlu0 %7798 }
0x371d   : > { %v7797_v7 = vpop.permute.xlu0 %7796 }
0x3732   : > { %v7680_v12 = vpop.xlane.xlu1 %7679 }
0x3733   : > { %v7681_v13 = vmul.f32 0.03125, %v7680_v12 }
0x3735   : > { %v7682_v14 = vsub.f32 %v7675_v19, %v7681_v13 }
0x3737   : > { %v7683_v17 = vmul.f32 %v7682_v14, %v7682_v14 }
0x3739   : > { %v7684_v21 = vsel %vm683_vm0, %v7683_v17, 0.0  ;;  %v9489_v17 = vld [vmem:[%s12534_s15 + $0x28] sm:$0xff] }
0x373a   : > { %7685 = vadd.xlane.f32.xlu1 %v7684_v21 }
0x374b   : > { %7802 = vrot.lane.b32.xlu1 %v9487_v23, %s12599_s5 }
0x374f   : > { %7809 = vrot.lane.b32.xlu1 %v12218_v22, %s12599_s5  ;;  %s9195_s5 = sshll.u32 %s12066_s20, 4  ;;  %s12473_s5 = int_to_ptr.vmem [resolvable:$true] %s9195_s5 }
0x37c3   : > { %v7686_v6 = vpop.xlane.xlu1 %7685 }
0x37c4   : > { %v7687_v1 = vmul.f32 0.03125, %v7686_v6 }
0x37c6   : > { %v7688_v26 = vadd.f32 1e-05, %v7687_v1 }
0x37c7   : > { %v7803_v0 = vpop.permute.xlu1 %7802 }
0x37c8   : > { %10770 = vrsqrt.f32 %v7688_v26  ;;  %10456 = vmatprep.subr.mxu1 %v7803_v0 }
0x37c9   : > { %10457 = vmatpush3.msra.mxu1 %v7803_v0 }
0x37ca   : > { %10458 = vmatprep.subr.mxu1 %v7801_v25 }
0x37cb   : > { %10459 = vmatpush3.msra.mxu1 %v7801_v25  ;;  %v7810_v40 = vpop.permute.xlu1 %7809 }
0x37cc   : > { %10460 = vmatprep.subr.mxu1 %v7799_v35 }
0x37cd   : > { %10461 = vmatpush3.msra.mxu1 %v7799_v35  ;;  %v9490_v35 = vld [vmem:[%s12534_s15 + $0x30] sm:$0xff] }
0x37ce   : > { %10462 = vmatprep.subr.mxu1 %v7797_v7 }
0x37cf   : > { %10463 = vmatpush3.msra.mxu1 %v7797_v7 }
0x37d0   : > { %10465 = vmatmul.mubr.msk.f32.vlgmr.msra.gmra.mxu1 %vm683_vm0, %v11780_v2  ;;  %10478 = vmatprep.subr.mxu1 %v10868_v11 }
0x37d1   : > { %10482 = vmatprep.mubr.msk.f32.mxu1 %vm10869_vm4, %v10868_v11 }
0x37d5   : > { %v10771_v33 = vpop.eup %10770 }
0x37d6   : > { %v7690_v34 = vmul.f32 %v10771_v33, %v7682_v14 }
0x37d8   : > { %v7695_v41 = vmul.f32 %v7694_v30, %v7690_v34 }
0x37da   : > { %v12232_v31 = vadd.f32 %v7699_v63, %v7695_v41 }
0x37dc   : > { %v7701_v2 = vadd.f32 %v12062_v32, %v12232_v31 }
0x37de   : > { %10454 = vmatmul.mubr.msk.f32.vlgmr.msra.gmra.mxu0 %vm683_vm0, %v7701_v2 }
0x37df   : > { %10475 = vmatprep.mubr.msk.f32.mxu0 %vm683_vm0, %v11760_v15 }
0x3890   : > { %v10466_v42 = vpop.f32.mrf.mxu1 }
0x3891   : > { %v12239_v44 = vadd.f32 %v10466_v42, %v7810_v40 }
0x3892   : > { %v7878_v43 = vpop.f32.mrf.mxu1 }
0x3893   : > { %v12241_v45 = vadd.f32 %v7878_v43, %v7810_v40  ;;  %8144 = vrot.lane.b32.xlu0 %v12239_v44, %s12600_s6  ;;  %10479 = vmatpush3.xpose.msk.msra.mxu1 %vm880_vm1, %v12239_v44 }
0x3894   : > { %10480 = vmatprep.subr.mxu1 %v10868_v11 }
0x3895   : > { %8142 = vrot.lane.b32.xlu1 %v12241_v45, %s12600_s6 }
0x3897   : > { %10481 = vmatpush3.xpose.msk.msra.mxu1 %vm880_vm1, %v12241_v45 }
0x3898   : > { %10492 = vmatprep.subr.mxu1 %v10868_v11 }
0x3899   : > { %7893 = vrot.lane.b32.xlu1 %v9487_v23, %s12591_s1 }
0x389d   : > { %7889 = vrot.lane.b32.xlu1 %v9485_v38, %s12591_s1 }
0x389e   : > { %v7787_v15 = vpop.f32.mrf.mxu0 }
0x389f   : > { %v7788_v32 = vadd.f32 %v12218_v22, %v7787_v15 }
0x38a0   : > { %v10455_v36 = vpop.f32.mrf.mxu0 }
0x38a1   : > { %v12256_v48 = vmul.f32 0.35355338, %v7788_v32 }
0x38a3   : > { %8140 = vrot.lane.b32.xlu0 %v12256_v48, %s12600_s6  ;;  %10483 = vmatmul.mubr.msk.f32.vlgmr.msra.gmra.mxu1 %vm880_vm1, %v12256_v48 }
0x38a4   : > { %10496 = vmatprep.mubr.msk.f32.mxu1 %vm10869_vm4, %v10868_v11 }
0x38a7   : > { %7891 = vrot.lane.b32.xlu0 %v12194_v9, %s12591_s1 }
0x38ab   : > { %7887 = vrot.lane.b32.xlu0 %v9484_v10, %s12591_s1 }
0x3905   : > { %v8145_v50 = vpop.permute.xlu0 %8144 }
0x3906   : > { %10493 = vmatpush3.xpose.msk.msra.mxu1 %vm880_vm1, %v8145_v50 }
0x3907   : > { %v8143_v51 = vpop.permute.xlu1 %8142  ;;  %10494 = vmatprep.subr.mxu1 %v10868_v11 }
0x390a   : > { %10495 = vmatpush3.xpose.msk.msra.mxu1 %vm880_vm1, %v8143_v51 }
0x390b   : > { %v7894_v49 = vpop.permute.xlu1 %7893  ;;  %10511 = vmatprep.subr.mxu1 %v10868_v11 }
0x390c   : > { %10467 = vmatprep.subr.mxu0 %v7894_v49 }
0x390d   : > { %10468 = vmatpush3.msra.mxu0 %v7894_v49 }
0x390f   : > { %v7890_v29 = vpop.permute.xlu1 %7889 }
0x3915   : > { %v8141_v52 = vpop.permute.xlu0 %8140 }
0x3916   : > { %10497 = vmatmul.mubr.msk.f32.vlgmr.msra.gmra.mxu1 %vm880_vm1, %v8141_v52 }
0x3917   : > { %10513 = vmatprep.mubr.msk.f32.mxu1 %vm10869_vm4, %v10868_v11  ;;  %10512 = vmatpush3.msra.mxu1 %v9489_v17 }
0x3918   : > { %10523 = vmatprep.subr.mxu1 %v10868_v11 }
0x3919   : > { %v7892_v53 = vpop.permute.xlu0 %7891 }
0x391a   : > { %10469 = vmatprep.subr.mxu0 %v7892_v53 }
0x391b   : > { %10470 = vmatpush3.msra.mxu0 %v7892_v53 }
0x391c   : > { %10471 = vmatprep.subr.mxu0 %v7890_v29 }
0x391d   : > { %v7888_v54 = vpop.permute.xlu0 %7887  ;;  %10472 = vmatpush3.msra.mxu0 %v7890_v29 }
0x391e   : > { %10473 = vmatprep.subr.mxu0 %v7888_v54 }
0x391f   : > { %10474 = vmatpush3.msra.mxu0 %v7888_v54 }
0x3920   : > { %10476 = vmatmul.mubr.msk.f32.vlgmr.msra.gmra.mxu0 %vm683_vm0, %v11774_v24  ;;  %10485 = vmatprep.subr.mxu0 %v10868_v11 }
0x3921   : > { %10489 = vmatprep.mubr.msk.f32.mxu0 %vm10869_vm4, %v10868_v11 }
0x3963   : > { %v8052_v39 = vpop.f32.mrf.mxu1 }
0x3964   : > { %v8053_v56 = vadd.f32 %v12280_v55, %v8052_v39 }
0x3965   : > { %v10484_v37 = vpop.f32.mrf.mxu1 }
0x3966   : > { %v8056_v47 = vsel %vm966_vm2, %v8053_v56, -inf }
0x3967   : > { %8057 = vmax.xlane.f32.xlu1 %v8056_v47 }
0x39d6   : > { %v8218_v46 = vpop.f32.mrf.mxu1 }
0x39d7   : > { %v8219_v57 = vadd.f32 %v12280_v55, %v8218_v46 }
0x39d8   : > { %v10498_v27 = vpop.f32.mrf.mxu1 }
0x39d9   : > { %v8222_v24 = vsel %vm966_vm2, %v8219_v57, -inf }
0x39da   : > { %8223 = vmax.xlane.f32.xlu0 %v8222_v24 }
0x39e0   : > { %v10477_v61 = vpop.f32.mrf.mxu0 }
0x39e2   : > { %v7968_v19 = vpop.f32.mrf.mxu0 }
0x39f0   : > { %v8058_v58 = vpop.xlane.xlu1 %8057  ;;  %7899 = vrot.lane.b32.xlu0 %v12218_v22, %s12591_s1  ;;  %s12602_s1 = sld [smem:[#allocation21_spill]] }
0x39f1   : > { %v8059_v60 = vsub.f32 %v8053_v56, %v8058_v58 }
0x39f3   : > { %v8060_v59 = vmul.f32 1.442695, %v8059_v60 }
0x39f5   : > { %10772 = vpow2.f32 %v8060_v59  ;;  %v9491_v59 = vld [vmem:[%s12534_s15 + $0x38] sm:$0xff] }
0x39f6   : > { %s12471_s7 = scalar_lea.hbm %s12602_s1, %s9543_s3 }
0x3a02   : > { %v10773_v5 = vpop.eup %10772 }
0x3a03   : > { %v8062_v4 = vsel %vm966_vm2, %v10773_v5, 0.0 }
0x3a04   : > { %8063 = vadd.xlane.f32.xlu1 %v8062_v4 }
0x3a63   : > { %v8224_v62 = vpop.xlane.xlu0 %8223 }
0x3a64   : > { %v8225_v3 = vsub.f32 %v8219_v57, %v8224_v62 }
0x3a66   : > { %v8226_v18 = vmul.f32 1.442695, %v8225_v3 }
0x3a67   : > { %v7900_v8 = vpop.permute.xlu0 %7899 }
0x3a68   : > { %10774 = vpow2.f32 %v8226_v18  ;;  %v12289_v9 = vadd.f32 %v7968_v19, %v7900_v8  ;;  %v12291_v23 = vadd.f32 %v10477_v61, %v7900_v8  ;;  %v9492_v8 = vld [vmem:[%s12534_s15 + $0x40] sm:$0xff] }
0x3a6a   : > { %10486 = vmatpush3.msra.mxu0 %v12291_v23  ;;  %8235 = vrot.lane.b32.xlu0 %v12289_v9, %s12600_s6 }
0x3a6b   : > { %10487 = vmatprep.subr.mxu0 %v10868_v11 }
0x3a6c   : > { %10488 = vmatpush3.msra.mxu0 %v12289_v9 }
0x3a6d   : > { %10499 = vmatprep.subr.mxu0 %v10868_v11 }
0x3a6e   : > { %8464 = vrot.lane.b32.xlu0 %v12239_v44, %s12593_s27 }
0x3a72   : > { %8460 = vrot.lane.b32.xlu0 %v12256_v48, %s12593_s27 }
0x3a75   : > { %v10775_v38 = vpop.eup %10774 }
0x3a76   : > { %8708 = vrot.lane.b32.xlu0 %v12241_v45, %s12595_s28  ;;  %v8228_v10 = vsel %vm966_vm2, %v10775_v38, 0.0 }
0x3a77   : > { %8229 = vadd.xlane.f32.xlu1 %v8228_v10 }
0x3a88   : > { %8237 = vrot.lane.b32.xlu1 %v12291_v23, %s12600_s6  ;;  %s12603_s6 = smov %s12602_s1 }
0x3a8c   : > { %8462 = vrot.lane.b32.xlu1 %v12241_v45, %s12593_s27 }
0x3a8d   : > { %v8064_v12 = vpop.xlane.xlu1 %8063 }
0x3a8e   : > { %10776 = vrcp.f32 %v8064_v12 }
0x3a90   : > { %8710 = vrot.lane.b32.xlu1 %v12239_v44, %s12595_s28 }
0x3a94   : > { %8706 = vrot.lane.b32.xlu1 %v12256_v48, %s12595_s28 }
0x3a9b   : > { %v10777_v13 = vpop.eup %10776 }
0x3a9c   : > { %v8066_v14 = vmul.f32 %v10777_v13, %v10773_v5 }
0x3a9e   : > { %10490 = vmatmul.mubr.msk.f32.vlgmr.msra.gmra.mxu0 %vm966_vm2, %v8066_v14  ;;  %v9520_v14 = vld [vmem:[%s12534_s15 + $0x48] ss:$0 sm:$0xff] }
0x3a9f   : > { %10503 = vmatprep.mubr.msk.f32.mxu0 %vm10869_vm4, %v10868_v11 }
0x3adc   : > { %v8236_v25 = vpop.permute.xlu0 %8235 }
0x3ae0   : > { %v8465_v28 = vpop.permute.xlu0 %8464 }
0x3ae4   : > { %v8461_v34 = vpop.permute.xlu0 %8460 }
0x3ae8   : > { %v8709_v41 = vpop.permute.xlu0 %8708 }
0x3b00   : > { %v8230_v21 = vpop.xlane.xlu1 %8229 }
0x3b01   : > { %10778 = vrcp.f32 %v8230_v21 }
0x3b04   : > { %v8238_v22 = vpop.permute.xlu1 %8237 }
0x3b05   : > { %10500 = vmatpush3.msra.mxu0 %v8238_v22 }
0x3b06   : > { %10501 = vmatprep.subr.mxu0 %v10868_v11 }
0x3b07   : > { %10502 = vmatpush3.msra.mxu0 %v8236_v25 }
0x3b08   : > { %10506 = vmatprep.subr.mxu0 %v10868_v11  ;;  %v8463_v33 = vpop.permute.xlu1 %8462 }
0x3b0c   : > { %v8711_v63 = vpop.permute.xlu1 %8710 }
0x3b0e   : > { %v10779_v6 = vpop.eup %10778 }
0x3b0f   : > { %v8232_v1 = vmul.f32 %v10779_v6, %v10775_v38 }
0x3b10   : > { %v8707_v2 = vpop.permute.xlu1 %8706 }
0x3b11   : > { %10504 = vmatmul.mubr.msk.f32.vlgmr.msra.gmra.mxu0 %vm966_vm2, %v8232_v1 }
0x3b12   : > { %10507 = vmatpush3.msra.mxu0 %v9490_v35  ;;  %10508 = vmatprep.mubr.msk.f32.mxu0 %vm10869_vm4, %v10868_v11 }
0x3b13   : > { %10516 = vmatprep.subr.mxu0 %v10868_v11 }
0x3b5e   : > { %v8136_v26 = vpop.f32.mrf.mxu0 }
0x3b5f   : > { %10514 = vmatmul.mubr.msk.f32.vlgmr.msra.gmra.mxu1 %vm880_vm1, %v8136_v26 }
0x3b60   : > { %v10491_v0 = vpop.f32.mrf.mxu0  ;;  %10527 = vmatprep.mubr.msk.f32.mxu1 %vm10869_vm4, %v10868_v11 }
0x3bd1   : > { %v8310_v7 = vpop.f32.mrf.mxu0 }
0x3bd2   : > { %10509 = vmatmul.mubr.msk.f32.vlgmr.msra.gmra.mxu0 %vm880_vm1, %v8310_v7 }
0x3bd3   : > { %10517 = vmatpush3.xpose.msk.msra.mxu0 %vm880_vm1, %v8465_v28  ;;  %v10505_v30 = vpop.f32.mrf.mxu0  ;;  %10520 = vmatprep.mubr.msk.f32.mxu0 %vm10869_vm4, %v10868_v11 }
0x3bd4   : > { %10518 = vmatprep.subr.mxu0 %v10868_v11  ;;  %v9525_v30 = vld [vmem:[%s12536_s17 + $0x40] sm:$0xff] }
0x3bd7   : > { %10519 = vmatpush3.xpose.msk.msra.mxu0 %vm880_vm1, %v8463_v33  ;;  %v9524_v33 = vld [vmem:[%s12536_s17 + $0x38] sm:$0xff] }
0x3bd8   : > { %10535 = vmatprep.subr.mxu0 %v10868_v11 }
0x3bda   : > { %10521 = vmatmul.mubr.msk.f32.vlgmr.msra.gmra.mxu0 %vm880_vm1, %v8461_v34  ;;  %v9522_v34 = vld [vmem:[%s12536_s17 + $0x28] sm:$0xff] }
0x3bdb   : > { %10536 = vmatpush3.xpose.msk.msra.mxu0 %vm880_vm1, %v8711_v63  ;;  %10539 = vmatprep.mubr.msk.f32.mxu0 %vm10869_vm4, %v10868_v11  ;;  %v9534_v63 = vld [vmem:[%s12537_s18 + $0x80] sm:$0xff] }
0x3bdc   : > { %10537 = vmatprep.subr.mxu0 %v10868_v11 }
0x3bdf   : > { %10538 = vmatpush3.xpose.msk.msra.mxu0 %vm880_vm1, %v8709_v41  ;;  %v9533_v41 = vld [vmem:[%s12537_s18 + $0x78] sm:$0xff] }
0x3be0   : > { %10554 = vmatprep.subr.mxu0 %v10868_v11 }
0x3be2   : > { %10540 = vmatmul.mubr.msk.f32.vlgmr.msra.gmra.mxu0 %vm880_vm1, %v8707_v2  ;;  %v9532_v2 = vld [vmem:[%s12537_s18 + $0x70] sm:$0xff] }
0x3be3   : > { %10562 = vmatprep.mubr.msk.f32.mxu0 %vm10869_vm4, %v10868_v11  ;;  %10555 = vmatpush3.msra.mxu0 %v9525_v30 }
0x3be4   : > { %10556 = vmatprep.subr.mxu0 %v10868_v11 }
0x3be5   : > { %10557 = vmatpush3.msra.mxu0 %v9524_v33 }
0x3be6   : > { %10558 = vmatprep.subr.mxu0 %v10868_v11 }
0x3c1f   : > { %v12350_v40 = vpop.f32.mrf.mxu1 }
0x3c21   : > { %v10515_v42 = vpop.f32.mrf.mxu1 }
0x3c22   : > { %v9530_v42 = vld [vmem:[%s12537_s18 + $0x60] sm:$0xff] }
0x3c92   : > { %v12352_v44 = vpop.f32.mrf.mxu0 }
0x3c94   : > { %v10510_v43 = vpop.f32.mrf.mxu0 }
0x3c9a   : > { %v8538_v45 = vpop.f32.mrf.mxu0 }
0x3c9b   : > { %v8539_v15 = vadd.f32 %v12280_v55, %v8538_v45 }
0x3c9c   : > { %v10522_v32 = vpop.f32.mrf.mxu0 }
0x3c9d   : > { %v8542_v36 = vsel %vm966_vm2, %v8539_v15, -inf }
0x3c9e   : > { %8543 = vmax.xlane.f32.xlu0 %v8542_v36 }
0x3ca2   : > { %v8784_v48 = vpop.f32.mrf.mxu0 }
0x3ca3   : > { %v8785_v51 = vadd.f32 %v12280_v55, %v8784_v48 }
0x3ca4   : > { %v10541_v50 = vpop.f32.mrf.mxu0 }
0x3ca5   : > { %v8788_v49 = vsel %vm966_vm2, %v8785_v51, -inf }
0x3cb4   : > { %8555 = vrot.lane.b32.xlu0 %v12291_v23, %s12593_s27 }
0x3cd3   : > { %8789 = vmax.xlane.f32.xlu0 %v8788_v49 }
0x3ce9   : > { %8801 = vrot.lane.b32.xlu0 %v12291_v23, %s12595_s28 }
0x3d27   : > { %v8544_v52 = vpop.xlane.xlu0 %8543 }
0x3d28   : > { %v8545_v53 = vsub.f32 %v8539_v15, %v8544_v52  ;;  %v9521_v15 = vld [vmem:[%s12535_s16 + $0x2] sm:$0x3]  ;;  %v9529_v52 = vld [vmem:[%s12537_s18 + $0x58] sm:$0xff] }
0x3d29   : > { %v8976_v32 = vrot.slane %v9521_v15, %v11264_v16  ;;  %v8981_v50 = vrot.slane %v9521_v15, %v11270_v20 }
0x3d2a   : > { %v8546_v29 = vmul.f32 1.442695, %v8545_v53  ;;  %v9528_v53 = vld [vmem:[%s12537_s18 + $0x50] sm:$0xff] }
0x3d2b   : > { %v8556_v54 = vpop.permute.xlu0 %8555 }
0x3d2c   : > { %10780 = vpow2.f32 %v8546_v29  ;;  %10524 = vmatpush3.msra.mxu1 %v8556_v54  ;;  %v9527_v29 = vld [vmem:[%s12537_s18 + $0x48] sm:$0xff] }
0x3d2d   : > { %10525 = vmatprep.subr.mxu1 %v10868_v11  ;;  %v9537_v54 = vld [vmem:[%s12536_s17 + $0x48] ss:$0 sm:$0xff] }
0x3d39   : > { %v10781_v39 = vpop.eup %10780 }
0x3d3a   : > { %v8548_v56 = vsel %vm966_vm2, %v10781_v39, 0.0 }
0x3d3b   : > { %8549 = vadd.xlane.f32.xlu1 %v8548_v56 }
0x3d4c   : > { %8553 = vrot.lane.b32.xlu1 %v12289_v9, %s12593_s27  ;;  %s10798_s27 = scalar_lea.vmem %s12473_s5, 256 }
0x3d4d   : > { %p10799_p11 = scmp.ne.s32.totalorder %s12473_s5, %s10798_s27 }
0x3d4f   : > { %p10800_p12 = pnand %p10799_p11, %p11017_p5 }
0x3d51   : > { %p10801_p13 = pneg %p10800_p12 }
0x3d5c   : > { %v8790_v55 = vpop.xlane.xlu0 %8789 }
0x3d5d   : > { %v8791_v37 = vsub.f32 %v8785_v51, %v8790_v55 }
0x3d5f   : > { %v8792_v47 = vmul.f32 1.442695, %v8791_v37 }
0x3d60   : > { %v8802_v62 = vpop.permute.xlu0 %8801 }
0x3d61   : > { %10782 = vpow2.f32 %v8792_v47  ;;  %v9539_v47 = vld [vmem:[%s12537_s18 + $0x88] ss:$0 sm:$0xff] }
0x3d6e   : > { %v10783_v46 = vpop.eup %10782 }
0x3d6f   : > { %v8794_v57 = vsel %vm966_vm2, %v10783_v46, 0.0 }
0x3d70   : > { %8795 = vadd.xlane.f32.xlu1 %v8794_v57 }
0x3d81   : > { %8799 = vrot.lane.b32.xlu1 %v12289_v9, %s12595_s28  ;;  %v8457_v9 = vadd.f32 %v12350_v40, %v12352_v44  ;;  %v9531_v40 = vld [vmem:[%s12537_s18 + $0x68] sm:$0xff]  ;;  %s10802_s28 = sshll.u32 %s10870_s24, 4  ;;  %s10803_s28 = int_to_ptr.vmem [resolvable:$false] %s10802_s28 }
0x3d82   : > { %s10804_s25 = scalar_lea.vmem %s10803_s28, 512  ;;  %p10805_p0 = scmp.lt.s32.totalorder %s12473_s5, %s10803_s28 }
0x3d83   : > { %p10806_p1 = scmp.lt.s32.totalorder %s10804_s25, %s10798_s27 }
0x3d85   : > { %p10807_p2 = por %p10806_p1, %p10805_p0 }
0x3d87   : > { %p10808_p3 = pnand %p10807_p2, %p10801_p13 }
0x3dc4   : > { %v8550_v27 = vpop.xlane.xlu1 %8549 }
0x3dc5   : > { %10784 = vrcp.f32 %v8550_v27 }
0x3dc8   : > { %v8554_v24 = vpop.permute.xlu1 %8553 }
0x3dc9   : > { %10526 = vmatpush3.msra.mxu1 %v8554_v24 }
0x3dca   : > { %10530 = vmatprep.subr.mxu1 %v10868_v11 }
0x3dd2   : > { %v10785_v58 = vpop.eup %10784 }
0x3dd3   : > { %v8552_v60 = vmul.f32 %v10785_v58, %v10781_v39 }
0x3dd5   : > { %10528 = vmatmul.mubr.msk.f32.vlgmr.msra.gmra.mxu1 %vm966_vm2, %v8552_v60 }
0x3dd6   : > { %10531 = vmatpush3.msra.mxu1 %v9491_v59  ;;  %10532 = vmatprep.mubr.msk.f32.mxu1 %vm10869_vm4, %v10868_v11 }
0x3dd7   : > { %10542 = vmatprep.subr.mxu1 %v10868_v11 }
0x3df9   : > { %v8796_v5 = vpop.xlane.xlu1 %8795 }
0x3dfa   : > { %10786 = vrcp.f32 %v8796_v5 }
0x3dfd   : > { %v8800_v18 = vpop.permute.xlu1 %8799 }
0x3e07   : > { %v10787_v4 = vpop.eup %10786 }
0x3e08   : > { %v8798_v19 = vmul.f32 %v10787_v4, %v10783_v46 }
0x3e95   : > { %v8628_v61 = vpop.f32.mrf.mxu1 }
0x3e96   : > { %10533 = vmatmul.mubr.msk.f32.vlgmr.msra.gmra.mxu1 %vm880_vm1, %v8628_v61 }
0x3e97   : > { %10543 = vmatpush3.msra.mxu1 %v8802_v62  ;;  %v10529_v3 = vpop.f32.mrf.mxu1  ;;  %10546 = vmatprep.mubr.msk.f32.mxu1 %vm10869_vm4, %v10868_v11 }
0x3e98   : > { %10544 = vmatprep.subr.mxu1 %v10868_v11 }
0x3e99   : > { %10545 = vmatpush3.msra.mxu1 %v8800_v18  ;;  %v9536_v18 = vld [vmem:[%s12538_s19 + $0x2] sm:$0x3] }
0x3e9a   : > { %10547 = vmatmul.mubr.msk.f32.vlgmr.msra.gmra.mxu1 %vm966_vm2, %v8798_v19  ;;  %10549 = vmatprep.subr.mxu1 %v10868_v11  ;;  %v9173_v19 = vrot.slane %v9536_v18, %v11264_v16 }
0x3e9b   : > { %10551 = vmatprep.mubr.msk.f32.mxu1 %vm10869_vm4, %v10868_v11  ;;  %10550 = vmatpush3.msra.mxu1 %v9492_v8 }
0x3e9c   : > { %10565 = vmatprep.subr.mxu1 %v10868_v11 }
0x3f56   : > { %v8701_v23 = vpop.f32.mrf.mxu1 }
0x3f57   : > { %v8705_v38 = vadd.f32 %v8701_v23, %v8457_v9  ;;  %v9178_v9 = vrot.slane %v9536_v18, %v11270_v20 }
0x3f58   : > { %v10534_v10 = vpop.f32.mrf.mxu1 }
0x3f5a   : > { %v8874_v12 = vpop.f32.mrf.mxu1 }
0x3f5b   : > { %10552 = vmatmul.mubr.msk.f32.vlgmr.msra.gmra.mxu1 %vm880_vm1, %v8874_v12 }
0x3f5c   : > { %v10548_v13 = vpop.f32.mrf.mxu1  ;;  %10581 = vmatprep.mubr.msk.f32.mxu1 %vm10869_vm4, %v10868_v11  ;;  %10566 = vmatpush3.msra.mxu1 %v9534_v63 }
0x3f5d   : > { %10567 = vmatprep.subr.mxu1 %v10868_v11 }
0x3f5e   : > { %10568 = vmatpush3.msra.mxu1 %v9533_v41 }
0x3f5f   : > { %10569 = vmatprep.subr.mxu1 %v10868_v11 }
0x3f60   : > { %10570 = vmatpush3.msra.mxu1 %v9532_v2 }
0x3f61   : > { %10571 = vmatprep.subr.mxu1 %v10868_v11 }
0x3f62   : > { %10572 = vmatpush3.msra.mxu1 %v9531_v40 }
0x3f63   : > { %10573 = vmatprep.subr.mxu1 %v10868_v11 }
0x3f64   : > { %10574 = vmatpush3.msra.mxu1 %v9530_v42 }
0x3f65   : > { %10575 = vmatprep.subr.mxu1 %v10868_v11 }
0x3f66   : > { %10576 = vmatpush3.msra.mxu1 %v9529_v52 }
0x3f67   : > { %10577 = vmatprep.subr.mxu1 %v10868_v11 }
0x3f68   : > { %10578 = vmatpush3.msra.mxu1 %v9528_v53 }
0x3f69   : > { %10579 = vmatprep.subr.mxu1 %v10868_v11 }
0x3f6a   : > { %10580 = vmatpush3.msra.mxu1 %v9527_v29 }
0x401b   : > { %v8947_v17 = vpop.f32.mrf.mxu1 }
0x401c   : > { %v8951_v21 = vadd.f32 %v8947_v17, %v8705_v38 }
0x401d   : > { %v10553_v22 = vpop.f32.mrf.mxu1 }
0x401e   : > { %v8956_v25 = vadd.f32 %v9520_v14, %v8951_v21 }
0x4020   : > { %v8957_v6 = vadd.f32 %v8956_v25, %v12232_v31  ;;  %v9523_v31 = vld [vmem:[%s12536_s17 + $0x30] sm:$0xff] }
0x4021   : > { %10559 = vmatpush3.msra.mxu0 %v9523_v31 }
0x4022   : > { %v8960_v1 = vsel %vm683_vm0, %v8957_v6, 0.0  ;;  %10560 = vmatprep.subr.mxu0 %v10868_v11 }
0x4023   : > { %8961 = vadd.xlane.f32.xlu0 %v8960_v1  ;;  %10561 = vmatpush3.msra.mxu0 %v9522_v34 }
0x40ac   : > { %v8962_v35 = vpop.xlane.xlu0 %8961 }
0x40ad   : > { %v8963_v26 = vmul.f32 0.03125, %v8962_v35 }
0x40af   : > { %v8964_v0 = vsub.f32 %v8957_v6, %v8963_v26 }
0x40b1   : > { %v8965_v7 = vmul.f32 %v8964_v0, %v8964_v0 }
0x40b3   : > { %v8966_v28 = vsel %vm683_vm0, %v8965_v7, 0.0 }
0x40b4   : > { %8967 = vadd.xlane.f32.xlu1 %v8966_v28 }
0x413d   : > { %v8968_v44 = vpop.xlane.xlu1 %8967 }
0x413e   : > { %v8969_v43 = vmul.f32 0.03125, %v8968_v44 }
0x4140   : > { %v8970_v45 = vadd.f32 1e-05, %v8969_v43 }
0x4142   : > { %10788 = vrsqrt.f32 %v8970_v45 }
0x414f   : > { %v10789_v36 = vpop.eup %10788 }
0x4150   : > { %v8972_v48 = vmul.f32 %v10789_v36, %v8964_v0 }
0x4152   : > { %v8977_v51 = vmul.f32 %v8976_v32, %v8972_v48 }
0x4154   : > { %v8982_v49 = vadd.f32 %v8981_v50, %v8977_v51 }
0x4156   : > { %10563 = vmatmul.mubr.msk.f32.vlgmr.msra.gmra.mxu0 %vm683_vm0, %v8982_v49 }
0x4216   : > { %v9074_v39 = vpop.f32.mrf.mxu0 }
0x4217   : > { %v9075_v56 = vadd.f32 %v9537_v54, %v9074_v39 }
0x4218   : > { %v10564_v55 = vpop.f32.mrf.mxu0 }
0x4219   : > { %v9078_v37 = vmax.f32 %v9075_v56, 0.0 }
0x421b   : > { %10582 = vmatmul.mubr.msk.f32.vlgmr.msra.gmra.mxu1 %vm2154_vm3, %v9078_v37 }
0x42db   : > { %v9152_v46 = vpop.f32.mrf.mxu1 }
0x42dc   : > { %v9153_v57 = vadd.f32 %v9539_v47, %v9152_v46 }
0x42dd   : > { %v10583_v27 = vpop.f32.mrf.mxu1 }
0x42de   : > { %v9156_v24 = vadd.f32 %v9153_v57, %v8982_v49 }
0x42e0   : > { %v9157_v11 = vsel %vm683_vm0, %v9156_v24, 0.0 }
0x42e1   : > { %9158 = vadd.xlane.f32.xlu0 %v9157_v11 }
0x436a   : > { %v9159_v58 = vpop.xlane.xlu0 %9158 }
0x436b   : > { %v9160_v60 = vmul.f32 0.03125, %v9159_v58 }
0x436d   : > { %v9161_v59 = vsub.f32 %v9156_v24, %v9160_v60 }
0x436f   : > { %v9162_v5 = vmul.f32 %v9161_v59, %v9161_v59 }
0x4371   : > { %v9163_v4 = vsel %vm683_vm0, %v9162_v5, 0.0 }
0x4372   : > { %9164 = vadd.xlane.f32.xlu0 %v9163_v4 }
0x43fb   : > { %v9165_v61 = vpop.xlane.xlu0 %9164 }
0x43fc   : > { %v9166_v62 = vmul.f32 0.03125, %v9165_v61 }
0x43fe   : > { %v9167_v3 = vadd.f32 1e-05, %v9166_v62 }
0x4400   : > { %10790 = vrsqrt.f32 %v9167_v3 }
0x440d   : > { %v10791_v8 = vpop.eup %10790 }
0x440e   : > { %v9169_v23 = vmul.f32 %v10791_v8, %v9161_v59 }
0x4410   : > { %v9174_v38 = vmul.f32 %v9173_v19, %v9169_v23 }
0x4412   : > { %v9179_v10 = vadd.f32 %v9178_v9, %v9174_v38 }
0x4414   : > { %9541 = vst.msk [vmem:[%s12066_s20 + $0x8] sm:$0xff] %vm683_vm0, %v9179_v10 }
0x4415   : > { %10811 = shalt.err (!%p10808_p3)
}
0x4416   : > { %s10812_s23 = scalar_lea.hbm %s12471_s7, 256  ;;  %s10816_s9 = scalar_lea.hbm %s12603_s6, 512 }
0x4417   : > { %p10813_p4 = scmp.ne.s32.totalorder %s12471_s7, %s10812_s23  ;;  %p10817_p9 = scmp.lt.s32.totalorder %s12471_s7, %s12603_s6 }
0x4418   : > { %p10818_p10 = scmp.lt.s32.totalorder %s10816_s9, %s10812_s23 }
0x4419   : > { %p10814_p7 = pnand %p10813_p4, %p11017_p5 }
0x441a   : > { %p10819_p11 = por %p10818_p10, %p10817_p9 }
0x441b   : > { %p10815_p8 = pneg %p10814_p7 }
0x441d   : > { %p10820_p12 = pnand %p10819_p11, %p10815_p8 }
0x441f   : > { %10823 = shalt.err (!%p10820_p12)
}
0x4420   : > { %s10871_s3 = smov 128   ;;  %s10872_s30 = smov 256  }
0x4421   : > { %s10873_s26 = smov 8  }
0x4422   : > { %10584 = dma.vmem_to_hbm [thread:$0]  (%p11017_p5), %s12473_s5, 256, %s12471_s7, %s12479_s2, %s10871_s3, %s10872_s30, %s10873_s26  }
0x4423 PF: > { %s12604_s1 = sld [smem:[#allocation7_spill]] }
0x4424   : > { %s12605_s27 = sld [smem:[#allocation5_spill]] }
0x4429   : > { %p10590_p13 = scmp.ge.s32.totalorder %s12604_s1, 2 }
0x442a   : > { %s9210_s28 = sand.u32 1, %s12605_s27  }
0x442b   : > { %p10587_p0 = pnand %p10590_p13, %p11021_p6  ;;  %s9211_s25 = scalar_lea.sflag [#allocation3], %s9210_s28 }
0x442d   : > { %p10588_p1 = pneg %p10587_p0 }
0x442f   : > { %10841 = dma.done.wait (%p10588_p1), %s9211_s25, 256  }
0x4430   : > { %10843 = vsyncadd (%p10588_p1), %s9211_s25, 4294967040  ;;  %s12607_s24 = sld [smem:[#allocation8_spill]]  ;;  %s12610_s1 = smov %s10850_s22 }
0x4431   : > { %s12608_s23 = sld [smem:[#allocation6_spill]] }
0x4432   : > { %s12609_s20 = sld [smem:[#allocation9_spill]] }
0x4436   : > { %p30_p2 = scmp.ge.s32.totalorder %s12607_s24, 4  }
0x4437   : > { %s12611_s22 = smov %s12608_s23 }
0x4438   : > { %s12612_s23 = smov %s12609_s20  ;;  %32 = sbr.rel (!%p30_p2) target bundleno = 15 (0xf), region = 157 }
0x443d   :  { %9216 = vsyncpa [#allocation3], 1 }
0x443e   :  { %9218 = vsyncpa [#allocation3 + $0x1], 1 }

</bundles_post_ra>
